<compile_context>
chip_gen: v6e
topology: v6e:2x2x1
jax: 0.10.0
libtpu: 0.0.40
codegen_flags: <defaults>
</compile_context>

<pallas_src>
import functools
import math

import jax
import jax.numpy as jnp
from jax.experimental import pallas as pl
from jax.experimental.pallas import tpu as pltpu


def _round_up(a, b):
    return ((a + b - 1) // b) * b


def _pair(v):
    return (v, v) if isinstance(v, int) else tuple(v)


def _same_pad_amounts(H, kh, stride, dilation):
    """Replicates conv2d_same_padding's padding math (rows drive cols)."""
    out_rows = (H + stride - 1) // stride
    padding_rows = max(0, (out_rows - 1) * stride + (kh - 1) * dilation + 1 - H)
    odd = padding_rows % 2
    half = padding_rows // 2
    # NOTE: the PyTorch reference derives the column padding from the *row*
    # dimension too (square-input quirk of TVNet); replicated exactly.
    return half, half + odd, half, half + odd


def _block_vmem_bytes(shape, itemsize):
    """Conservative lane/sublane-padded VMEM footprint of one block."""
    shape = tuple(shape)
    if len(shape) < 2:
        shape = (1,) + shape
    lead = 1
    for d in shape[:-2]:
        lead *= d
    return lead * _round_up(shape[-2], 8) * _round_up(shape[-1], 128) * itemsize


# ----------------------------- Pallas kernel --------------------------------
def _conv_same_kernel(*refs, has_halo, n_ct, th, th_in, wout, sh, sw, dh, dw,
                      kh, kw, cin_p):
    """One (batch image, output-row tile, Cout tile) grid step.

    refs (in order):
      xa_ref : (1, th_in, Wp, Cin_p)    bf16  main input rows of this tile
      xh_ref : (1, halo_blk, Wp, Cin_p) bf16  halo rows (only if has_halo)
      w_ref  : (kh*kw*Cin_p, tn)        bf16  K-folded weight slab
      b_ref  : (1, tn)                  f32   conv bias (zeros if bias=None)
      o_ref  : (1, th, Wout, tn)        f32
      lhs_ref: (th*Wout, kh*kw*Cin_p)   bf16  im2col scratch (persists over c)
    """
    if has_halo:
        xa_ref, xh_ref, w_ref, b_ref, o_ref, lhs_ref = refs
    else:
        xa_ref, w_ref, b_ref, o_ref, lhs_ref = refs
        xh_ref = None

    rows = th * wout
    tn = o_ref.shape[-1]

    def _win(ref, rstart, rcount, c0):
        # (rcount, wout, cin_p) window read straight from the VMEM block.
        if sh == 1:
            ridx = slice(rstart, rstart + rcount)
        else:
            ridx = pl.ds(rstart, rcount, stride=sh)
        if sw == 1:
            cidx = slice(c0, c0 + wout)
        else:
            cidx = pl.ds(c0, wout, stride=sw)
        return ref[0, ridx, cidx, :]

    def _build_lhs():
        # Build the (rows, kh*kw*Cin_p) im2col LHS once per row tile; it is
        # reused by every Cout tile.  Taps are sliced directly from the main
        # block; only taps whose window runs past the tile touch the small
        # halo block (no full-tile concatenate).
        pieces = []
        for ki in range(kh):
            r0 = ki * dh
            n_a = min(th, -(-(th_in - r0) // sh))   # window rows inside xa
            for kj in range(kw):
                c0 = kj * dw
                win = _win(xa_ref, r0, n_a, c0)
                if n_a < th:
                    hr0 = r0 + n_a * sh - th_in
                    win = jnp.concatenate(
                        [win, _win(xh_ref, hr0, th - n_a, c0)], axis=0)
                pieces.append(win.reshape(rows, cin_p))
        lhs_ref[...] = (pieces[0] if len(pieces) == 1
                        else jnp.concatenate(pieces, axis=1))

    if n_ct == 1:
        _build_lhs()
    else:
        pl.when(pl.program_id(2) == 0)(_build_lhs)

    # Single K-folded MXU matmul (K = kh*kw*Cin_p), f32 accumulation.
    acc = jnp.dot(lhs_ref[...], w_ref[...], preferred_element_type=jnp.float32)
    y = acc + b_ref[...]
    # TODO(synk): emit bf16 / NHWC directly if the downstream consumer accepts
    # it; f32 NCHW is kept for parity with the PyTorch module.
    o_ref[...] = y.reshape(1, th, wout, tn).astype(o_ref.dtype)


# ------------------------------- wrapper -------------------------------------
def conv2d_same_pallas(x, weight, bias=None, *, stride=1, padding=0, dilation=1,
                       groups=1, target_pixels=512):
    """Forward of the TVNet Conv2d module.  x: (N, Cin, H, W) NCHW float32,
    weight: (Cout, Cin, kh, kw).  Returns (N, Cout, Hout, Wout) float32."""
    del padding  # conv2d_same_padding ignores the module's padding argument.
    if groups != 1:
        # TODO(synk): grouped convolution (groups > 1) not implemented.
        raise NotImplementedError("groups != 1 is not supported")

    sh, sw = _pair(stride)
    dh, dw = _pair(dilation)
    N, Cin, H, W = x.shape
    Cout, _, kh, kw = weight.shape

    pad_t, pad_b, pad_l, pad_r = _same_pad_amounts(H, kh, sh, dh)
    Hp = H + pad_t + pad_b
    Wp = W + pad_l + pad_r
    eff_kh = (kh - 1) * dh + 1
    eff_kw = (kw - 1) * dw + 1
    Hout = (Hp - eff_kh) // sh + 1
    Wout = (Wp - eff_kw) // sw + 1

    # ---- Cout tiling: no 16x write amplification for tiny Cout -------------
    if Cout >= 128:
        tn = 128
        Cout_p = _round_up(Cout, tn)
        if Cout_p % 256 == 0:
            tn = 256                      # v6e/v7x 256-wide MXU, fewer c steps
    else:
        Cout_p = _round_up(Cout, 8)
        tn = Cout_p
    n_ct = Cout_p // tn

    Cin_p = _round_up(Cin, 8)
    K_tot = kh * kw * Cin_p

    # ---- row tiling ---------------------------------------------------------
    halo = (kh - 1) * dh
    if halo > 0:
        halo_blk = _round_up(halo, 8)
        need = halo_blk // math.gcd(halo_blk, sh)   # th_in must be a multiple of halo_blk
        row_align = 8 * need // math.gcd(8, need)   # lcm(8, need)
    else:
        halo_blk = 0
        row_align = 8

    th_floor = row_align
    while th_floor * sh <= halo:          # every tap window must start in the main tile
        th_floor += row_align

    th = _round_up(max(1, target_pixels // max(Wout, 1)), row_align)
    th = min(th, _round_up(Hout, row_align))
    th = max(th, th_floor)
    if N == 1 and _round_up(Hout, row_align) >= 2 * th_floor:
        # v7x megacore: expose >= 2 row tiles on a "parallel" axis when N == 1.
        th = min(th, max(th_floor, _round_up(-(-Hout // 2), row_align)))

    def _vmem_need(th_try):
        th_in_t = th_try * sh
        n = 2 * _block_vmem_bytes((1, th_in_t, Wp, Cin_p), 2)           # xa (double-buffered)
        if halo > 0:
            n += 2 * _block_vmem_bytes((1, halo_blk, Wp, Cin_p), 2)     # halo
        n += 2 * _block_vmem_bytes((K_tot, tn), 2)                      # weights
        n += 2 * _block_vmem_bytes((1, tn), 4)                          # bias
        n += 2 * _block_vmem_bytes((1, th_try, Wout, tn), 4)            # out
        n += _block_vmem_bytes((th_try * Wout, K_tot), 2)               # lhs scratch
        return n

    # Shrink th until the (lane-padded) per-step VMEM fits a conservative budget.
    while th > th_floor and _vmem_need(th) > (20 << 20):
        th = max(th_floor, th - row_align)

    n_ht = -(-Hout // th)
    th_in = th * sh
    assert halo < th_in
    Hout_p = n_ht * th
    rows_needed = n_ht * th_in + halo_blk
    Hin = max(rows_needed, pad_t + H)

    # ---- host-side layout prep (one fused transpose/cast/pad per array) ----
    x_nhwc = jnp.transpose(x, (0, 2, 3, 1)).astype(jnp.bfloat16)
    x_p = jnp.pad(x_nhwc, ((0, 0), (pad_t, Hin - H - pad_t),
                           (pad_l, pad_r), (0, Cin_p - Cin)))
    w = jnp.transpose(weight, (2, 3, 1, 0))                      # (kh, kw, Cin, Cout)
    w = jnp.pad(w, ((0, 0), (0, 0), (0, Cin_p - Cin), (0, Cout_p - Cout)))
    w = w.reshape(K_tot, Cout_p).astype(jnp.bfloat16)            # K-folded weights
    if bias is None:
        b = jnp.zeros((1, Cout_p), jnp.float32)
    else:
        b = jnp.pad(bias.astype(jnp.float32), (0, Cout_p - Cout)).reshape(1, Cout_p)

    # ---- specs ---------------------------------------------------------------
    in_specs = [pl.BlockSpec((1, th_in, Wp, Cin_p), lambda n, i, c: (n, i, 0, 0))]
    operands = [x_p]
    if halo > 0:
        halo_ratio = th_in // halo_blk
        in_specs.append(
            pl.BlockSpec((1, halo_blk, Wp, Cin_p),
                         lambda n, i, c: (n, (i + 1) * halo_ratio, 0, 0)))
        operands.append(x_p)
    in_specs += [pl.BlockSpec((K_tot, tn), lambda n, i, c: (0, c)),
                 pl.BlockSpec((1, tn), lambda n, i, c: (0, c))]
    operands += [w, b]

    kernel = functools.partial(
        _conv_same_kernel, has_halo=halo > 0, n_ct=n_ct, th=th, th_in=th_in,
        wout=Wout, sh=sh, sw=sw, dh=dh, dw=dw, kh=kh, kw=kw, cin_p=Cin_p)

    # Honest cost estimate: halo-only input reads, per-step weight re-fetch,
    # real (Cout_p, f32) writeback.
    flops = 2 * N * n_ht * th * Wout * K_tot * Cout_p
    bytes_accessed = (N * n_ht * (th_in + halo_blk) * Wp * Cin_p * 2
                      + N * n_ht * n_ct * (K_tot * tn * 2 + tn * 4)
                      + N * Hout_p * Wout * Cout_p * 4)

    vmem_limit = int(min(64 << 20, max(32 << 20, 2 * _vmem_need(th) + (2 << 20))))

    out = pl.pallas_call(
        kernel,
        out_shape=jax.ShapeDtypeStruct((N, Hout_p, Wout, Cout_p), jnp.float32),
        grid_spec=pltpu.PrefetchScalarGridSpec(
            num_scalar_prefetch=0,
            grid=(N, n_ht, n_ct),
            in_specs=in_specs,
            out_specs=pl.BlockSpec((1, th, Wout, tn),
                                   lambda n, i, c: (n, i, 0, c)),
            scratch_shapes=[pltpu.VMEM((th * Wout, K_tot), jnp.bfloat16)],
        ),
        compiler_params=pltpu.CompilerParams(
            dimension_semantics=("parallel", "parallel", "arbitrary"),
            vmem_limit_bytes=vmem_limit),
        cost_estimate=pl.CostEstimate(flops=flops, transcendentals=0,
                                      bytes_accessed=bytes_accessed),
    )(*operands)

    out = out[:, :Hout, :, :Cout]          # drop row / Cout padding
    # NHWC -> NCHW to match the PyTorch module's output layout.
    return jnp.transpose(out, (0, 3, 1, 2))


# ------------------------------- self-test -----------------------------------
if __name__ == "__main__":
    # Conv2d(in_channels=4, out_channels=8, kernel_size=3, stride=1,
    #        padding=1 (ignored by same-padding), bias=True)
    N, Cin, H, W = 2, 4, 16, 16
    Cout, kh, kw = 8, 3, 3
    stride, dilation = 1, 1

    key = jax.random.PRNGKey(0)
    kx, kw_, kb = jax.random.split(key, 3)
    x = jax.random.normal(kx, (N, Cin, H, W), jnp.float32)
    weight = jax.random.normal(kw_, (Cout, Cin, kh, kw), jnp.float32) * 0.1
    bias = 0.1 * jax.random.normal(kb, (Cout,), jnp.float32)

    out = conv2d_same_pallas(x, weight, bias, stride=stride, padding=1,
                             dilation=dilation)
    out = jax.block_until_ready(out)

    # Reference: the same "SAME"-padded conv on bf16-rounded inputs (the kernel
    # feeds the MXU bf16 operands with f32 accumulation).
    pad_t, pad_b, pad_l, pad_r = _same_pad_amounts(H, kh, stride, dilation)
    x_r = x.astype(jnp.bfloat16).astype(jnp.float32)
    w_r = weight.astype(jnp.bfloat16).astype(jnp.float32)
    ref = jax.lax.conv_general_dilated(
        x_r, w_r,
        window_strides=(stride, stride),
        padding=[(pad_t, pad_b), (pad_l, pad_r)],
        rhs_dilation=(dilation, dilation),
        dimension_numbers=("NCHW", "OIHW", "NCHW"),
        preferred_element_type=jnp.float32,
        precision=jax.lax.Precision.HIGHEST)
    ref = ref + bias.reshape(1, -1, 1, 1)

    assert out.shape == (N, Cout, H, W), out.shape
    err = float(jnp.max(jnp.abs(out - ref)))
    assert err < 2e-3, err
    print("KERNEL_OK")
</pallas_src>

<mosaic_0001>
module attributes {stable_mosaic.version = 11 : i64} {
  func.func @_conv_same_kernel(%arg0: i32, %arg1: i32, %arg2: i32, %arg3: memref<1x16x18x8xbf16, #tpu.memory_space<vmem>>, %arg4: memref<1x8x18x8xbf16, #tpu.memory_space<vmem>>, %arg5: memref<72x8xbf16, #tpu.memory_space<vmem>>, %arg6: memref<1x8xf32, #tpu.memory_space<vmem>>, %arg7: memref<1x16x16x8xf32, #tpu.memory_space<vmem>>, %arg8: memref<256x72xbf16, #tpu.memory_space<vmem>>) attributes {dimension_semantics = [#tpu.dimension_semantics<parallel>, #tpu.dimension_semantics<parallel>, #tpu.dimension_semantics<arbitrary>], iteration_bounds = array<i64: 2, 1, 1>, scalar_prefetch = 0 : i64, scratch_operands = 1 : i64, tpu.core_type = #tpu.core_type<tc>, window_params = [{transform_indices = @transform_0, window_bounds = array<i64: 1, 16, 18, 8>}, {transform_indices = @transform_1, window_bounds = array<i64: 1, 8, 18, 8>}, {transform_indices = @transform_2, window_bounds = array<i64: 72, 8>}, {transform_indices = @transform_3, window_bounds = array<i64: 1, 8>}, {transform_indices = @transform_4, window_bounds = array<i64: 1, 16, 16, 8>}]} {
    %c0 = arith.constant 0 : index
    %c0_0 = arith.constant 0 : index
    %c0_1 = arith.constant 0 : index
    %c0_2 = arith.constant 0 : index
    %0 = vector.load %arg3[%c0, %c0_0, %c0_1, %c0_2] : memref<1x16x18x8xbf16, #tpu.memory_space<vmem>>, vector<1x16x16x8xbf16>
    %1 = vector.shape_cast %0 : vector<1x16x16x8xbf16> to vector<16x16x8xbf16>
    %2 = vector.shape_cast %1 : vector<16x16x8xbf16> to vector<256x8xbf16>
    %c0_3 = arith.constant 0 : index
    %c0_4 = arith.constant 0 : index
    %c1 = arith.constant 1 : index
    %c0_5 = arith.constant 0 : index
    %3 = vector.load %arg3[%c0_3, %c0_4, %c1, %c0_5] : memref<1x16x18x8xbf16, #tpu.memory_space<vmem>>, vector<1x16x16x8xbf16>
    %4 = vector.shape_cast %3 : vector<1x16x16x8xbf16> to vector<16x16x8xbf16>
    %5 = vector.shape_cast %4 : vector<16x16x8xbf16> to vector<256x8xbf16>
    %c0_6 = arith.constant 0 : index
    %c0_7 = arith.constant 0 : index
    %c2 = arith.constant 2 : index
    %c0_8 = arith.constant 0 : index
    %6 = vector.load %arg3[%c0_6, %c0_7, %c2, %c0_8] : memref<1x16x18x8xbf16, #tpu.memory_space<vmem>>, vector<1x16x16x8xbf16>
    %7 = vector.shape_cast %6 : vector<1x16x16x8xbf16> to vector<16x16x8xbf16>
    %8 = vector.shape_cast %7 : vector<16x16x8xbf16> to vector<256x8xbf16>
    %c0_9 = arith.constant 0 : index
    %c1_10 = arith.constant 1 : index
    %c0_11 = arith.constant 0 : index
    %c0_12 = arith.constant 0 : index
    %9 = vector.load %arg3[%c0_9, %c1_10, %c0_11, %c0_12] : memref<1x16x18x8xbf16, #tpu.memory_space<vmem>>, vector<1x15x16x8xbf16>
    %10 = vector.shape_cast %9 : vector<1x15x16x8xbf16> to vector<15x16x8xbf16>
    %c0_13 = arith.constant 0 : index
    %c0_14 = arith.constant 0 : index
    %c0_15 = arith.constant 0 : index
    %c0_16 = arith.constant 0 : index
    %11 = vector.load %arg4[%c0_13, %c0_14, %c0_15, %c0_16] : memref<1x8x18x8xbf16, #tpu.memory_space<vmem>>, vector<1x1x16x8xbf16>
    %12 = vector.shape_cast %11 : vector<1x1x16x8xbf16> to vector<1x16x8xbf16>
    %13 = tpu.concatenate %10, %12 in 0 : vector<15x16x8xbf16>, vector<1x16x8xbf16> -> vector<16x16x8xbf16>
    %14 = vector.shape_cast %13 : vector<16x16x8xbf16> to vector<256x8xbf16>
    %c0_17 = arith.constant 0 : index
    %c1_18 = arith.constant 1 : index
    %c1_19 = arith.constant 1 : index
    %c0_20 = arith.constant 0 : index
    %15 = vector.load %arg3[%c0_17, %c1_18, %c1_19, %c0_20] : memref<1x16x18x8xbf16, #tpu.memory_space<vmem>>, vector<1x15x16x8xbf16>
    %16 = vector.shape_cast %15 : vector<1x15x16x8xbf16> to vector<15x16x8xbf16>
    %c0_21 = arith.constant 0 : index
    %c0_22 = arith.constant 0 : index
    %c1_23 = arith.constant 1 : index
    %c0_24 = arith.constant 0 : index
    %17 = vector.load %arg4[%c0_21, %c0_22, %c1_23, %c0_24] : memref<1x8x18x8xbf16, #tpu.memory_space<vmem>>, vector<1x1x16x8xbf16>
    %18 = vector.shape_cast %17 : vector<1x1x16x8xbf16> to vector<1x16x8xbf16>
    %19 = tpu.concatenate %16, %18 in 0 : vector<15x16x8xbf16>, vector<1x16x8xbf16> -> vector<16x16x8xbf16>
    %20 = vector.shape_cast %19 : vector<16x16x8xbf16> to vector<256x8xbf16>
    %c0_25 = arith.constant 0 : index
    %c1_26 = arith.constant 1 : index
    %c2_27 = arith.constant 2 : index
    %c0_28 = arith.constant 0 : index
    %21 = vector.load %arg3[%c0_25, %c1_26, %c2_27, %c0_28] : memref<1x16x18x8xbf16, #tpu.memory_space<vmem>>, vector<1x15x16x8xbf16>
    %22 = vector.shape_cast %21 : vector<1x15x16x8xbf16> to vector<15x16x8xbf16>
    %c0_29 = arith.constant 0 : index
    %c0_30 = arith.constant 0 : index
    %c2_31 = arith.constant 2 : index
    %c0_32 = arith.constant 0 : index
    %23 = vector.load %arg4[%c0_29, %c0_30, %c2_31, %c0_32] : memref<1x8x18x8xbf16, #tpu.memory_space<vmem>>, vector<1x1x16x8xbf16>
    %24 = vector.shape_cast %23 : vector<1x1x16x8xbf16> to vector<1x16x8xbf16>
    %25 = tpu.concatenate %22, %24 in 0 : vector<15x16x8xbf16>, vector<1x16x8xbf16> -> vector<16x16x8xbf16>
    %26 = vector.shape_cast %25 : vector<16x16x8xbf16> to vector<256x8xbf16>
    %c0_33 = arith.constant 0 : index
    %c2_34 = arith.constant 2 : index
    %c0_35 = arith.constant 0 : index
    %c0_36 = arith.constant 0 : index
    %27 = vector.load %arg3[%c0_33, %c2_34, %c0_35, %c0_36] : memref<1x16x18x8xbf16, #tpu.memory_space<vmem>>, vector<1x14x16x8xbf16>
    %28 = vector.shape_cast %27 : vector<1x14x16x8xbf16> to vector<14x16x8xbf16>
    %c0_37 = arith.constant 0 : index
    %c0_38 = arith.constant 0 : index
    %c0_39 = arith.constant 0 : index
    %c0_40 = arith.constant 0 : index
    %29 = vector.load %arg4[%c0_37, %c0_38, %c0_39, %c0_40] : memref<1x8x18x8xbf16, #tpu.memory_space<vmem>>, vector<1x2x16x8xbf16>
    %30 = vector.shape_cast %29 : vector<1x2x16x8xbf16> to vector<2x16x8xbf16>
    %31 = tpu.concatenate %28, %30 in 0 : vector<14x16x8xbf16>, vector<2x16x8xbf16> -> vector<16x16x8xbf16>
    %32 = vector.shape_cast %31 : vector<16x16x8xbf16> to vector<256x8xbf16>
    %c0_41 = arith.constant 0 : index
    %c2_42 = arith.constant 2 : index
    %c1_43 = arith.constant 1 : index
    %c0_44 = arith.constant 0 : index
    %33 = vector.load %arg3[%c0_41, %c2_42, %c1_43, %c0_44] : memref<1x16x18x8xbf16, #tpu.memory_space<vmem>>, vector<1x14x16x8xbf16>
    %34 = vector.shape_cast %33 : vector<1x14x16x8xbf16> to vector<14x16x8xbf16>
    %c0_45 = arith.constant 0 : index
    %c0_46 = arith.constant 0 : index
    %c1_47 = arith.constant 1 : index
    %c0_48 = arith.constant 0 : index
    %35 = vector.load %arg4[%c0_45, %c0_46, %c1_47, %c0_48] : memref<1x8x18x8xbf16, #tpu.memory_space<vmem>>, vector<1x2x16x8xbf16>
    %36 = vector.shape_cast %35 : vector<1x2x16x8xbf16> to vector<2x16x8xbf16>
    %37 = tpu.concatenate %34, %36 in 0 : vector<14x16x8xbf16>, vector<2x16x8xbf16> -> vector<16x16x8xbf16>
    %38 = vector.shape_cast %37 : vector<16x16x8xbf16> to vector<256x8xbf16>
    %c0_49 = arith.constant 0 : index
    %c2_50 = arith.constant 2 : index
    %c2_51 = arith.constant 2 : index
    %c0_52 = arith.constant 0 : index
    %39 = vector.load %arg3[%c0_49, %c2_50, %c2_51, %c0_52] : memref<1x16x18x8xbf16, #tpu.memory_space<vmem>>, vector<1x14x16x8xbf16>
    %40 = vector.shape_cast %39 : vector<1x14x16x8xbf16> to vector<14x16x8xbf16>
    %c0_53 = arith.constant 0 : index
    %c0_54 = arith.constant 0 : index
    %c2_55 = arith.constant 2 : index
    %c0_56 = arith.constant 0 : index
    %41 = vector.load %arg4[%c0_53, %c0_54, %c2_55, %c0_56] : memref<1x8x18x8xbf16, #tpu.memory_space<vmem>>, vector<1x2x16x8xbf16>
    %42 = vector.shape_cast %41 : vector<1x2x16x8xbf16> to vector<2x16x8xbf16>
    %43 = tpu.concatenate %40, %42 in 0 : vector<14x16x8xbf16>, vector<2x16x8xbf16> -> vector<16x16x8xbf16>
    %44 = vector.shape_cast %43 : vector<16x16x8xbf16> to vector<256x8xbf16>
    %45 = tpu.concatenate %2, %5, %8, %14, %20, %26, %32, %38, %44 in 1 : vector<256x8xbf16>, vector<256x8xbf16>, vector<256x8xbf16>, vector<256x8xbf16>, vector<256x8xbf16>, vector<256x8xbf16>, vector<256x8xbf16>, vector<256x8xbf16>, vector<256x8xbf16> -> vector<256x72xbf16>
    %c0_57 = arith.constant 0 : index
    %c0_58 = arith.constant 0 : index
    %46 = vector.load %arg8[%c0_57, %c0_58] : memref<256x72xbf16, #tpu.memory_space<vmem>>, vector<256x72xbf16>
    tpu.vector_store %arg8[%c0_57, %c0_58], %45 {strides = array<i32>} : memref<256x72xbf16, #tpu.memory_space<vmem>>, vector<256x72xbf16>,
    %c0_59 = arith.constant 0 : index
    %c0_60 = arith.constant 0 : index
    %47 = vector.load %arg8[%c0_59, %c0_60] : memref<256x72xbf16, #tpu.memory_space<vmem>>, vector<256x72xbf16>
    %c0_61 = arith.constant 0 : index
    %c0_62 = arith.constant 0 : index
    %48 = vector.load %arg5[%c0_61, %c0_62] : memref<72x8xbf16, #tpu.memory_space<vmem>>, vector<72x8xbf16>
    %cst = arith.constant dense<0.000000e+00> : vector<256x8xf32>
    %49 = tpu.matmul %47, %48, %cst {dimension_numbers = #tpu.dot_dimension_numbers<[1], [0], [0], [1], [0, 0, 1, 1], [], []>} : vector<256x72xbf16>, vector<72x8xbf16>, vector<256x8xf32> -> vector<256x8xf32>
    %c0_63 = arith.constant 0 : index
    %c0_64 = arith.constant 0 : index
    %50 = vector.load %arg6[%c0_63, %c0_64] : memref<1x8xf32, #tpu.memory_space<vmem>>, vector<1x8xf32>
    %51 = vector.broadcast %50 : vector<1x8xf32> to vector<256x8xf32>
    %52 = arith.addf %49, %51 : vector<256x8xf32>
    %53 = vector.shape_cast %52 : vector<256x8xf32> to vector<1x16x16x8xf32>
    %c0_65 = arith.constant 0 : index
    %c0_66 = arith.constant 0 : index
    %c0_67 = arith.constant 0 : index
    %c0_68 = arith.constant 0 : index
    %54 = vector.load %arg7[%c0_65, %c0_66, %c0_67, %c0_68] : memref<1x16x16x8xf32, #tpu.memory_space<vmem>>, vector<1x16x16x8xf32>
    tpu.vector_store %arg7[%c0_65, %c0_66, %c0_67, %c0_68], %53 {strides = array<i32>} : memref<1x16x16x8xf32, #tpu.memory_space<vmem>>, vector<1x16x16x8xf32>,
    return
  }
  func.func @transform_0(%arg0: i32, %arg1: i32, %arg2: i32) -> (i32, i32, i32, i32) {
    %c0_i32 = arith.constant 0 : i32
    %c0_i32_0 = arith.constant 0 : i32
    %c0_i32_1 = arith.constant 0 : i32
    return %arg0, %arg1, %c0_i32, %c0_i32_0 : i32, i32, i32, i32
  }
  func.func @transform_1(%arg0: i32, %arg1: i32, %arg2: i32) -> (i32, i32, i32, i32) {
    %c1_i32 = arith.constant 1 : i32
    %0 = arith.addi %arg1, %c1_i32 : i32
    %c2_i32 = arith.constant 2 : i32
    %1 = arith.muli %0, %c2_i32 : i32
    %c0_i32 = arith.constant 0 : i32
    %c0_i32_0 = arith.constant 0 : i32
    %c0_i32_1 = arith.constant 0 : i32
    return %arg0, %1, %c0_i32, %c0_i32_0 : i32, i32, i32, i32
  }
  func.func @transform_2(%arg0: i32, %arg1: i32, %arg2: i32) -> (i32, i32) {
    %c0_i32 = arith.constant 0 : i32
    %c0_i32_0 = arith.constant 0 : i32
    return %c0_i32, %arg2 : i32, i32
  }
  func.func @transform_3(%arg0: i32, %arg1: i32, %arg2: i32) -> (i32, i32) {
    %c0_i32 = arith.constant 0 : i32
    %c0_i32_0 = arith.constant 0 : i32
    return %c0_i32, %arg2 : i32, i32
  }
  func.func @transform_4(%arg0: i32, %arg1: i32, %arg2: i32) -> (i32, i32, i32, i32) {
    %c0_i32 = arith.constant 0 : i32
    %c0_i32_0 = arith.constant 0 : i32
    return %arg0, %arg1, %c0_i32, %arg2 : i32, i32, i32, i32
  }
}

</mosaic_0001>

<bundles_post_ra>
// kernel: tpu_custom_call.1
= control target key start
LH: loop header
LB: loop body
LE: loop exit
PB: predicated region body
PF: predicated region fallthrough
CT: control target
= control target key end

     0   :  { %s4513_s15 = smov 0   ;;  %s4515_s16 = smov 0   ;;  %s6507_s0 = inlined_call_operand.vmem [shape: bf16[2,24,18,8], index: 0, kind: input, shape index: {}]   ;;  %s6508_s1 = inlined_call_operand.vmem [shape: bf16[2,24,18,8], index: 1, kind: input, shape index: {}]   ;;  %s6509_s2 = inlined_call_operand.vmem [shape: bf16[72,8], index: 2, kind: input, shape index: {}]   ;;  %s6510_s3 = inlined_call_operand.vmem [shape: f32[1,8], index: 3, kind: input, shape index: {}]   ;;  %s6511_s4 = inlined_call_operand.vmem [shape: f32[2,16,16,8], index: 4, kind: output, shape index: {}]  }
   0x1   :  { %s4517_s17 = smov 0  }
   0x2 LB: > { %s33_s18 = sadd.s32 1, %s4474_s16  ;;  %p3876_p0 = scmp.ge.s32.totalorder %s4478_s17, 1  ;;  %s4478_s17 = sphi %s4517_s17, %s14_s17   ;;  %s4474_s16 = sphi %s4515_s16, %s6517_s16   ;;  %s4470_s15 = sphi %s4513_s15, %s6516_s15  }
   0x3   : > { %p35_p1 = scmp.ge.s32.totalorder %s33_s18, 2  ;;  %p246_p2 = scmp.lt.s32.totalorder %s4478_s17, 3 }
   0x5   : > { %s6519_s18 = smov (%p35_p1, %s33_s18), 0  ;;  %p247_p3 = pnand %p3876_p0, %p246_p2 }
   0x6   : > { %p315_p4 = scmp.lt.s32.totalorder (!%p247_p3), %s4470_s15, 1  ;;  %s4480_s23 = smov (!%p247_p3), 24  }
   0x7   : > { %250 = sbr.rel (%p247_p3) target bundleno = 665 (0x299), region = 36  ;;  %s4481_s24 = smov (!%p247_p3), 16  }
   0x8   : > { %s4482_s25 = smov (!%p247_p3), 8   ;;  %s4483_s26 = smov (!%p247_p3), 32  }
   0x9   : > { %s4484_s27 = smov (!%p247_p3), 40   ;;  %s4485_s28 = smov (!%p247_p3), 48  }
   0xa   : > { %s4486_s29 = smov (!%p247_p3), 56   ;;  %s4487_s30 = smov (!%p247_p3), 64  }
   0xc   : > { %s6521_s15 = smov (!%p315_p4, %s4470_s15), 1  ;;  %vm866_vm0 = vcmask 1042432   ;;  %vm867_vm1 = vcmask 1046532   ;;  %vm415_vm3 = vsmask.f32 3328  ;;  %vm2887_vm6 = vcmask 64512  }
   0xd   : > { %s4335_s19 = smul.u32 288, %s6521_s15  ;;  %vm4570_vm2 = vmor %vm866_vm0, %vm867_vm1  ;;  %vm416_vm4 = vsmask.f32 7440  ;;  %vm2936_vm7 = vcmask 130048   ;;  %vm2969_vm8 = vcmask 195584   ;;  %vm3002_vm9 = vcmask 261120  }
   0xe   : > { %vm4628_vm5 = vmor %vm415_vm3, %vm416_vm4  ;;  %vm3035_vm10 = vcmask 326656   ;;  %vm3068_vm11 = vcmask 392192   ;;  %vm3101_vm12 = vcmask 457728   ;;  %vm3134_vm13 = vcmask 523264  }
   0xf   : > { %s4539_s22 = scalar_lea.vmem %s6507_s0, %s4335_s19  ;;  %vm3279_vm14 = vcmask 584704   ;;  %vm3516_vm15 = vcmask 1043456   ;;  %vm3467_vm0 = vcmask 588800   ;;  %s4258_s20 = sadd.s32 192, %s4335_s19 }
  0x10   : > { %v3913_v0 = vld [vmem:[%s4539_s22 + $0x6c] sm:$0xf]  ;;  %v4543_v1 = vld [vmem:[%s4539_s22 + $0x70] sm:$0xf]  ;;  %v4556_v12 = vld [vmem:[%s4539_s22 + $0x64] sm:$0xf]  ;;  %s5920_s5 = scalar_lea.vmem %s6508_s1, %s4258_s20 }
  0x11   : > { %v3897_v2 = vld [vmem:[%s4539_s22 + $0xc] sm:$0xf]  ;;  %v1232_v3 = vshll.u32 %v4543_v1, 16  ;;  %v1236_v4 = vshrl.u32 %v4543_v1, 16  ;;  %v4100_v5 = vcombine.low %v3913_v0, %v4543_v1  ;;  %v1223_v6 = vshrl.u32 %v3913_v0, 16 }
  0x12   : > { %v4550_v7 = vld [vmem:[%s4539_s22 + $0x10] sm:$0xf]  ;;  %v1226_v8 = vshll.u32 %v3913_v0, 16  ;;  %v1031_v15 = vshrl.u32 %v3897_v2, 16  ;;  %v1034_v16 = vshll.u32 %v3897_v2, 16  ;;  %v927_v22 = vrot.slane %v4556_v12, 5 }
  0x13   : > { %v1040_v9 = vshll.u32 %v4550_v7, 16  ;;  %v1044_v10 = vshrl.u32 %v4550_v7, 16  ;;  %v4092_v11 = vcombine.low %v3897_v2, %v4550_v7  ;;  %v4558_v13 = vrot.slane %v1236_v4, 4  ;;  %2465 = vrot.lane.b32.xlu1 %v4100_v5, %s4480_s23  ;;  %v4562_v17 = vld [vmem:[%s4539_s22 + $0x68] sm:$0x1] }
  0x14   : > { %v1225_v14 = vrot.slane %v1223_v6, 4  ;;  %v1228_v18 = vrot.slane %v1226_v8, 5  ;;  %v810_v20 = vld [vmem:[%s4539_s22 + $0x60] sm:$0xe]  ;;  %v930_v23 = vrot.slane %v4562_v17, 5  ;;  %v1033_v24 = vrot.slane %v1031_v15, 4 }
  0x15   : > { %v4564_v19 = vrot.slane %v1044_v10, 4  ;;  %2449 = vrot.lane.b32.xlu0 %v4092_v11, %s4480_s23  ;;  %v1036_v25 = vrot.slane %v1034_v16, 5  ;;  %v3889_v26 = vrot.slane %v810_v20, 9  ;;  %v4577_v27 = vld [vmem:[%s4539_s22 + $0x4] sm:$0xf]  ;;  %v620_v28 = vshll.u32 %v4556_v12, 16 }
  0x16   : > { %v1229_v29 = vor.u32 %v1228_v18, %v1225_v14  ;;  %v929_v30 = vrot.slane %v927_v22, 4  ;;  %v4581_v31 = vld [vmem:[%s4539_s22 + $0x8] sm:$0x1]  ;;  %v802_v32 = vld [vmem:[%s4539_s22] sm:$0xe]  ;;  %v871_v33 = vrot.slane %v4577_v27, 5 }
  0x17   : > { %v1037_v34 = vor.u32 %v1036_v25, %v1033_v24  ;;  %v928_v35 = vsel %vm4570_vm2, %v3889_v26, %v927_v22  ;;  %v3881_v36 = vrot.slane %v802_v32, 9  ;;  %v874_v37 = vrot.slane %v4581_v31, 5  ;;  %v4589_v38 = vld [vmem:[%s4539_s22 + $0x70] sm:$0xf]  ;;  %v4592_v39 = vld [vmem:[%s4539_s22 + $0x74] sm:$0x1] }
  0x18   : > { %v4594_v40 = vrot.slane %v1229_v29, 4  ;;  %v931_v41 = vsel %vm4570_vm2, %v929_v30, %v930_v23  ;;  %v873_v42 = vrot.slane %v871_v33, 4  ;;  %v811_v43 = vld [vmem:[%s4539_s22 + $0x6c] sm:$0xe]  ;;  %v934_v44 = vrot.slane %v4589_v38, 5 }
  0x19   : > { %v4600_v45 = vrot.slane %v1037_v34, 4  ;;  %v4084_v46 = vcombine.low %v928_v35, %v931_v41  ;;  %v872_v47 = vsel %vm4570_vm2, %v3881_v36, %v871_v33  ;;  %v3890_v48 = vrot.slane %v811_v43, 9  ;;  %v370_v49 = vld [vmem:[%s4539_s22 + $0x10] sm:$0xf]  ;;  %v400_v50 = vld [vmem:[%s4539_s22 + $0x14] sm:$0x1] }
  0x1a   : > { %v875_v51 = vsel %vm4570_vm2, %v873_v42, %v874_v37  ;;  %v936_v52 = vrot.slane %v934_v44, 4  ;;  %v937_v53 = vrot.slane %v4592_v39, 5  ;;  %v803_v54 = vld [vmem:[%s4539_s22 + $0xc] sm:$0xe]  ;;  %v878_v55 = vrot.slane %v370_v49, 5 }
  0x1b   : > { %2369 = vrot.lane.b32.xlu1 %v4084_v46, %s4481_s24  ;;  %v4076_v56 = vcombine.low %v872_v47, %v875_v51  ;;  %v935_v57 = vsel %vm4570_vm2, %v3890_v48, %v934_v44  ;;  %v3882_v58 = vrot.slane %v803_v54, 9  ;;  %v881_v59 = vrot.slane %v400_v50, 5  ;;  %v369_v60 = vld [vmem:[%s4539_s22 + $0xc] sm:$0xf]  ;;  %v367_v2 = vld [vmem:[%s4539_s22] sm:$0xf] }
  0x1c   : > { %v938_v61 = vsel %vm4570_vm2, %v936_v52, %v937_v53  ;;  %v880_v62 = vrot.slane %v878_v55, 4  ;;  %v443_v63 = vshrl.u32 %v369_v60, 16  ;;  %v446_v0 = vshll.u32 %v369_v60, 16  ;;  %v385_v23 = vld [vmem:[%s4539_s22 + $0x6c] sm:$0xf] }
  0x1d   : > { %2353 = vrot.lane.b32.xlu0 %v4076_v56, %s4481_s24  ;;  %v4085_v4 = vcombine.low %v935_v57, %v938_v61  ;;  %v879_v5 = vsel %vm4570_vm2, %v3882_v58, %v878_v55  ;;  %v452_v6 = vshll.u32 %v370_v49, 16  ;;  %v456_v8 = vshrl.u32 %v370_v49, 16  ;;  %v383_v52 = vld [vmem:[%s4539_s22 + $0x60] sm:$0xf]  ;;  %v4442_v21 = vld [vmem:[%s4539_s22 + $0x90] sm:$0xf] }
  0x1e   : > { %v882_v10 = vsel %vm4570_vm2, %v880_v62, %v881_v59  ;;  %v445_v11 = vrot.slane %v443_v63, 4  ;;  %v448_v14 = vrot.slane %v446_v0, 5  ;;  %v462_v15 = vshll.u32 %v400_v50, 16 }
  0x1f   : > { %2371 = vrot.lane.b32.xlu1 %v4085_v4, %s4481_s24  ;;  %v4077_v16 = vcombine.low %v879_v5, %v882_v10  ;;  %v454_v18 = vrot.slane %v452_v6, 5  ;;  %v458_v20 = vrot.slane %v456_v8, 4  ;;  %v419_v22 = vshrl.u32 %v367_v2, 16  ;;  %v3915_v4 = vld [vmem:[%s4539_s22 + $0x78] sm:$0xf] }
  0x20   : > { %v449_v24 = vor.u32 %v448_v14, %v445_v11  ;;  %v464_v25 = vrot.slane %v462_v15, 5  ;;  %v422_v26 = vshll.u32 %v367_v2, 16  ;;  %v428_v29 = vshll.u32 %v4577_v27, 16  ;;  %v4651_v10 = vld [vmem:[%s4539_s22 + $0x7c] sm:$0xf] }
  0x21   : > { %2355 = vrot.lane.b32.xlu0 %v4077_v16, %s4481_s24  ;;  %v459_v32 = vor.u32 %v458_v20, %v454_v18  ;;  %v421_v33 = vrot.slane %v419_v22, 4  ;;  %v432_v34 = vshrl.u32 %v4577_v27, 16  ;;  %v438_v35 = vshll.u32 %v4581_v31, 16 }
  0x22   : > { %v450_v36 = vrot.slane %v449_v24, 4  ;;  %v424_v37 = vrot.slane %v422_v26, 5  ;;  %v430_v41 = vrot.slane %v428_v29, 5  ;;  %v635_v42 = vshrl.u32 %v385_v23, 16 }
  0x23   : > { %v460_v43 = vrot.slane %v459_v32, 4  ;;  %v434_v44 = vrot.slane %v432_v34, 4  ;;  %v440_v46 = vrot.slane %v438_v35, 5  ;;  %v638_v47 = vshll.u32 %v385_v23, 16  ;;  %v4658_v23 = vld [vmem:[%s4539_s22 + $0x18] sm:$0xf] }
  0x24   : > { %v455_v48 = vsel %vm4628_vm5, %v450_v36, %v454_v18  ;;  %v425_v49 = vor.u32 %v424_v37, %v421_v33  ;;  %v637_v50 = vrot.slane %v635_v42, 4  ;;  %v644_v51 = vshll.u32 %v4589_v38, 16  ;;  %v4669_v35 = vld [vmem:[%s4539_s22 + $0x74] sm:$0x1] }
  0x25   : > { %v465_v27 = vsel %vm4628_vm5, %v460_v43, %v464_v25  ;;  %v435_v31 = vor.u32 %v434_v44, %v430_v41  ;;  %v640_v53 = vrot.slane %v638_v47, 5  ;;  %v648_v54 = vshrl.u32 %v4589_v38, 16 }
  0x26   : > { %v4061_v55 = vcombine.low %v455_v48, %v465_v27  ;;  %v426_v56 = vrot.slane %v425_v49, 4  ;;  %v646_v57 = vrot.slane %v644_v51, 5  ;;  %v654_v58 = vshll.u32 %v4592_v39, 16  ;;  %v4679_v48 = vld [vmem:[%s4539_s22 + $0x14] sm:$0x1] }
  0x27   : > { %v436_v59 = vrot.slane %v435_v31, 4  ;;  %v641_v60 = vor.u32 %v640_v53, %v637_v50  ;;  %v650_v61 = vrot.slane %v648_v54, 4  ;;  %v611_v62 = vshrl.u32 %v383_v52, 16 }
  0x28   : > { %2275 = vrot.lane.b32.xlu1 %v4061_v55, %s4482_s25  ;;  %v431_v63 = vsel %vm4628_vm5, %v426_v56, %v430_v41  ;;  %v656_v0 = vrot.slane %v654_v58, 5  ;;  %v614_v2 = vshll.u32 %v383_v52, 16  ;;  %v622_v38 = vrot.slane %v620_v28, 5 }
  0x29   : > { %v441_v39 = vsel %vm4628_vm5, %v436_v59, %v440_v46  ;;  %v642_v5 = vrot.slane %v641_v60, 4  ;;  %v651_v6 = vor.u32 %v650_v61, %v646_v57  ;;  %v613_v8 = vrot.slane %v611_v62, 4 }
  0x2a   : > { %v4060_v11 = vcombine.low %v431_v63, %v441_v39  ;;  %v616_v14 = vrot.slane %v614_v2, 5  ;;  %v624_v15 = vshrl.u32 %v4556_v12, 16  ;;  %v630_v16 = vshll.u32 %v4562_v17, 16  ;;  %v4663_v12 = vld [vmem:[%s4539_s22 + $0x1c] sm:$0xf] }
  0x2b   : > { %v647_v28 = vsel %vm4628_vm5, %v642_v5, %v646_v57  ;;  %v652_v18 = vrot.slane %v651_v6, 4  ;;  %v1247_v20 = vshrl.u32 %v3915_v4, 16  ;;  %v1250_v22 = vshll.u32 %v3915_v4, 16  ;;  %v4695_v57 = vld [vmem:[%s4539_s22 + $0x80] sm:$0x1] }
  0x2c   : > { %2273 = vrot.lane.b32.xlu0 %v4060_v11, %s4482_s25  ;;  %v617_v24 = vor.u32 %v616_v14, %v613_v8  ;;  %v626_v25 = vrot.slane %v624_v15, 4  ;;  %v632_v26 = vrot.slane %v630_v16, 5  ;;  %v1260_v29 = vshrl.u32 %v4651_v10, 16  ;;  %v3950_v8 = vld [vmem:[%s4539_s22 + $0x6c] sm:$0xe] }
  0x2d   : > { %v657_v17 = vsel %vm4628_vm5, %v652_v18, %v656_v0  ;;  %v1249_v32 = vrot.slane %v1247_v20, 4  ;;  %v1252_v33 = vrot.slane %v1250_v22, 5  ;;  %v4101_v34 = vcombine.low %v3915_v4, %v4651_v10  ;;  %v4704_v0 = vld [vmem:[%s4539_s22 + $0x20] sm:$0x1] }
  0x2e   : > { %v4069_v36 = vcombine.low %v647_v28, %v657_v17  ;;  %v618_v37 = vrot.slane %v617_v24, 4  ;;  %v627_v41 = vor.u32 %v626_v25, %v622_v38  ;;  %v1055_v42 = vshrl.u32 %v4658_v23, 16  ;;  %v3942_v28 = vld [vmem:[%s4539_s22 + $0xc] sm:$0xe]  ;;  %v3951_v17 = vld [vmem:[%s4539_s22 + $0x78] sm:$0xe] }
  0x2f   : > { %v1058_v43 = vshll.u32 %v4658_v23, 16  ;;  %v1068_v44 = vshrl.u32 %v4663_v12, 16  ;;  %v4093_v46 = vcombine.low %v4658_v23, %v4663_v12  ;;  %v1234_v47 = vrot.slane %v1232_v3, 5 }
  0x30   : > { %2291 = vrot.lane.b32.xlu1 %v4069_v36, %s4482_s25  ;;  %v623_v49 = vsel %vm4628_vm5, %v618_v37, %v622_v38  ;;  %v628_v50 = vrot.slane %v627_v41, 4  ;;  %v1057_v51 = vrot.slane %v1055_v42, 4  ;;  %v1242_v52 = vshll.u32 %v4669_v35, 16 }
  0x31   : > { %v1060_v27 = vrot.slane %v1058_v43, 5  ;;  %v1235_v31 = vsel %vm4628_vm5, %v4594_v40, %v1234_v47  ;;  %v1239_v53 = vor.u32 %v4558_v13, %v1234_v47  ;;  %v1042_v3 = vrot.slane %v1040_v9, 5  ;;  %v3943_v47 = vld [vmem:[%s4539_s22 + $0x18] sm:$0xe] }
  0x32   : > { %v633_v54 = vsel %vm4628_vm5, %v628_v50, %v632_v26  ;;  %v1244_v55 = vrot.slane %v1242_v52, 5  ;;  %v1050_v56 = vshll.u32 %v4679_v48, 16  ;;  %v1253_v58 = vor.u32 %v1252_v33, %v1249_v32 }
  0x33   : > { %v4068_v59 = vcombine.low %v623_v49, %v633_v54  ;;  %v1240_v60 = vrot.slane %v1239_v53, 4  ;;  %v1043_v40 = vsel %vm4628_vm5, %v4600_v45, %v1042_v3  ;;  %v1047_v13 = vor.u32 %v4564_v19, %v1042_v3  ;;  %v4746_v53 = vld [vmem:[%s4539_s22 + $0x7c] sm:$0xf] }
  0x34   : > { %2467 = vrot.lane.b32.xlu1 %v4101_v34, %s4480_s23  ;;  %v1052_v9 = vrot.slane %v1050_v56, 5  ;;  %v1254_v61 = vrot.slane %v1253_v58, 4  ;;  %v1256_v62 = vshll.u32 %v4651_v10, 16  ;;  %v1262_v63 = vrot.slane %v1260_v29, 4  ;;  %v4753_v58 = vld [vmem:[%s4539_s22 + $0x18] sm:$0xf] }
  0x35   : > { %2289 = vrot.lane.b32.xlu0 %v4068_v59, %s4482_s25  ;;  %v1245_v2 = vsel %vm4628_vm5, %v1240_v60, %v1244_v55  ;;  %v1048_v38 = vrot.slane %v1047_v13, 4  ;;  %v1266_v45 = vshll.u32 %v4695_v57, 16  ;;  %v1061_v19 = vor.u32 %v1060_v27, %v1057_v51  ;;  %v4739_v51 = vld [vmem:[%s4539_s22 + $0x78] sm:$0xf] }
  0x36   : > { %v4116_v4 = vcombine.low %v1235_v31, %v1245_v2  ;;  %v1258_v39 = vrot.slane %v1256_v62, 5  ;;  %v1064_v5 = vshll.u32 %v4663_v12, 16  ;;  %v1070_v6 = vrot.slane %v1068_v44, 4 }
  0x37   : > { %v1053_v11 = vsel %vm4628_vm5, %v1048_v38, %v1052_v9  ;;  %v1268_v14 = vrot.slane %v1266_v45, 5  ;;  %v1062_v15 = vrot.slane %v1061_v19, 4  ;;  %v1074_v16 = vshll.u32 %v4704_v0, 16  ;;  %v4759_v9 = vld [vmem:[%s4539_s22 + $0x1c] sm:$0xf] }
  0x38   : > { %2545 = vrot.lane.b32.xlu1 %v4116_v4, %s4483_s26  ;;  %v4108_v18 = vcombine.low %v1043_v40, %v1053_v11  ;;  %v1259_v20 = vsel %vm4628_vm5, %v1254_v61, %v1258_v39  ;;  %v1263_v22 = vor.u32 %v1262_v63, %v1258_v39  ;;  %v1066_v23 = vrot.slane %v1064_v5, 5  ;;  %v4774_v19 = vld [vmem:[%s4539_s22 + $0x88] sm:$0xf] }
  0x39   : > { %2451 = vrot.lane.b32.xlu0 %v4093_v46, %s4480_s23  ;;  %v1076_v24 = vrot.slane %v1074_v16, 5  ;;  %v3965_v25 = vrot.slane %v3950_v8, 9  ;;  %v1536_v26 = vrot.slane %v4543_v1, 5  ;;  %v1539_v29 = vrot.slane %v4669_v35, 5  ;;  %v4781_v8 = vld [vmem:[%s4539_s22 + $0x24] sm:$0xf] }
  0x3a   : > { %v1264_v32 = vrot.slane %v1263_v22, 4  ;;  %v1067_v33 = vsel %vm4628_vm5, %v1062_v15, %v1066_v23  ;;  %v1071_v34 = vor.u32 %v1070_v6, %v1066_v23  ;;  %v3957_v36 = vrot.slane %v3942_v28, 9  ;;  %v4790_v28 = vld [vmem:[%s4539_s22 + $0x28] sm:$0xf] }
  0x3b   : > { %v1537_v37 = vsel %vm4570_vm2, %v3965_v25, %v1536_v26  ;;  %v1538_v41 = vrot.slane %v1536_v26, 4  ;;  %v1480_v42 = vrot.slane %v4550_v7, 5  ;;  %v1483_v43 = vrot.slane %v4679_v48, 5 }
  0x3c   : > { %v1269_v1 = vsel %vm4628_vm5, %v1264_v32, %v1268_v14  ;;  %v1072_v35 = vrot.slane %v1071_v34, 4  ;;  %v3966_v44 = vrot.slane %v3951_v17, 9  ;;  %v1543_v46 = vrot.slane %v4651_v10, 5 }
  0x3d   : > { %2529 = vrot.lane.b32.xlu0 %v4108_v18, %s4483_s26  ;;  %v4117_v49 = vcombine.low %v1259_v20, %v1269_v1  ;;  %v1540_v50 = vsel %vm4570_vm2, %v1538_v41, %v1539_v29  ;;  %v1481_v7 = vsel %vm4570_vm2, %v3957_v36, %v1480_v42  ;;  %v1482_v48 = vrot.slane %v1480_v42, 4 }
  0x3e   : > { %v1077_v52 = vsel %vm4628_vm5, %v1072_v35, %v1076_v24  ;;  %v4132_v27 = vcombine.low %v1537_v37, %v1540_v50  ;;  %v1544_v10 = vsel %vm4570_vm2, %v3966_v44, %v1543_v46  ;;  %v1545_v31 = vrot.slane %v1543_v46, 4  ;;  %v4795_v24 = vld [vmem:[%s4539_s22 + $0x80] sm:$0x1] }
  0x3f   : > { %2547 = vrot.lane.b32.xlu1 %v4117_v49, %s4483_s26  ;;  %v4109_v3 = vcombine.low %v1067_v33, %v1077_v52  ;;  %v1484_v54 = vsel %vm4570_vm2, %v1482_v48, %v1483_v43  ;;  %v1546_v55 = vrot.slane %v4695_v57, 5  ;;  %v3958_v56 = vrot.slane %v3943_v47, 9  ;;  %v4806_v37 = vld [vmem:[%s4539_s22 + $0x20] sm:$0x1] }
  0x40   : > { %v4124_v59 = vcombine.low %v1481_v7, %v1484_v54  ;;  %v1487_v60 = vrot.slane %v4663_v12, 5  ;;  %v1490_v40 = vrot.slane %v4704_v0, 5  ;;  %v1829_v13 = vshrl.u32 %v4739_v51, 16  ;;  %v4769_v12 = vld [vmem:[%s4539_s22 + $0x84] sm:$0xf] }
  0x41   : > { %2531 = vrot.lane.b32.xlu0 %v4109_v3, %s4483_s26  ;;  %v1547_v61 = vsel %vm4570_vm2, %v1545_v31, %v1546_v55  ;;  %v1832_v57 = vshll.u32 %v4739_v51, 16  ;;  %v1842_v62 = vshrl.u32 %v4746_v53, 16  ;;  %v4148_v63 = vcombine.low %v4739_v51, %v4746_v53 }
  0x42   : > { %v4133_v0 = vcombine.low %v1544_v10, %v1547_v61  ;;  %v1488_v2 = vsel %vm4570_vm2, %v3958_v56, %v1487_v60  ;;  %v1489_v38 = vrot.slane %v1487_v60, 4  ;;  %v1831_v45 = vrot.slane %v1829_v13, 4 }
  0x43   : > { %2625 = vrot.lane.b32.xlu1 %v4132_v27, %s4484_s27  ;;  %v1834_v4 = vrot.slane %v1832_v57, 5  ;;  %v1637_v39 = vshrl.u32 %v4753_v58, 16  ;;  %v1640_v5 = vshll.u32 %v4753_v58, 16  ;;  %v1650_v6 = vshrl.u32 %v4759_v9, 16  ;;  %v4815_v27 = vld [vmem:[%s4539_s22 + $0x8c] sm:$0x1] }
  0x44   : > { %v1491_v11 = vsel %vm4570_vm2, %v1489_v38, %v1490_v40  ;;  %v4140_v14 = vcombine.low %v4753_v58, %v4759_v9  ;;  %v1853_v15 = vshrl.u32 %v4769_v12, 16  ;;  %v1856_v16 = vshll.u32 %v4769_v12, 16  ;;  %v4825_v57 = vld [vmem:[%s4539_s22 + $0x2c] sm:$0x1] }
  0x45   : > { %2609 = vrot.lane.b32.xlu0 %v4124_v59, %s4484_s27  ;;  %v4125_v18 = vcombine.low %v1488_v2, %v1491_v11  ;;  %v1639_v20 = vrot.slane %v1637_v39, 4  ;;  %v1642_v22 = vrot.slane %v1640_v5, 5  ;;  %v1866_v23 = vshrl.u32 %v4774_v19, 16 }
  0x46   : > { %v1855_v25 = vrot.slane %v1853_v15, 4  ;;  %v1858_v26 = vrot.slane %v1856_v16, 5  ;;  %v4149_v29 = vcombine.low %v4769_v12, %v4774_v19  ;;  %v1661_v17 = vshrl.u32 %v4781_v8, 16  ;;  %v4015_v16 = vld [vmem:[%s4539_s22 + $0x18] sm:$0xe] }
  0x47   : > { %2627 = vrot.lane.b32.xlu1 %v4133_v0, %s4484_s27  ;;  %v1664_v32 = vshll.u32 %v4781_v8, 16  ;;  %v1674_v33 = vshrl.u32 %v4790_v28, 16  ;;  %v4141_v34 = vcombine.low %v4781_v8, %v4790_v28  ;;  %v1835_v36 = vor.u32 %v1834_v4, %v1831_v45  ;;  %v4023_v45 = vld [vmem:[%s4539_s22 + $0x78] sm:$0xe] }
  0x48   : > { %v1663_v41 = vrot.slane %v1661_v17, 4  ;;  %v1838_v42 = vshll.u32 %v4746_v53, 16  ;;  %v1844_v43 = vrot.slane %v1842_v62, 4  ;;  %v1848_v1 = vshll.u32 %v4795_v24, 16 }
  0x49   : > { %2611 = vrot.lane.b32.xlu0 %v4125_v18, %s4484_s27  ;;  %v1666_v35 = vrot.slane %v1664_v32, 5  ;;  %v1836_v44 = vrot.slane %v1835_v36, 4  ;;  %v1643_v46 = vor.u32 %v1642_v22, %v1639_v20  ;;  %v1646_v47 = vshll.u32 %v4759_v9, 16 }
  0x4a   : > { %v1840_v49 = vrot.slane %v1838_v42, 5  ;;  %v1850_v50 = vrot.slane %v1848_v1, 5  ;;  %v1652_v7 = vrot.slane %v1650_v6, 4  ;;  %v1656_v48 = vshll.u32 %v4806_v37, 16  ;;  %v4849_v42 = vld [vmem:[%s4539_s22 + $0x7c] sm:$0xf] }
  0x4b   : > { %2717 = vrot.lane.b32.xlu1 %v4148_v63, %s4485_s28  ;;  %v1644_v51 = vrot.slane %v1643_v46, 4  ;;  %v1648_v52 = vrot.slane %v1646_v47, 5  ;;  %v1859_v10 = vor.u32 %v1858_v26, %v1855_v25  ;;  %v1862_v31 = vshll.u32 %v4774_v19, 16  ;;  %v387_v25 = vld [vmem:[%s4539_s22 + $0x78] sm:$0xf] }
  0x4c   : > { %v1841_v3 = vsel %vm4628_vm5, %v1836_v44, %v1840_v49  ;;  %v1845_v54 = vor.u32 %v1844_v43, %v1840_v49  ;;  %v1658_v55 = vrot.slane %v1656_v48, 5  ;;  %v1868_v56 = vrot.slane %v1866_v23, 4  ;;  %v4860_v46 = vld [vmem:[%s4539_s22 + $0x80] sm:$0x1]  ;;  %v371_v49 = vld [vmem:[%s4539_s22 + $0x18] sm:$0xf] }
  0x4d   : > { %2701 = vrot.lane.b32.xlu0 %v4140_v14, %s4485_s28  ;;  %v1649_v58 = vsel %vm4628_vm5, %v1644_v51, %v1648_v52  ;;  %v1653_v59 = vor.u32 %v1652_v7, %v1648_v52  ;;  %v1860_v60 = vrot.slane %v1859_v10, 4  ;;  %v1864_v40 = vrot.slane %v1862_v31, 5  ;;  %v4868_v51 = vld [vmem:[%s4539_s22 + $0x1c] sm:$0xf] }
  0x4e   : > { %v1846_v13 = vrot.slane %v1845_v54, 4  ;;  %v1872_v61 = vshll.u32 %v4815_v27, 16  ;;  %v1667_v62 = vor.u32 %v1666_v35, %v1663_v41  ;;  %v1670_v63 = vshll.u32 %v4790_v28, 16  ;;  %v4874_v54 = vld [vmem:[%s4539_s22 + $0x20] sm:$0x1] }
  0x4f   : > { %2719 = vrot.lane.b32.xlu1 %v4149_v29, %s4485_s28  ;;  %v1654_v12 = vrot.slane %v1653_v59, 4  ;;  %v1865_v0 = vsel %vm4628_vm5, %v1860_v60, %v1864_v40  ;;  %v1869_v2 = vor.u32 %v1868_v56, %v1864_v40  ;;  %v1676_v38 = vrot.slane %v1674_v33, 4 }
  0x50   : > { %v1851_v4 = vsel %vm4628_vm5, %v1846_v13, %v1850_v50  ;;  %v1874_v39 = vrot.slane %v1872_v61, 5  ;;  %v1668_v5 = vrot.slane %v1667_v62, 4  ;;  %v1672_v6 = vrot.slane %v1670_v63, 5  ;;  %v4024_v62 = vld [vmem:[%s4539_s22 + $0x84] sm:$0xe] }
  0x51   : > { %2703 = vrot.lane.b32.xlu0 %v4141_v34, %s4485_s28  ;;  %v4163_v8 = vcombine.low %v1841_v3, %v1851_v4  ;;  %v1659_v11 = vsel %vm4628_vm5, %v1654_v12, %v1658_v55  ;;  %v1870_v14 = vrot.slane %v1869_v2, 4  ;;  %v1680_v15 = vshll.u32 %v4825_v57, 16 }
  0x52   : > { %v4155_v18 = vcombine.low %v1649_v58, %v1659_v11  ;;  %v1673_v20 = vsel %vm4628_vm5, %v1668_v5, %v1672_v6  ;;  %v1677_v22 = vor.u32 %v1676_v38, %v1672_v6  ;;  %v4037_v23 = vrot.slane %v4023_v45, 9  ;;  %v4016_v5 = vld [vmem:[%s4539_s22 + $0x24] sm:$0xe] }
  0x53   : > { %2794 = vrot.lane.b32.xlu1 %v4163_v8, %s4486_s29  ;;  %v1875_v26 = vsel %vm4628_vm5, %v1870_v14, %v1874_v39  ;;  %v1682_v29 = vrot.slane %v1680_v15, 5  ;;  %v2114_v17 = vrot.slane %v4746_v53, 5  ;;  %v2117_v32 = vrot.slane %v4795_v24, 5 }
  0x54   : > { %v4164_v33 = vcombine.low %v1865_v0, %v1875_v26  ;;  %v1678_v34 = vrot.slane %v1677_v22, 4  ;;  %v4029_v36 = vrot.slane %v4015_v16, 9  ;;  %v2058_v41 = vrot.slane %v4759_v9, 5  ;;  %v389_v22 = vld [vmem:[%s4539_s22 + $0x84] sm:$0xf] }
  0x55   : > { %2778 = vrot.lane.b32.xlu0 %v4155_v18, %s4486_s29  ;;  %v2115_v43 = vsel %vm4570_vm2, %v4037_v23, %v2114_v17  ;;  %v2116_v1 = vrot.slane %v2114_v17, 4  ;;  %v2061_v35 = vrot.slane %v4806_v37, 5  ;;  %v659_v53 = vshrl.u32 %v387_v25, 16 }
  0x56   : > { %v1683_v24 = vsel %vm4628_vm5, %v1678_v34, %v1682_v29  ;;  %v2059_v44 = vsel %vm4570_vm2, %v4029_v36, %v2058_v41  ;;  %v2060_v9 = vrot.slane %v2058_v41, 4  ;;  %v662_v47 = vshll.u32 %v387_v25, 16  ;;  %v4897_v34 = vld [vmem:[%s4539_s22 + $0x88] sm:$0xf] }
  0x57   : > { %2796 = vrot.lane.b32.xlu1 %v4164_v33, %s4486_s29  ;;  %v4156_v50 = vcombine.low %v1673_v20, %v1683_v24  ;;  %v2118_v7 = vsel %vm4570_vm2, %v2116_v1, %v2117_v32  ;;  %v661_v37 = vrot.slane %v659_v53, 4  ;;  %v668_v48 = vshll.u32 %v4849_v42, 16  ;;  %v373_v24 = vld [vmem:[%s4539_s22 + $0x24] sm:$0xf] }
  0x58   : > { %v4178_v52 = vcombine.low %v2115_v43, %v2118_v7  ;;  %v2062_v10 = vsel %vm4570_vm2, %v2060_v9, %v2061_v35  ;;  %v664_v31 = vrot.slane %v662_v47, 5  ;;  %v672_v3 = vshrl.u32 %v4849_v42, 16  ;;  %v4902_v43 = vld [vmem:[%s4539_s22 + $0x8c] sm:$0x1] }
  0x59   : > { %2780 = vrot.lane.b32.xlu0 %v4156_v50, %s4486_s29  ;;  %v4170_v55 = vcombine.low %v2059_v44, %v2062_v10  ;;  %v670_v56 = vrot.slane %v668_v48, 5  ;;  %v678_v58 = vshll.u32 %v4860_v46, 16  ;;  %v467_v59 = vshrl.u32 %v371_v49, 16  ;;  %v4914_v50 = vld [vmem:[%s4539_s22 + $0x28] sm:$0xf] }
  0x5a   : > { %v665_v60 = vor.u32 %v664_v31, %v661_v37  ;;  %v674_v40 = vrot.slane %v672_v3, 4  ;;  %v470_v13 = vshll.u32 %v371_v49, 16  ;;  %v476_v61 = vshll.u32 %v4868_v51, 16  ;;  %v4921_v10 = vld [vmem:[%s4539_s22 + $0x2c] sm:$0x1] }
  0x5b   : > { %2871 = vrot.lane.b32.xlu1 %v4178_v52, %s4487_s30  ;;  %v680_v63 = vrot.slane %v678_v58, 5  ;;  %v469_v12 = vrot.slane %v467_v59, 4  ;;  %v480_v0 = vshrl.u32 %v4868_v51, 16  ;;  %v486_v2 = vshll.u32 %v4874_v54, 16  ;;  %v812_v58 = vld [vmem:[%s4539_s22 + $0x78] sm:$0xe] }
  0x5c   : > { %v666_v38 = vrot.slane %v665_v60, 4  ;;  %v675_v45 = vor.u32 %v674_v40, %v670_v56  ;;  %v472_v4 = vrot.slane %v470_v13, 5  ;;  %v478_v39 = vrot.slane %v476_v61, 5 }
  0x5d   : > { %2855 = vrot.lane.b32.xlu0 %v4170_v55, %s4487_s30  ;;  %v482_v6 = vrot.slane %v480_v0, 4  ;;  %v488_v8 = vrot.slane %v486_v2, 5  ;;  %v4038_v11 = vrot.slane %v4024_v62, 9  ;;  %v2121_v14 = vrot.slane %v4774_v19, 5  ;;  %v804_v0 = vld [vmem:[%s4539_s22 + $0x18] sm:$0xe] }
  0x5e   : > { %v671_v15 = vsel %vm4628_vm5, %v666_v38, %v670_v56  ;;  %v676_v16 = vrot.slane %v675_v45, 4  ;;  %v473_v18 = vor.u32 %v472_v4, %v469_v12  ;;  %v2124_v20 = vrot.slane %v4815_v27, 5 }
  0x5f   : > { %v483_v23 = vor.u32 %v482_v6, %v478_v39  ;;  %v2122_v25 = vsel %vm4570_vm2, %v4038_v11, %v2121_v14  ;;  %v2123_v26 = vrot.slane %v2121_v14, 4  ;;  %v4030_v29 = vrot.slane %v4016_v5, 9 }
  0x60   : > { %v681_v17 = vsel %vm4628_vm5, %v676_v16, %v680_v63  ;;  %v474_v19 = vrot.slane %v473_v18, 4  ;;  %v2065_v32 = vrot.slane %v4790_v28, 5  ;;  %v2068_v33 = vrot.slane %v4825_v57, 5  ;;  %v813_v18 = vld [vmem:[%s4539_s22 + $0x84] sm:$0xe] }
  0x61   : > { %v4070_v27 = vcombine.low %v671_v15, %v681_v17  ;;  %v484_v36 = vrot.slane %v483_v23, 4  ;;  %v2125_v41 = vsel %vm4570_vm2, %v2123_v26, %v2124_v20  ;;  %v683_v1 = vshrl.u32 %v389_v22, 16 }
  0x62   : > { %v479_v35 = vsel %vm4628_vm5, %v474_v19, %v478_v39  ;;  %v4179_v53 = vcombine.low %v2122_v25, %v2125_v41  ;;  %v2066_v28 = vsel %vm4570_vm2, %v4030_v29, %v2065_v32  ;;  %v2067_v57 = vrot.slane %v2065_v32, 4 }
  0x63   : > { %2293 = vrot.lane.b32.xlu1 %v4070_v27, %s4482_s25  ;;  %v489_v44 = vsel %vm4628_vm5, %v484_v36, %v488_v8  ;;  %v685_v9 = vrot.slane %v683_v1, 4  ;;  %v686_v47 = vshll.u32 %v389_v22, 16  ;;  %v692_v49 = vshll.u32 %v4897_v34, 16 }
  0x64   : > { %v4062_v7 = vcombine.low %v479_v35, %v489_v44  ;;  %v2069_v37 = vsel %vm4570_vm2, %v2067_v57, %v2068_v33  ;;  %v696_v48 = vshrl.u32 %v4897_v34, 16  ;;  %v702_v52 = vshll.u32 %v4902_v43, 16 }
  0x65   : > { %v4171_v31 = vcombine.low %v2066_v28, %v2069_v37  ;;  %v688_v3 = vrot.slane %v686_v47, 5  ;;  %v694_v55 = vrot.slane %v692_v49, 5  ;;  %v491_v56 = vshrl.u32 %v373_v24, 16 }
  0x66   : > { %2277 = vrot.lane.b32.xlu0 %v4062_v7, %s4482_s25  ;;  %v698_v59 = vrot.slane %v696_v48, 4  ;;  %v704_v60 = vrot.slane %v702_v52, 5  ;;  %v494_v40 = vshll.u32 %v373_v24, 16  ;;  %v500_v13 = vshll.u32 %v4914_v50, 16  ;;  %v4958_v24 = vld [vmem:[%s4539_s22 + $0x88] sm:$0xf] }
  0x67   : > { %2873 = vrot.lane.b32.xlu1 %v4179_v53, %s4487_s30  ;;  %v689_v61 = vor.u32 %v688_v3, %v685_v9  ;;  %v493_v62 = vrot.slane %v491_v56, 4  ;;  %v504_v63 = vshrl.u32 %v4914_v50, 16  ;;  %v510_v12 = vshll.u32 %v4921_v10, 16  ;;  %v4965_v7 = vld [vmem:[%s4539_s22 + $0x24] sm:$0xf] }
  0x68   : > { %v699_v2 = vor.u32 %v698_v59, %v694_v55  ;;  %v496_v38 = vrot.slane %v494_v40, 5  ;;  %v502_v45 = vrot.slane %v500_v13, 5  ;;  %v3891_v4 = vrot.slane %v812_v58, 9  ;;  %v4976_v3 = vld [vmem:[%s4539_s22 + $0x28] sm:$0xf] }
  0x69   : > { %v690_v39 = vrot.slane %v689_v61, 4  ;;  %v506_v5 = vrot.slane %v504_v63, 4  ;;  %v512_v6 = vrot.slane %v510_v12, 5  ;;  %v941_v8 = vrot.slane %v4849_v42, 5  ;;  %v4986_v40 = vld [vmem:[%s4539_s22 + $0x94] sm:$0xf] }
  0x6a   : > { %2857 = vrot.lane.b32.xlu0 %v4171_v31, %s4487_s30  ;;  %v700_v11 = vrot.slane %v699_v2, 4  ;;  %v497_v14 = vor.u32 %v496_v38, %v493_v62  ;;  %v944_v15 = vrot.slane %v4860_v46, 5  ;;  %v3883_v16 = vrot.slane %v804_v0, 9  ;;  %v805_v46 = vld [vmem:[%s4539_s22 + $0x24] sm:$0xe] }
  0x6b   : > { %v695_v20 = vsel %vm4628_vm5, %v690_v39, %v694_v55  ;;  %v507_v22 = vor.u32 %v506_v5, %v502_v45  ;;  %v942_v23 = vsel %vm4570_vm2, %v3891_v4, %v941_v8  ;;  %v943_v25 = vrot.slane %v941_v8, 4  ;;  %v4992_v12 = vld [vmem:[%s4539_s22 + $0x30] sm:$0xf]  ;;  %v4995_v0 = vld [vmem:[%s4539_s22 + $0x34] sm:$0xf] }
  0x6c   : > { %v705_v42 = vsel %vm4628_vm5, %v700_v11, %v704_v60  ;;  %v498_v26 = vrot.slane %v497_v14, 4  ;;  %v885_v29 = vrot.slane %v4868_v51, 5  ;;  %v888_v17 = vrot.slane %v4874_v54, 5  ;;  %v4950_v51 = vld [vmem:[%s4539_s22 + $0x84] sm:$0xf] }
  0x6d   : > { %v4071_v19 = vcombine.low %v695_v20, %v705_v42  ;;  %v508_v32 = vrot.slane %v507_v22, 4  ;;  %v945_v33 = vsel %vm4570_vm2, %v943_v25, %v944_v15  ;;  %v3892_v27 = vrot.slane %v813_v18, 9  ;;  %v3919_v60 = vld [vmem:[%s4539_s22 + $0x90] sm:$0xf]  ;;  %v5008_v18 = vld [vmem:[%s4539_s22 + $0x8c] sm:$0x1] }
  0x6e   : > { %v503_v36 = vsel %vm4628_vm5, %v498_v26, %v502_v45  ;;  %v4086_v41 = vcombine.low %v942_v23, %v945_v33  ;;  %v886_v1 = vsel %vm4570_vm2, %v3883_v16, %v885_v29  ;;  %v887_v35 = vrot.slane %v885_v29, 4  ;;  %v5013_v42 = vld [vmem:[%s4539_s22 + $0x2c] sm:$0x1] }
  0x6f   : > { %2295 = vrot.lane.b32.xlu1 %v4071_v19, %s4482_s25  ;;  %v513_v54 = vsel %vm4628_vm5, %v508_v32, %v512_v6  ;;  %v948_v53 = vrot.slane %v4897_v34, 5  ;;  %v951_v28 = vrot.slane %v4902_v43, 5  ;;  %v3884_v57 = vrot.slane %v805_v46, 9 }
  0x70   : > { %v4063_v44 = vcombine.low %v503_v36, %v513_v54  ;;  %v889_v9 = vsel %vm4570_vm2, %v887_v35, %v888_v17  ;;  %v892_v47 = vrot.slane %v4914_v50, 5  ;;  %v895_v49 = vrot.slane %v4921_v10, 5 }
  0x71   : > { %v4078_v37 = vcombine.low %v886_v1, %v889_v9  ;;  %v949_v34 = vsel %vm4570_vm2, %v3892_v27, %v948_v53  ;;  %v950_v43 = vrot.slane %v948_v53, 4  ;;  %v1271_v48 = vshrl.u32 %v4950_v51, 16 }
  0x72   : > { %2279 = vrot.lane.b32.xlu0 %v4063_v44, %s4482_s25  ;;  %v893_v52 = vsel %vm4570_vm2, %v3884_v57, %v892_v47  ;;  %v894_v50 = vrot.slane %v892_v47, 4  ;;  %v1274_v10 = vshll.u32 %v4950_v51, 16  ;;  %v1284_v31 = vshrl.u32 %v4958_v24, 16 }
  0x73   : > { %2373 = vrot.lane.b32.xlu1 %v4086_v41, %s4481_s24  ;;  %v952_v55 = vsel %vm4570_vm2, %v950_v43, %v951_v28  ;;  %v1273_v56 = vrot.slane %v1271_v48, 4  ;;  %v4102_v58 = vcombine.low %v4950_v51, %v4958_v24  ;;  %v1079_v59 = vshrl.u32 %v4965_v7, 16  ;;  %v5022_v28 = vld [vmem:[%s4539_s22 + $0x98] sm:$0x1] }
  0x74   : > { %v4087_v13 = vcombine.low %v949_v34, %v952_v55  ;;  %v896_v61 = vsel %vm4570_vm2, %v894_v50, %v895_v49  ;;  %v1276_v62 = vrot.slane %v1274_v10, 5  ;;  %v1082_v63 = vshll.u32 %v4965_v7, 16  ;;  %v5033_v50 = vld [vmem:[%s4539_s22 + $0x38] sm:$0x1] }
  0x75   : > { %v4079_v2 = vcombine.low %v893_v52, %v896_v61  ;;  %v1081_v38 = vrot.slane %v1079_v59, 4  ;;  %v1092_v45 = vshrl.u32 %v4976_v3, 16  ;;  %v4094_v4 = vcombine.low %v4965_v7, %v4976_v3 }
  0x76   : > { %2357 = vrot.lane.b32.xlu0 %v4078_v37, %s4481_s24  ;;  %v1084_v39 = vrot.slane %v1082_v63, 5  ;;  %v1295_v5 = vshrl.u32 %v3919_v60, 16  ;;  %v1298_v6 = vshll.u32 %v3919_v60, 16  ;;  %v1308_v8 = vshrl.u32 %v4986_v40, 16 }
  0x77   : > { %2375 = vrot.lane.b32.xlu1 %v4087_v13, %s4481_s24  ;;  %v4103_v11 = vcombine.low %v3919_v60, %v4986_v40  ;;  %v1103_v14 = vshrl.u32 %v4992_v12, 16  ;;  %v1106_v15 = vshll.u32 %v4992_v12, 16  ;;  %v1116_v16 = vshrl.u32 %v4995_v0, 16  ;;  %v3952_v60 = vld [vmem:[%s4539_s22 + $0x84] sm:$0xe] }
  0x78   : > { %v1297_v20 = vrot.slane %v1295_v5, 4  ;;  %v1300_v22 = vrot.slane %v1298_v6, 5  ;;  %v4095_v23 = vcombine.low %v4992_v12, %v4995_v0  ;;  %v1277_v25 = vor.u32 %v1276_v62, %v1273_v56 }
  0x79   : > { %v1105_v26 = vrot.slane %v1103_v14, 4  ;;  %v1108_v29 = vrot.slane %v1106_v15, 5  ;;  %v1280_v17 = vshll.u32 %v4958_v24, 16  ;;  %v1286_v46 = vrot.slane %v1284_v31, 4 }
  0x7a   : > { %2359 = vrot.lane.b32.xlu0 %v4079_v2, %s4481_s24  ;;  %v1278_v19 = vrot.slane %v1277_v25, 4  ;;  %v1290_v32 = vshll.u32 %v5008_v18, 16  ;;  %v1085_v33 = vor.u32 %v1084_v39, %v1081_v38  ;;  %v1088_v27 = vshll.u32 %v4976_v3, 16 }
  0x7b   : > { %2469 = vrot.lane.b32.xlu1 %v4102_v58, %s4480_s23  ;;  %v1282_v36 = vrot.slane %v1280_v17, 5  ;;  %v1094_v41 = vrot.slane %v1092_v45, 4  ;;  %v1098_v1 = vshll.u32 %v5013_v42, 16  ;;  %v1301_v35 = vor.u32 %v1300_v22, %v1297_v20 }
  0x7c   : > { %v1292_v51 = vrot.slane %v1290_v32, 5  ;;  %v1086_v54 = vrot.slane %v1085_v33, 4  ;;  %v1090_v53 = vrot.slane %v1088_v27, 5  ;;  %v1304_v57 = vshll.u32 %v4986_v40, 16  ;;  %v5066_v27 = vld [vmem:[%s4539_s22 + $0x90] sm:$0xf] }
  0x7d   : > { %v1283_v44 = vsel %vm4628_vm5, %v1278_v19, %v1282_v36  ;;  %v1287_v9 = vor.u32 %v1286_v46, %v1282_v36  ;;  %v1100_v47 = vrot.slane %v1098_v1, 5  ;;  %v1302_v49 = vrot.slane %v1301_v35, 4  ;;  %v5073_v35 = vld [vmem:[%s4539_s22 + $0x94] sm:$0xf] }
  0x7e   : > { %2453 = vrot.lane.b32.xlu0 %v4094_v4, %s4480_s23  ;;  %v1091_v7 = vsel %vm4628_vm5, %v1086_v54, %v1090_v53  ;;  %v1095_v37 = vor.u32 %v1094_v41, %v1090_v53  ;;  %v1306_v34 = vrot.slane %v1304_v57, 5  ;;  %v1310_v43 = vrot.slane %v1308_v8, 4  ;;  %v3944_v4 = vld [vmem:[%s4539_s22 + $0x24] sm:$0xe]  ;;  %v5080_v57 = vld [vmem:[%s4539_s22 + $0x30] sm:$0xf] }
  0x7f   : > { %2471 = vrot.lane.b32.xlu1 %v4103_v11, %s4480_s23  ;;  %v1288_v48 = vrot.slane %v1287_v9, 4  ;;  %v1314_v52 = vshll.u32 %v5022_v28, 16  ;;  %v1109_v10 = vor.u32 %v1108_v29, %v1105_v26  ;;  %v1112_v31 = vshll.u32 %v4995_v0, 16  ;;  %v3953_v11 = vld [vmem:[%s4539_s22 + $0x90] sm:$0xe] }
  0x80   : > { %v1096_v55 = vrot.slane %v1095_v37, 4  ;;  %v1307_v56 = vsel %vm4628_vm5, %v1302_v49, %v1306_v34  ;;  %v1311_v58 = vor.u32 %v1310_v43, %v1306_v34  ;;  %v1118_v59 = vrot.slane %v1116_v16, 4  ;;  %v3945_v29 = vld [vmem:[%s4539_s22 + $0x30] sm:$0xe]  ;;  %v5087_v49 = vld [vmem:[%s4539_s22 + $0x34] sm:$0xf] }
  0x81   : > { %v1293_v13 = vsel %vm4628_vm5, %v1288_v48, %v1292_v51  ;;  %v1316_v61 = vrot.slane %v1314_v52, 5  ;;  %v1110_v62 = vrot.slane %v1109_v10, 4  ;;  %v1114_v63 = vrot.slane %v1112_v31, 5 }
  0x82   : > { %2455 = vrot.lane.b32.xlu0 %v4095_v23, %s4480_s23  ;;  %v4118_v12 = vcombine.low %v1283_v44, %v1293_v13  ;;  %v1101_v2 = vsel %vm4628_vm5, %v1096_v55, %v1100_v47  ;;  %v1312_v38 = vrot.slane %v1311_v58, 4  ;;  %v1122_v45 = vshll.u32 %v5033_v50, 16  ;;  %v5104_v55 = vld [vmem:[%s4539_s22 + $0xa0] sm:$0xf]  ;;  %v5110_v13 = vld [vmem:[%s4539_s22 + $0x3c] sm:$0xf] }
  0x83   : > { %v4110_v39 = vcombine.low %v1091_v7, %v1101_v2  ;;  %v1115_v5 = vsel %vm4628_vm5, %v1110_v62, %v1114_v63  ;;  %v1119_v6 = vor.u32 %v1118_v59, %v1114_v63  ;;  %v3967_v8 = vrot.slane %v3952_v60, 9  ;;  %v5120_v2 = vld [vmem:[%s4539_s22 + $0x40] sm:$0xf] }
  0x84   : > { %2549 = vrot.lane.b32.xlu1 %v4118_v12, %s4483_s26  ;;  %v1317_v14 = vsel %vm4628_vm5, %v1312_v38, %v1316_v61  ;;  %v1124_v15 = vrot.slane %v1122_v45, 5  ;;  %v1550_v16 = vrot.slane %v4958_v24, 5  ;;  %v1553_v20 = vrot.slane %v5008_v18, 5 }
  0x85   : > { %v4119_v22 = vcombine.low %v1307_v56, %v1317_v14  ;;  %v1120_v23 = vrot.slane %v1119_v6, 4  ;;  %v3959_v25 = vrot.slane %v3944_v4, 9  ;;  %v1494_v26 = vrot.slane %v4976_v3, 5  ;;  %v5089_v7 = vpop.permute.xlu1 %2465 }
  0x86   : > { %2533 = vrot.lane.b32.xlu0 %v4110_v39, %s4483_s26  ;;  %v1551_v17 = vsel %vm4570_vm2, %v3967_v8, %v1550_v16  ;;  %v1552_v46 = vrot.slane %v1550_v16, 4  ;;  %v1497_v19 = vrot.slane %v5013_v42, 5  ;;  %v3968_v32 = vrot.slane %v3953_v11, 9 }
  0x87   : > { %v1125_v24 = vsel %vm4628_vm5, %v1120_v23, %v1124_v15  ;;  %v1495_v18 = vsel %vm4570_vm2, %v3959_v25, %v1494_v26  ;;  %v1496_v33 = vrot.slane %v1494_v26, 4  ;;  %v1557_v3 = vrot.slane %v4986_v40, 5  ;;  %v5126_v6 = vpop.permute.xlu0 %2449  ;;  %v5139_v26 = vld [vmem:[%s4539_s22 + $0x38] sm:$0x1] }
  0x88   : > { %2551 = vrot.lane.b32.xlu1 %v4119_v22, %s4483_s26  ;;  %v4111_v36 = vcombine.low %v1115_v5, %v1125_v24  ;;  %v1554_v42 = vsel %vm4570_vm2, %v1552_v46, %v1553_v20  ;;  %v1560_v41 = vrot.slane %v5022_v28, 5  ;;  %v3960_v1 = vrot.slane %v3945_v29, 9  ;;  %v5124_v5 = vld [vmem:[%s4539_s22 + $0x98] sm:$0x1] }
  0x89   : > { %v4134_v51 = vcombine.low %v1551_v17, %v1554_v42  ;;  %v1498_v54 = vsel %vm4570_vm2, %v1496_v33, %v1497_v19  ;;  %v1558_v40 = vsel %vm4570_vm2, %v3968_v32, %v1557_v3  ;;  %v1559_v53 = vrot.slane %v1557_v3, 4 }
  0x8a   : > { %2535 = vrot.lane.b32.xlu0 %v4111_v36, %s4483_s26  ;;  %v4126_v44 = vcombine.low %v1495_v18, %v1498_v54  ;;  %v1501_v28 = vrot.slane %v4995_v0, 5  ;;  %v1504_v9 = vrot.slane %v5033_v50, 5  ;;  %v1877_v47 = vshrl.u32 %v5066_v27, 16  ;;  %v5098_v0 = vld [vmem:[%s4539_s22 + $0x9c] sm:$0xf] }
  0x8b   : > { %v1561_v37 = vsel %vm4570_vm2, %v1559_v53, %v1560_v41  ;;  %v1880_v34 = vshll.u32 %v5066_v27, 16  ;;  %v1890_v43 = vshrl.u32 %v5073_v35, 16  ;;  %v4150_v48 = vcombine.low %v5066_v27, %v5073_v35 }
  0x8c   : > { %2629 = vrot.lane.b32.xlu1 %v4134_v51, %s4484_s27  ;;  %v4135_v52 = vcombine.low %v1558_v40, %v1561_v37  ;;  %v1502_v50 = vsel %vm4570_vm2, %v3960_v1, %v1501_v28  ;;  %v1503_v10 = vrot.slane %v1501_v28, 4  ;;  %v1879_v31 = vrot.slane %v1877_v47, 4  ;;  %v5148_v51 = vld [vmem:[%s4539_s22 + $0xa4] sm:$0x1] }
  0x8d   : > { %v1882_v56 = vrot.slane %v1880_v34, 5  ;;  %v1685_v58 = vshrl.u32 %v5080_v57, 16  ;;  %v1688_v59 = vshll.u32 %v5080_v57, 16  ;;  %v1698_v60 = vshrl.u32 %v5087_v49, 16  ;;  %v5132_v16 = vpop.permute.xlu1 %2369 }
  0x8e   : > { %2613 = vrot.lane.b32.xlu0 %v4126_v44, %s4484_s27  ;;  %v1505_v61 = vsel %vm4570_vm2, %v1503_v10, %v1504_v9  ;;  %v4142_v62 = vcombine.low %v5080_v57, %v5087_v49  ;;  %v1901_v63 = vshrl.u32 %v5098_v0, 16  ;;  %v1904_v12 = vshll.u32 %v5098_v0, 16 }
  0x8f   : > { %v4127_v38 = vcombine.low %v1502_v50, %v1505_v61  ;;  %v1687_v45 = vrot.slane %v1685_v58, 4  ;;  %v1690_v4 = vrot.slane %v1688_v59, 5  ;;  %v1914_v39 = vshrl.u32 %v5104_v55, 16  ;;  %v5151_v53 = vpop.permute.xlu0 %2353  ;;  %v5163_v50 = vld [vmem:[%s4539_s22 + $0x44] sm:$0x1] }
  0x90   : > { %2631 = vrot.lane.b32.xlu1 %v4135_v52, %s4484_s27  ;;  %v1903_v8 = vrot.slane %v1901_v63, 4  ;;  %v1906_v11 = vrot.slane %v1904_v12, 5  ;;  %v4151_v14 = vcombine.low %v5098_v0, %v5104_v55  ;;  %v1709_v15 = vshrl.u32 %v5110_v13, 16 }
  0x91   : > { %v1712_v20 = vshll.u32 %v5110_v13, 16  ;;  %v1722_v22 = vshrl.u32 %v5120_v2, 16  ;;  %v4143_v23 = vcombine.low %v5110_v13, %v5120_v2  ;;  %v1883_v25 = vor.u32 %v1882_v56, %v1879_v31  ;;  %v5156_v47 = vpop.permute.xlu1 %2371  ;;  %v4025_v13 = vld [vmem:[%s4539_s22 + $0x90] sm:$0xe] }
  0x92   : > { %2615 = vrot.lane.b32.xlu0 %v4127_v38, %s4484_s27  ;;  %v1711_v29 = vrot.slane %v1709_v15, 4  ;;  %v1886_v17 = vshll.u32 %v5073_v35, 16  ;;  %v1892_v46 = vrot.slane %v1890_v43, 4  ;;  %v1896_v19 = vshll.u32 %v5124_v5, 16 }
  0x93   : > { %v1714_v32 = vrot.slane %v1712_v20, 5  ;;  %v1884_v24 = vrot.slane %v1883_v25, 4  ;;  %v1691_v18 = vor.u32 %v1690_v4, %v1687_v45  ;;  %v1694_v33 = vshll.u32 %v5087_v49, 16 }
  0x94   : > { %2721 = vrot.lane.b32.xlu1 %v4150_v48, %s4485_s28  ;;  %v1888_v3 = vrot.slane %v1886_v17, 5  ;;  %v1898_v27 = vrot.slane %v1896_v19, 5  ;;  %v1700_v36 = vrot.slane %v1698_v60, 4  ;;  %v1704_v42 = vshll.u32 %v5139_v26, 16 }
  0x95   : > { %v1692_v41 = vrot.slane %v1691_v18, 4  ;;  %v1696_v1 = vrot.slane %v1694_v33, 5  ;;  %v1907_v54 = vor.u32 %v1906_v11, %v1903_v8  ;;  %v1910_v40 = vshll.u32 %v5104_v55, 16  ;;  %v4017_v8 = vld [vmem:[%s4539_s22 + $0x30] sm:$0xe]  ;;  %v5176_v11 = vpop.permute.xlu0 %2355 }
  0x96   : > { %2705 = vrot.lane.b32.xlu0 %v4142_v62, %s4485_s28  ;;  %v1889_v57 = vsel %vm4628_vm5, %v1884_v24, %v1888_v3  ;;  %v1893_v44 = vor.u32 %v1892_v46, %v1888_v3  ;;  %v1706_v28 = vrot.slane %v1704_v42, 5  ;;  %v1916_v9 = vrot.slane %v1914_v39, 4  ;;  %v5191_v3 = vld [vmem:[%s4539_s22 + $0x94] sm:$0xf] }
  0x97   : > { %v1697_v37 = vsel %vm4628_vm5, %v1692_v41, %v1696_v1  ;;  %v1701_v34 = vor.u32 %v1700_v36, %v1696_v1  ;;  %v1908_v43 = vrot.slane %v1907_v54, 4  ;;  %v1912_v48 = vrot.slane %v1910_v40, 5  ;;  %v5201_v54 = vld [vmem:[%s4539_s22 + $0x98] sm:$0x1]  ;;  %v375_v40 = vld [vmem:[%s4539_s22 + $0x30] sm:$0xf] }
  0x98   : > { %2723 = vrot.lane.b32.xlu1 %v4151_v14, %s4485_s28  ;;  %v1894_v0 = vrot.slane %v1893_v44, 4  ;;  %v1920_v52 = vshll.u32 %v5148_v51, 16  ;;  %v1715_v10 = vor.u32 %v1714_v32, %v1711_v29  ;;  %v1718_v31 = vshll.u32 %v5120_v2, 16 }
  0x99   : > { %v1702_v56 = vrot.slane %v1701_v34, 4  ;;  %v1913_v58 = vsel %vm4628_vm5, %v1908_v43, %v1912_v48  ;;  %v1917_v59 = vor.u32 %v1916_v9, %v1912_v48  ;;  %v1724_v60 = vrot.slane %v1722_v22, 4  ;;  %v5209_v9 = vld [vmem:[%s4539_s22 + $0x34] sm:$0xf] }
  0x9a   : > { %2707 = vrot.lane.b32.xlu0 %v4143_v23, %s4485_s28  ;;  %v1899_v61 = vsel %vm4628_vm5, %v1894_v0, %v1898_v27  ;;  %v1922_v62 = vrot.slane %v1920_v52, 5  ;;  %v1716_v63 = vrot.slane %v1715_v10, 4  ;;  %v1720_v12 = vrot.slane %v1718_v31, 5  ;;  %v391_v23 = vld [vmem:[%s4539_s22 + $0x90] sm:$0xf]  ;;  %v5181_v25 = vpop.permute.xlu1 %2275 }
  0x9b   : > { %v4165_v38 = vcombine.low %v1889_v57, %v1899_v61  ;;  %v1707_v45 = vsel %vm4628_vm5, %v1702_v56, %v1706_v28  ;;  %v1918_v4 = vrot.slane %v1917_v59, 4  ;;  %v1728_v39 = vshll.u32 %v5163_v50, 16  ;;  %v5217_v52 = vld [vmem:[%s4539_s22 + $0x38] sm:$0x1] }
  0x9c   : > { %v4157_v14 = vcombine.low %v1697_v37, %v1707_v45  ;;  %v1721_v15 = vsel %vm4628_vm5, %v1716_v63, %v1720_v12  ;;  %v1725_v20 = vor.u32 %v1724_v60, %v1720_v12  ;;  %v4039_v22 = vrot.slane %v4025_v13, 9 }
  0x9d   : > { %2798 = vrot.lane.b32.xlu1 %v4165_v38, %s4486_s29  ;;  %v1923_v29 = vsel %vm4628_vm5, %v1918_v4, %v1922_v62  ;;  %v1730_v17 = vrot.slane %v1728_v39, 5  ;;  %v2128_v46 = vrot.slane %v5073_v35, 5  ;;  %v2131_v19 = vrot.slane %v5124_v5, 5 }
  0x9e   : > { %2782 = vrot.lane.b32.xlu0 %v4157_v14, %s4486_s29  ;;  %v4166_v32 = vcombine.low %v1913_v58, %v1923_v29  ;;  %v1726_v24 = vrot.slane %v1725_v20, 4  ;;  %v4031_v18 = vrot.slane %v4017_v8, 9  ;;  %v2072_v33 = vrot.slane %v5087_v49, 5  ;;  %v5211_v37 = vpop.permute.xlu0 %2273  ;;  %v4427_v29 = vld [vmem:[%s4539_s22 + $0xc] sm:$0xf] }
  0x9f   : > { %v2129_v27 = vsel %vm4570_vm2, %v4039_v22, %v2128_v46  ;;  %v2130_v36 = vrot.slane %v2128_v46, 4  ;;  %v2075_v42 = vrot.slane %v5139_v26, 5  ;;  %v707_v35 = vshrl.u32 %v391_v23, 16 }
  0xa0   : > { %v1731_v5 = vsel %vm4628_vm5, %v1726_v24, %v1730_v17  ;;  %v2073_v41 = vsel %vm4570_vm2, %v4031_v18, %v2072_v33  ;;  %v2074_v1 = vrot.slane %v2072_v33, 4  ;;  %v710_v49 = vshll.u32 %v391_v23, 16  ;;  %v4426_v23 = vld [vmem:[%s4539_s22 + $0x10] sm:$0xf] }
  0xa1   : > { %2800 = vrot.lane.b32.xlu1 %v4166_v32, %s4486_s29  ;;  %v4158_v57 = vcombine.low %v1721_v15, %v1731_v5  ;;  %v2132_v44 = vsel %vm4570_vm2, %v2130_v36, %v2131_v19  ;;  %v709_v26 = vrot.slane %v707_v35, 4  ;;  %v716_v28 = vshll.u32 %v5191_v3, 16  ;;  %v4026_v15 = vld [vmem:[%s4539_s22 + $0x9c] sm:$0xe]  ;;  %v4428_v5 = vld [vmem:[%s4539_s22 + $0x4] sm:$0xf] }
  0xa2   : > { %v4180_v34 = vcombine.low %v2129_v27, %v2132_v44  ;;  %v2076_v43 = vsel %vm4570_vm2, %v2074_v1, %v2075_v42  ;;  %v712_v48 = vrot.slane %v710_v49, 5  ;;  %v720_v0 = vshrl.u32 %v5191_v3, 16  ;;  %v5219_v10 = vpop.permute.xlu1 %2291  ;;  %v4018_v36 = vld [vmem:[%s4539_s22 + $0x3c] sm:$0xe] }
  0xa3   : > { %2784 = vrot.lane.b32.xlu0 %v4158_v57, %s4486_s29  ;;  %v4172_v31 = vcombine.low %v2073_v41, %v2076_v43  ;;  %v718_v56 = vrot.slane %v716_v28, 5  ;;  %v726_v58 = vshll.u32 %v5201_v54, 16  ;;  %v515_v59 = vshrl.u32 %v375_v40, 16  ;;  %v4429_v41 = vld [vmem:[%s4539_s22] sm:$0xf] }
  0xa4   : > { %v713_v60 = vor.u32 %v712_v48, %v709_v26  ;;  %v722_v13 = vrot.slane %v720_v0, 4  ;;  %v518_v61 = vshll.u32 %v375_v40, 16  ;;  %v524_v62 = vshll.u32 %v5209_v9, 16  ;;  %v393_v28 = vld [vmem:[%s4539_s22 + $0x9c] sm:$0xf] }
  0xa5   : > { %2875 = vrot.lane.b32.xlu1 %v4180_v34, %s4487_s30  ;;  %v728_v63 = vrot.slane %v726_v58, 5  ;;  %v517_v12 = vrot.slane %v515_v59, 4  ;;  %v528_v38 = vshrl.u32 %v5209_v9, 16  ;;  %v534_v45 = vshll.u32 %v5217_v52, 16  ;;  %v4430_v58 = vld [vmem:[%s4539_s22 + $0x70] sm:$0xf] }
  0xa6   : > { %v714_v4 = vrot.slane %v713_v60, 4  ;;  %v723_v39 = vor.u32 %v722_v13, %v718_v56  ;;  %v520_v8 = vrot.slane %v518_v61, 5  ;;  %v526_v14 = vrot.slane %v524_v62, 5  ;;  %v5228_v20 = vpop.permute.xlu1 %2467  ;;  %v4431_v59 = vld [vmem:[%s4539_s22 + $0x6c] sm:$0xf] }
  0xa7   : > { %2859 = vrot.lane.b32.xlu0 %v4172_v31, %s4487_s30  ;;  %v530_v22 = vrot.slane %v528_v38, 4  ;;  %v4045_v17 = vcombine.low %v4427_v29, %v4426_v23  ;;  %v5233_v46 = vpop.permute.xlu0 %2289  ;;  %v536_v33 = vrot.slane %v534_v45, 5  ;;  %v4040_v27 = vrot.slane %v4026_v15, 9  ;;  %v5265_v13 = vld [vmem:[%s4539_s22 + $0xa0] sm:$0xf] }
  0xa8   : > { %v719_v19 = vsel %vm4628_vm5, %v714_v4, %v718_v56  ;;  %v724_v32 = vrot.slane %v723_v39, 4  ;;  %v521_v24 = vor.u32 %v520_v8, %v517_v12  ;;  %v4044_v1 = vcombine.low %v4429_v41, %v4428_v5  ;;  %v4432_v45 = vld [vmem:[%s4539_s22 + $0x64] sm:$0xf]  ;;  %v4433_v4 = vld [vmem:[%s4539_s22 + $0x60] sm:$0xf] }
  0xa9   : > { %v531_v18 = vor.u32 %v530_v22, %v526_v14  ;;  %v2135_v49 = vrot.slane %v5104_v55, 5  ;;  %v5245_v44 = vsel %vm2887_vm6, %v4045_v17, %v5181_v25  ;;  %v2138_v26 = vrot.slane %v5148_v51, 5  ;;  %v377_v8 = vld [vmem:[%s4539_s22 + $0x3c] sm:$0xf]  ;;  %v5284_v17 = vld [vmem:[%s4539_s22 + $0x40] sm:$0xf] }
  0xaa   : > { %v729_v42 = vsel %vm4628_vm5, %v724_v32, %v728_v63  ;;  %v522_v35 = vrot.slane %v521_v24, 4  ;;  %v5251_v43 = vpop.permute.xlu1 %2545  ;;  %v4032_v31 = vrot.slane %v4018_v36, 9  ;;  %v2079_v25 = vrot.slane %v5120_v2, 5  ;;  %v5270_v63 = vld [vmem:[%s4539_s22 + $0xa4] sm:$0x1] }
  0xab   : > { %v4072_v40 = vcombine.low %v719_v19, %v729_v42  ;;  %v532_v57 = vrot.slane %v531_v18, 4  ;;  %v5249_v34 = vpop.permute.xlu0 %2451  ;;  %v2136_v48 = vsel %vm4570_vm2, %v4040_v27, %v2135_v49  ;;  %v2137_v0 = vrot.slane %v2135_v49, 4 }
  0xac   : > { %v527_v55 = vsel %vm4628_vm5, %v522_v35, %v526_v14  ;;  %v2082_v56 = vrot.slane %v5163_v50, 5  ;;  %v4053_v60 = vcombine.low %v4431_v59, %v4430_v58  ;;  %v731_v12 = vshrl.u32 %v393_v28, 16 }
  0xad   : > { %2297 = vrot.lane.b32.xlu1 %v4072_v40, %s4482_s25  ;;  %v537_v51 = vsel %vm4628_vm5, %v532_v57, %v536_v33  ;;  %v2139_v62 = vsel %vm4570_vm2, %v2137_v0, %v2138_v26  ;;  %v2080_v2 = vsel %vm4570_vm2, %v4032_v31, %v2079_v25  ;;  %v2081_v50 = vrot.slane %v2079_v25, 4  ;;  %v5294_v33 = vld [vmem:[%s4539_s22 + $0x44] sm:$0x1] }
  0xae   : > { %v4064_v61 = vcombine.low %v527_v55, %v537_v51  ;;  %v4181_v38 = vcombine.low %v2136_v48, %v2139_v62  ;;  %v4052_v39 = vcombine.low %v4433_v4, %v4432_v45  ;;  %v2890_v15 = vsel %vm2887_vm6, %v4044_v1, %v5211_v37 }
  0xaf   : > { %v5277_v14 = vpop.permute.xlu0 %2529  ;;  %v733_v22 = vrot.slane %v731_v12, 4  ;;  %v734_v23 = vshll.u32 %v393_v28, 16  ;;  %v740_v29 = vshll.u32 %v5265_v13, 16  ;;  %v2083_v19 = vsel %vm4570_vm2, %v2081_v50, %v2082_v56 }
  0xb0   : > { %2281 = vrot.lane.b32.xlu0 %v4064_v61, %s4482_s25  ;;  %v2917_v32 = vsel %vm2887_vm6, %v4053_v60, %v5219_v10  ;;  %v744_v24 = vshrl.u32 %v5265_v13, 16  ;;  %v750_v18 = vshll.u32 %v5270_v63, 16  ;;  %v4173_v27 = vcombine.low %v2080_v2, %v2083_v19 }
  0xb1   : > { %2877 = vrot.lane.b32.xlu1 %v4181_v38, %s4487_s30  ;;  %v5296_v37 = vpop.permute.xlu1 %2547  ;;  %v736_v36 = vrot.slane %v734_v23, 5  ;;  %v742_v42 = vrot.slane %v740_v29, 5  ;;  %v539_v35 = vshrl.u32 %v377_v8, 16  ;;  %v2914_v5 = vsel %vm2887_vm6, %v4052_v39, %v5233_v46  ;;  %v814_v46 = vld [vmem:[%s4539_s22 + $0x90] sm:$0xe] }
  0xb2   : > { %v746_v41 = vrot.slane %v744_v24, 4  ;;  %v542_v1 = vshll.u32 %v377_v8, 16  ;;  %v548_v10 = vshll.u32 %v5284_v17, 16  ;;  %v552_v26 = vshrl.u32 %v5284_v17, 16  ;;  %v806_v38 = vld [vmem:[%s4539_s22 + $0x30] sm:$0xe] }
  0xb3   : > { %v5301_v49 = vpop.permute.xlu0 %2531  ;;  %v737_v40 = vor.u32 %v736_v36, %v733_v22  ;;  %v541_v57 = vrot.slane %v539_v35, 4  ;;  %v558_v28 = vshll.u32 %v5294_v33, 16  ;;  %v752_v48 = vrot.slane %v750_v18, 5 }
  0xb4   : > { %2861 = vrot.lane.b32.xlu0 %v4173_v27, %s4487_s30  ;;  %v747_v55 = vor.u32 %v746_v41, %v742_v42  ;;  %v544_v0 = vrot.slane %v542_v1, 5  ;;  %v550_v31 = vrot.slane %v548_v10, 5  ;;  %v2938_v25 = vsel %vm2936_vm7, %v2890_v15, %v5151_v53  ;;  %v807_v1 = vld [vmem:[%s4539_s22 + $0x3c] sm:$0xe] }
  0xb5   : > { %v5307_v51 = vpop.permute.xlu1 %2625  ;;  %v2954_v56 = vsel %vm2936_vm7, %v2914_v5, %v5132_v16  ;;  %v738_v58 = vrot.slane %v737_v40, 4  ;;  %v554_v59 = vrot.slane %v552_v26, 4  ;;  %v560_v62 = vrot.slane %v558_v28, 5 }
  0xb6   : > { %v748_v60 = vrot.slane %v747_v55, 4  ;;  %v545_v61 = vor.u32 %v544_v0, %v541_v57  ;;  %v2956_v12 = vsel %vm2936_vm7, %v2917_v32, %v5156_v47  ;;  %v3893_v53 = vrot.slane %v814_v46, 9  ;;  %v5357_v57 = vld [vmem:[%s4539_s22 + $0x9c] sm:$0xf] }
  0xb7   : > { %v5316_v2 = vpop.permute.xlu0 %2609  ;;  %v743_v50 = vsel %vm4628_vm5, %v738_v58, %v742_v42  ;;  %v555_v45 = vor.u32 %v554_v59, %v550_v31  ;;  %v955_v39 = vrot.slane %v5191_v3, 5  ;;  %v958_v8 = vrot.slane %v5201_v54, 5  ;;  %v815_v42 = vld [vmem:[%s4539_s22 + $0x9c] sm:$0xe]  ;;  %v5375_v58 = vld [vmem:[%s4539_s22 + $0xa0] sm:$0xf] }
  0xb8   : > { %v753_v16 = vsel %vm4628_vm5, %v748_v60, %v752_v48  ;;  %v546_v4 = vrot.slane %v545_v61, 4  ;;  %v3885_v23 = vrot.slane %v806_v38, 9  ;;  %v899_v29 = vrot.slane %v5209_v9, 5  ;;  %v3905_v46 = vld [vmem:[%s4539_s22 + $0x3c] sm:$0xf] }
  0xb9   : > { %v5324_v15 = vpop.permute.xlu1 %2627  ;;  %v4073_v47 = vcombine.low %v743_v50, %v753_v16  ;;  %v556_v22 = vrot.slane %v555_v45, 4  ;;  %v956_v32 = vsel %vm4570_vm2, %v3893_v53, %v955_v39  ;;  %v957_v24 = vrot.slane %v955_v39, 4  ;;  %v5399_v16 = vld [vmem:[%s4539_s22 + $0x40] sm:$0xf] }
  0xba   : > { %v551_v19 = vsel %vm4628_vm5, %v546_v4, %v550_v31  ;;  %v902_v3 = vrot.slane %v5217_v52, 5  ;;  %v2940_v9 = vsel %vm2936_vm7, %v5245_v44, %v5176_v11  ;;  %v900_v27 = vsel %vm4570_vm2, %v3885_v23, %v899_v29 }
  0xbb   : > { %v5332_v18 = vpop.permute.xlu0 %2611  ;;  %2299 = vrot.lane.b32.xlu1 %v4073_v47, %s4482_s25  ;;  %v561_v54 = vsel %vm4628_vm5, %v556_v22, %v560_v62  ;;  %v901_v36 = vrot.slane %v899_v29, 4  ;;  %v2989_v52 = vsel %vm2969_vm8, %v2956_v12, %v5228_v20  ;;  %v2973_v5 = vsel %vm2969_vm8, %v2940_v9, %v5249_v34  ;;  %v3923_v12 = vld [vmem:[%s4539_s22 + $0xa8] sm:$0xf]  ;;  %v5404_v47 = vld [vmem:[%s4539_s22 + $0xac] sm:$0xf] }
  0xbc   : > { %v4065_v35 = vcombine.low %v551_v19, %v561_v54  ;;  %v959_v41 = vsel %vm4570_vm2, %v957_v24, %v958_v8  ;;  %v2987_v44 = vsel %vm2969_vm8, %v2954_v56, %v5089_v7  ;;  %v3894_v34 = vrot.slane %v815_v42, 9  ;;  %v3907_v22 = vld [vmem:[%s4539_s22 + $0x48] sm:$0xf]  ;;  %v5411_v24 = vld [vmem:[%s4539_s22 + $0x4c] sm:$0xf] }
  0xbd   : > { %v5350_v10 = vpop.permute.xlu1 %2717  ;;  %v4088_v40 = vcombine.low %v956_v32, %v959_v41  ;;  %v903_v11 = vsel %vm4570_vm2, %v901_v36, %v902_v3  ;;  %v962_v26 = vrot.slane %v5265_v13, 5  ;;  %v965_v28 = vrot.slane %v5270_v63, 5  ;;  %v5429_v41 = vld [vmem:[%s4539_s22 + $0xa4] sm:$0x1] }
  0xbe   : > { %2283 = vrot.lane.b32.xlu0 %v4065_v35, %s4482_s25  ;;  %v4080_v20 = vcombine.low %v900_v27, %v903_v11  ;;  %v2971_v48 = vsel %vm2969_vm8, %v2938_v25, %v5126_v6  ;;  %v3886_v0 = vrot.slane %v807_v1, 9  ;;  %v906_v7 = vrot.slane %v5284_v17, 5 }
  0xbf   : > { %v5362_v55 = vpop.permute.xlu0 %2701  ;;  %2377 = vrot.lane.b32.xlu1 %v4088_v40, %s4481_s24  ;;  %v909_v31 = vrot.slane %v5294_v33, 5  ;;  %v3020_v56 = vsel %vm3002_vm9, %v2987_v44, %v5251_v43  ;;  %v963_v13 = vsel %vm4570_vm2, %v3894_v34, %v962_v26  ;;  %v964_v63 = vrot.slane %v962_v26, 4 }
  0xc0   : > { %v1319_v59 = vshrl.u32 %v5357_v57, 16  ;;  %v3004_v17 = vsel %vm3002_vm9, %v2971_v48, %v5277_v14  ;;  %v907_v33 = vsel %vm4570_vm2, %v3886_v0, %v906_v7  ;;  %v908_v25 = vrot.slane %v906_v7, 4 }
  0xc1   : > { %v5378_v6 = vpop.permute.xlu1 %2719  ;;  %v1322_v43 = vshll.u32 %v5357_v57, 16  ;;  %v966_v60 = vsel %vm4570_vm2, %v964_v63, %v965_v28  ;;  %v3022_v61 = vsel %vm3002_vm9, %v2989_v52, %v5296_v37  ;;  %v3006_v62 = vsel %vm3002_vm9, %v2973_v5, %v5301_v49 }
  0xc2   : > { %2361 = vrot.lane.b32.xlu0 %v4080_v20, %s4481_s24  ;;  %v1127_v14 = vshrl.u32 %v3905_v46, 16  ;;  %v4089_v50 = vcombine.low %v963_v13, %v966_v60  ;;  %v910_v45 = vsel %vm4570_vm2, %v908_v25, %v909_v31  ;;  %v1332_v53 = vshrl.u32 %v5375_v58, 16  ;;  %v5451_v25 = vld [vmem:[%s4539_s22 + $0xb0] sm:$0x1] }
  0xc3   : > { %v5393_v38 = vpop.permute.xlu0 %2703  ;;  %v1130_v4 = vshll.u32 %v3905_v46, 16  ;;  %v4081_v39 = vcombine.low %v907_v33, %v910_v45  ;;  %v1321_v8 = vrot.slane %v1319_v59, 4  ;;  %v1324_v37 = vrot.slane %v1322_v43, 5 }
  0xc4   : > { %v4104_v49 = vcombine.low %v5357_v57, %v5375_v58  ;;  %2379 = vrot.lane.b32.xlu1 %v4089_v50, %s4481_s24  ;;  %v1129_v29 = vrot.slane %v1127_v14, 4  ;;  %v1343_v19 = vshrl.u32 %v3923_v12, 16  ;;  %v1346_v32 = vshll.u32 %v3923_v12, 16 }
  0xc5   : > { %v5407_v23 = vpop.permute.xlu1 %2794  ;;  %v1132_v3 = vrot.slane %v1130_v4, 5  ;;  %v1140_v54 = vshrl.u32 %v5399_v16, 16  ;;  %v4096_v9 = vcombine.low %v3905_v46, %v5399_v16  ;;  %v5418_v27 = vsel %vm3035_vm10, %v3020_v56, %v5307_v51  ;;  %v5433_v51 = vld [vmem:[%s4539_s22 + $0x44] sm:$0x1] }
  0xc6   : > { %2363 = vrot.lane.b32.xlu0 %v4081_v39, %s4481_s24  ;;  %v5424_v42 = vsel %vm3035_vm10, %v3004_v17, %v5316_v2  ;;  %v1345_v35 = vrot.slane %v1343_v19, 4  ;;  %v1356_v52 = vshrl.u32 %v5404_v47, 16  ;;  %v4105_v5 = vcombine.low %v3923_v12, %v5404_v47 }
  0xc7   : > { %v5420_v36 = vpop.permute.xlu0 %2778  ;;  %v1348_v1 = vrot.slane %v1346_v32, 5  ;;  %v1151_v40 = vshrl.u32 %v3907_v22, 16  ;;  %v1154_v11 = vshll.u32 %v3907_v22, 16  ;;  %v1164_v44 = vshrl.u32 %v5411_v24, 16 }
  0xc8   : > { %2473 = vrot.lane.b32.xlu1 %v4104_v49, %s4480_s23  ;;  %v4097_v2 = vcombine.low %v3907_v22, %v5411_v24  ;;  %v5441_v20 = vsel %vm3035_vm10, %v3022_v61, %v5324_v15  ;;  %v1325_v34 = vor.u32 %v1324_v37, %v1321_v8  ;;  %v1328_v26 = vshll.u32 %v5375_v58, 16  ;;  %v5468_v22 = vld [vmem:[%s4539_s22 + $0x50] sm:$0x1] }
  0xc9   : > { %v5435_v57 = vpop.permute.xlu1 %2796  ;;  %v1334_v28 = vrot.slane %v1332_v53, 4  ;;  %v1338_v48 = vshll.u32 %v5429_v41, 16  ;;  %v1133_v0 = vor.u32 %v1132_v3, %v1129_v29  ;;  %v1136_v7 = vshll.u32 %v5399_v16, 16 }
  0xca   : > { %2457 = vrot.lane.b32.xlu0 %v4096_v9, %s4480_s23  ;;  %v1326_v31 = vrot.slane %v1325_v34, 4  ;;  %v1330_v46 = vrot.slane %v1328_v26, 5  ;;  %v1142_v56 = vrot.slane %v1140_v54, 4  ;;  %v1146_v13 = vshll.u32 %v5433_v51, 16 }
  0xcb   : > { %v5448_v63 = vpop.permute.xlu0 %2780  ;;  %v1153_v15 = vrot.slane %v1151_v40, 4  ;;  %v1156_v59 = vrot.slane %v1154_v11, 5  ;;  %v1134_v17 = vrot.slane %v1133_v0, 4  ;;  %v1138_v33 = vrot.slane %v1136_v7, 5  ;;  %v3954_v40 = vld [vmem:[%s4539_s22 + $0x9c] sm:$0xe] }
  0xcc   : > { %2475 = vrot.lane.b32.xlu1 %v4105_v5, %s4480_s23  ;;  %v5456_v43 = vsel %vm3035_vm10, %v3006_v62, %v5332_v18  ;;  %v1331_v60 = vsel %vm4628_vm5, %v1326_v31, %v1330_v46  ;;  %v1335_v61 = vor.u32 %v1334_v28, %v1330_v46  ;;  %v1340_v14 = vrot.slane %v1338_v48, 5  ;;  %v3946_v28 = vld [vmem:[%s4539_s22 + $0x3c] sm:$0xe] }
  0xcd   : > { %v1139_v12 = vsel %vm4628_vm5, %v1134_v17, %v1138_v33  ;;  %v1143_v50 = vor.u32 %v1142_v56, %v1138_v33  ;;  %v1148_v45 = vrot.slane %v1146_v13, 5  ;;  %v1349_v53 = vor.u32 %v1348_v1, %v1345_v35  ;;  %v5463_v4 = vpop.permute.xlu1 %2871  ;;  %v3955_v33 = vld [vmem:[%s4539_s22 + $0xa8] sm:$0xe] }
  0xce   : > { %2459 = vrot.lane.b32.xlu0 %v4097_v2, %s4480_s23  ;;  %v1336_v39 = vrot.slane %v1335_v61, 4  ;;  %v1352_v18 = vshll.u32 %v5404_v47, 16  ;;  %v1358_v62 = vrot.slane %v1356_v52, 4  ;;  %v1362_v8 = vshll.u32 %v5451_v25, 16 }
  0xcf   : > { %v1144_v37 = vrot.slane %v1143_v50, 4  ;;  %v1350_v49 = vrot.slane %v1349_v53, 4  ;;  %v1157_v29 = vor.u32 %v1156_v59, %v1153_v15  ;;  %v1160_v19 = vshll.u32 %v5411_v24, 16  ;;  %v5473_v9 = vpop.permute.xlu0 %2855  ;;  %v3947_v53 = vld [vmem:[%s4539_s22 + $0x48] sm:$0xe] }
  0xd0   : > { %v1341_v32 = vsel %vm4628_vm5, %v1336_v39, %v1340_v14  ;;  %v1354_v3 = vrot.slane %v1352_v18, 5  ;;  %v1166_v54 = vrot.slane %v1164_v44, 4  ;;  %v1364_v34 = vrot.slane %v1362_v8, 5 }
  0xd1   : > { %v4120_v35 = vcombine.low %v1331_v60, %v1341_v32  ;;  %v1149_v52 = vsel %vm4628_vm5, %v1144_v37, %v1148_v45  ;;  %v1158_v5 = vrot.slane %v1157_v29, 4  ;;  %v1162_v1 = vrot.slane %v1160_v19, 5  ;;  %v5519_v29 = vld [vmem:[%s4539_s22 + $0xa8] sm:$0xf] }
  0xd2   : > { %v4112_v11 = vcombine.low %v1139_v12, %v1149_v52  ;;  %v1359_v2 = vor.u32 %v1358_v62, %v1354_v3  ;;  %v1170_v26 = vshll.u32 %v5468_v22, 16  ;;  %v3086_v44 = vsel %vm3068_vm11, %v5418_v27, %v5350_v10  ;;  %v5534_v52 = vld [vmem:[%s4539_s22 + $0xac] sm:$0xf] }
  0xd3   : > { %2553 = vrot.lane.b32.xlu1 %v4120_v35, %s4483_s26  ;;  %v1355_v48 = vsel %vm4628_vm5, %v1350_v49, %v1354_v3  ;;  %v1163_v0 = vsel %vm4628_vm5, %v1158_v5, %v1162_v1  ;;  %v1167_v7 = vor.u32 %v1166_v54, %v1162_v1  ;;  %v3969_v13 = vrot.slane %v3954_v40, 9 }
  0xd4   : > { %2537 = vrot.lane.b32.xlu0 %v4112_v11, %s4483_s26  ;;  %v1360_v46 = vrot.slane %v1359_v2, 4  ;;  %v1172_v56 = vrot.slane %v1170_v26, 5  ;;  %v1564_v15 = vrot.slane %v5375_v58, 5  ;;  %v1567_v10 = vrot.slane %v5429_v41, 5  ;;  %v5563_v26 = vld [vmem:[%s4539_s22 + $0x4c] sm:$0xf] }
  0xd5   : > { %v5488_v31 = vpop.permute.xlu1 %2293  ;;  %v1168_v59 = vrot.slane %v1167_v7, 4  ;;  %v3961_v27 = vrot.slane %v3946_v28, 9  ;;  %v1508_v17 = vrot.slane %v5399_v16, 5  ;;  %v1511_v12 = vrot.slane %v5433_v51, 5 }
  0xd6   : > { %v1365_v60 = vsel %vm4628_vm5, %v1360_v46, %v1364_v34  ;;  %v1565_v61 = vsel %vm4570_vm2, %v3969_v13, %v1564_v15  ;;  %v1566_v14 = vrot.slane %v1564_v15, 4  ;;  %v3970_v62 = vrot.slane %v3955_v33, 9  ;;  %v3999_v13 = vld [vmem:[%s4539_s22 + $0xb4] sm:$0xf] }
  0xd7   : > { %v4121_v58 = vcombine.low %v1355_v48, %v1365_v60  ;;  %v1173_v41 = vsel %vm4628_vm5, %v1168_v59, %v1172_v56  ;;  %v1509_v16 = vsel %vm4570_vm2, %v3961_v27, %v1508_v17  ;;  %v1510_v45 = vrot.slane %v1508_v17, 4  ;;  %v3983_v27 = vld [vmem:[%s4539_s22 + $0x54] sm:$0xf] }
  0xd8   : > { %v5500_v50 = vpop.permute.xlu0 %2277  ;;  %v4113_v39 = vcombine.low %v1163_v0, %v1173_v41  ;;  %v1568_v18 = vsel %vm4570_vm2, %v1566_v14, %v1567_v10  ;;  %v3070_v51 = vsel %vm3068_vm11, %v5424_v42, %v5362_v55  ;;  %v3088_v8 = vsel %vm3068_vm11, %v5441_v20, %v5378_v6  ;;  %v5586_v14 = vld [vmem:[%s4539_s22 + $0xb8] sm:$0xf] }
  0xd9   : > { %2555 = vrot.lane.b32.xlu1 %v4121_v58, %s4483_s26  ;;  %v4136_v37 = vcombine.low %v1565_v61, %v1568_v18  ;;  %v1512_v49 = vsel %vm4570_vm2, %v1510_v45, %v1511_v12  ;;  %v5521_v19 = vpop.permute.xlu1 %2873  ;;  %v1571_v55 = vrot.slane %v5404_v47, 5  ;;  %v1574_v42 = vrot.slane %v5451_v25, 5  ;;  %v5589_v12 = vld [vmem:[%s4539_s22 + $0x58] sm:$0xf] }
  0xda   : > { %2539 = vrot.lane.b32.xlu0 %v4113_v39, %s4483_s26  ;;  %v4128_v32 = vcombine.low %v1509_v16, %v1512_v49  ;;  %v3962_v3 = vrot.slane %v3947_v53, 9  ;;  %v3072_v6 = vsel %vm3068_vm11, %v5456_v43, %v5393_v38  ;;  %v3119_v20 = vsel %vm3101_vm12, %v3086_v44, %v5407_v23 }
  0xdb   : > { %v1515_v54 = vrot.slane %v5411_v24, 5  ;;  %v1518_v35 = vrot.slane %v5468_v22, 5  ;;  %v1572_v47 = vsel %vm4570_vm2, %v3970_v62, %v1571_v55  ;;  %v1573_v25 = vrot.slane %v1571_v55, 4  ;;  %v3981_v22 = vld [vmem:[%s4539_s22 + $0x48] sm:$0xf] }
  0xdc   : > { %v1925_v5 = vshrl.u32 %v5519_v29, 16  ;;  %v1928_v1 = vshll.u32 %v5519_v29, 16  ;;  %v5540_v40 = vpop.permute.xlu0 %2857  ;;  %v3103_v38 = vsel %vm3101_vm12, %v3070_v51, %v5420_v36  ;;  %v5549_v43 = vsel %vm3101_vm12, %v3088_v8, %v5435_v57  ;;  %v5606_v51 = vld [vmem:[%s4539_s22 + $0xb0] sm:$0x1] }
  0xdd   : > { %2633 = vrot.lane.b32.xlu1 %v4136_v37, %s4484_s27  ;;  %v1516_v23 = vsel %vm4570_vm2, %v3962_v3, %v1515_v54  ;;  %v1517_v24 = vrot.slane %v1515_v54, 4  ;;  %v1575_v11 = vsel %vm4570_vm2, %v1573_v25, %v1574_v42  ;;  %v5557_v2 = vsel %vm3101_vm12, %v3072_v6, %v5448_v63  ;;  %v4396_v63 = vld [vmem:[%s6509_s2 + $0x20] ss:$0 sps:$4 sm:$0xff]   ;;  %v5626_v25 = vld [vmem:[%s4539_s22 + $0x50] sm:$0x1] }
  0xde   : > { %2617 = vrot.lane.b32.xlu0 %v4128_v32, %s4484_s27  ;;  %v1938_v36 = vshrl.u32 %v5534_v52, 16  ;;  %v4152_v34 = vcombine.low %v5519_v29, %v5534_v52  ;;  %v4137_v57 = vcombine.low %v1572_v47, %v1575_v11  ;;  %v5567_v44 = vrot.slane %v1925_v5, 4  ;;  %4333 = vmatprep.subr.msk.bf16.mxu0 %vm3516_vm15, %v4396_v63 }
  0xdf   : > { %v1519_v28 = vsel %vm4570_vm2, %v1517_v24, %v1518_v35  ;;  %v5569_v48 = vrot.slane %v1928_v1, 5  ;;  %v1733_v46 = vshrl.u32 %v3981_v22, 16  ;;  %v1736_v56 = vshll.u32 %v3981_v22, 16  ;;  %4334 = vmatprep.subr.msk.bf16.mxu1 %vm3516_vm15, %v4396_v63 }
  0xe0   : > { %v4129_v7 = vcombine.low %v1516_v23, %v1519_v28  ;;  %v4144_v15 = vcombine.low %v3981_v22, %v5563_v26  ;;  %v3152_v59 = vsel %vm3134_vm13, %v3119_v20, %v5463_v4  ;;  %v3136_v10 = vsel %vm3134_vm13, %v3103_v38, %v5473_v9  ;;  %v4399_v9 = vld [vmem:[%s6509_s2 + $0x18] sm:$0xff]  }
  0xe1   : > { %v5574_v0 = vpop.permute.xlu1 %2295  ;;  %2635 = vrot.lane.b32.xlu1 %v4137_v57, %s4484_s27  ;;  %v4201_v17 = vcombine.low %v3152_v59, %v3152_v59  ;;  %v4202_v33 = vcombine.high %v3152_v59, %v3152_v59  ;;  %v4185_v60 = vcombine.low %v3136_v10, %v3136_v10  ;;  %v4186_v61 = vcombine.high %v3136_v10, %v3136_v10  ;;  %v5633_v38 = vld [vmem:[%s4539_s22 + $0x78] sm:$0xf]  ;;  %v5636_v23 = vld [vmem:[%s4539_s22 + $0x7c] sm:$0xf] }
  0xe2   : > { %2619 = vrot.lane.b32.xlu0 %v4129_v7, %s4484_s27  ;;  %v1746_v41 = vshrl.u32 %v5563_v26, 16  ;;  %v1949_v4 = vshrl.u32 %v3999_v13, 16  ;;  %v1952_v16 = vshll.u32 %v3999_v13, 16  ;;  %v1735_v53 = vrot.slane %v1733_v46, 4 }
  0xe3   : > { %v1738_v39 = vrot.slane %v1736_v56, 5  ;;  %3296 = vst.msk [vmem:[#allocation2 + $0x40] sm:$0xf] %vm3279_vm14, %v4201_v17  ;;  %3297 = vst.msk [vmem:[#allocation2 + $0x44] sm:$0xf] %vm3279_vm14, %v4202_v33  ;;  %v1757_v18 = vshrl.u32 %v3983_v27, 16  ;;  %v4153_v37 = vcombine.low %v3999_v13, %v5586_v14  ;;  %v4145_v3 = vcombine.low %v3983_v27, %v5589_v12 }
  0xe4   : > { %v5591_v58 = vpop.permute.xlu0 %2279  ;;  %3280 = vst.msk [vmem:[#allocation2] sm:$0xf] %vm3279_vm14, %v4185_v60  ;;  %3281 = vst.msk [vmem:[#allocation2 + $0x4] sm:$0xf] %vm3279_vm14, %v4186_v61  ;;  %v1760_v62 = vshll.u32 %v3983_v27, 16  ;;  %v1962_v8 = vshrl.u32 %v5586_v14, 16  ;;  %v1931_v20 = vor.u32 %v5569_v48, %v5567_v44  ;;  %v4054_v24 = vcombine.low %v5633_v38, %v5636_v23 }
  0xe5   : > { %v5597_v45 = vpop.permute.xlu1 %2373  ;;  %2725 = vrot.lane.b32.xlu1 %v4152_v34, %s4485_s28  ;;  %v1770_v49 = vshrl.u32 %v5589_v12, 16  ;;  %v3518_v29 = vsel %vm3516_vm15, %v4396_v63, 0  ;;  %v5614_v32 = vrot.slane %v1949_v4, 4  ;;  %v1954_v55 = vrot.slane %v1952_v16, 5  ;;  %v5651_v56 = vld [vmem:[%s4539_s22 + $0xbc] sm:$0x1] }
  0xe6   : > { %2709 = vrot.lane.b32.xlu0 %v4144_v15, %s4485_s28  ;;  %v5616_v42 = vrot.slane %v1757_v18, 4  ;;  %4282 = vmatpush3.bf16.msra.mxu0 %v3518_v29  ;;  %v1934_v54 = vshll.u32 %v5534_v52, 16  ;;  %v1940_v35 = vrot.slane %v1938_v36, 4  ;;  %v1944_v47 = vshll.u32 %v5606_v51, 16  ;;  %v4400_v36 = vld [vmem:[%s6509_s2 + $0x10] sm:$0xff]   ;;  %v4401_v17 = vld [vmem:[%s6509_s2 + $0x8] sm:$0xff]  }
  0xe7   : > { %4328 = vmatpush3.bf16.msra.mxu1 %v3518_v29  ;;  %4283 = vmatprep.subr.bf16.mxu0 %v4399_v9  ;;  %v5630_v1 = vrot.slane %v1760_v62, 5  ;;  %v1739_v22 = vor.u32 %v1738_v39, %v1735_v53  ;;  %v1742_v11 = vshll.u32 %v5563_v26, 16  ;;  %v1932_v34 = vrot.slane %v1931_v20, 4  ;;  %v5679_v29 = vld [vmem:[%s4539_s22 + $0x5c] sm:$0x1] }
  0xe8   : > { %v5619_v6 = vpop.permute.xlu0 %2357  ;;  %4324 = vmatprep.subr.bf16.mxu1 %v4399_v9  ;;  %v1936_v57 = vrot.slane %v1934_v54, 5  ;;  %v1946_v28 = vrot.slane %v1944_v47, 5  ;;  %v1748_v44 = vrot.slane %v1746_v41, 4  ;;  %v1752_v7 = vshll.u32 %v5626_v25, 16  ;;  %v4404_v47 = vld [vmem:[%s6509_s2] sm:$0xff]  }
  0xe9   : > { %v5628_v5 = vpop.permute.xlu1 %2375  ;;  %2727 = vrot.lane.b32.xlu1 %v4153_v37, %s4485_s28  ;;  %v1740_v48 = vrot.slane %v1739_v22, 4  ;;  %v1744_v63 = vrot.slane %v1742_v11, 5  ;;  %v3154_v46 = vsel %vm3134_vm13, %v5549_v43, %v5521_v19  ;;  %v3138_v61 = vsel %vm3134_vm13, %v5557_v2, %v5540_v40 }
  0xea   : > { %2711 = vrot.lane.b32.xlu0 %v4145_v3, %s4485_s28  ;;  %4284 = vmatpush3.bf16.msra.mxu0 %v4399_v9  ;;  %v1937_v15 = vsel %vm4628_vm5, %v1932_v34, %v1936_v57  ;;  %v1941_v59 = vor.u32 %v1940_v35, %v1936_v57  ;;  %v4203_v10 = vcombine.low %v3154_v46, %v3154_v46  ;;  %v1754_v60 = vrot.slane %v1752_v7, 5  ;;  %v4027_v35 = vld [vmem:[%s4539_s22 + $0xa8] sm:$0xe]  ;;  %v4437_v34 = vld [vmem:[%s4539_s22 + $0x1c] sm:$0xf]  ;;  %v4403_v23 = vld [vmem:[#allocation2 + $0x40] sm:$0xff]  }
  0xeb   : > { %4329 = vmatpush3.bf16.msra.mxu1 %v4399_v9  ;;  %v4204_v27 = vcombine.high %v3154_v46, %v3154_v46  ;;  %v1745_v19 = vsel %vm4628_vm5, %v1740_v48, %v1744_v63  ;;  %v1749_v43 = vor.u32 %v1748_v44, %v1744_v63  ;;  %4285 = vmatprep.subr.bf16.mxu0 %v4400_v36  ;;  %v1958_v39 = vshll.u32 %v5586_v14, 16  ;;  %v4019_v63 = vld [vmem:[%s4539_s22 + $0x48] sm:$0xe] }
  0xec   : > { %v5653_v13 = vpop.permute.xlu0 %2359  ;;  %4325 = vmatprep.subr.bf16.mxu1 %v4400_v36  ;;  %v1942_v41 = vrot.slane %v1941_v59, 4  ;;  %3298 = vst.msk [vmem:[#allocation2 + $0x48] sm:$0xf] %vm3279_vm14, %v4203_v10  ;;  %v4187_v4 = vcombine.low %v3138_v61, %v3138_v61  ;;  %v4188_v16 = vcombine.high %v3138_v61, %v3138_v61  ;;  %v1955_v9 = vor.u32 %v1954_v55, %v5614_v32  ;;  %v4402_v10 = vld [vmem:[#allocation2] sm:$0xff]  }
  0xed   : > { %v5660_v33 = vpop.permute.xlu1 %2469  ;;  %3299 = vst.msk [vmem:[#allocation2 + $0x4c] sm:$0xf] %vm3279_vm14, %v4204_v27  ;;  %v1750_v53 = vrot.slane %v1749_v43, 4  ;;  %v1964_v18 = vrot.slane %v1962_v8, 4  ;;  %v1968_v62 = vshll.u32 %v5651_v56, 16  ;;  %v1763_v8 = vor.u32 %v5630_v1, %v5616_v42  ;;  %4291 = vmatprep.mubr.msk.bf16.mxu0 %vm3467_vm0, %v4402_v10  ;;  %4307 = vmatprep.mubr.msk.bf16.mxu1 %vm3467_vm0, %v4403_v23 }
  0xee   : > { %4286 = vmatpush3.bf16.msra.mxu0 %v4400_v36  ;;  %v1947_v2 = vsel %vm4628_vm5, %v1942_v41, %v1946_v28  ;;  %3282 = vst.msk [vmem:[#allocation2 + $0x8] sm:$0xf] %vm3279_vm14, %v4187_v4  ;;  %3283 = vst.msk [vmem:[#allocation2 + $0xc] sm:$0xf] %vm3279_vm14, %v4188_v16  ;;  %v1956_v37 = vrot.slane %v1955_v9, 4  ;;  %v1766_v32 = vshll.u32 %v5589_v12, 16 }
  0xef   : > { %4330 = vmatpush3.bf16.msra.mxu1 %v4400_v36  ;;  %4287 = vmatprep.subr.bf16.mxu0 %v4401_v17  ;;  %v4167_v3 = vcombine.low %v1937_v15, %v1947_v2  ;;  %v1755_v20 = vsel %vm4628_vm5, %v1750_v53, %v1754_v60  ;;  %v1960_v54 = vrot.slane %v1958_v39, 5  ;;  %v1764_v1 = vrot.slane %v1763_v8, 4  ;;  %v4436_v36 = vld [vmem:[%s4539_s22 + $0x18] sm:$0xf]  ;;  %v4438_v43 = vld [vmem:[%s4539_s22 + $0x84] sm:$0xf] }
  0xf0   : > { %v5672_v40 = vpop.permute.xlu0 %2453  ;;  %4326 = vmatprep.subr.bf16.mxu1 %v4401_v17  ;;  %v4159_v42 = vcombine.low %v1745_v19, %v1755_v20  ;;  %v1768_v22 = vrot.slane %v1766_v32, 5  ;;  %v1772_v11 = vrot.slane %v1770_v49, 4  ;;  %v4046_v57 = vcombine.low %v4436_v36, %v4437_v34  ;;  %v4439_v60 = vld [vmem:[%s4539_s22 + $0x88] sm:$0xf]  ;;  %v5731_v8 = vld [vmem:[%s4539_s22 + $0xac] sm:$0xf] }
  0xf1   : > { %v5684_v55 = vpop.permute.xlu1 %2471  ;;  %2802 = vrot.lane.b32.xlu1 %v4167_v3, %s4486_s29  ;;  %v1965_v28 = vor.u32 %v1964_v18, %v1960_v54  ;;  %v1970_v44 = vrot.slane %v1968_v62, 5  ;;  %v1776_v48 = vshll.u32 %v5679_v29, 16  ;;  %v5706_v49 = vsel %vm2887_vm6, %v4054_v24, %v5488_v31  ;;  %v395_v31 = vld [vmem:[%s4539_s22 + $0xa8] sm:$0xf] }
  0xf2   : > { %4288 = vmatpush3.bf16.msra.mxu0 %v4401_v17  ;;  %2786 = vrot.lane.b32.xlu0 %v4159_v42, %s4486_s29  ;;  %v1961_v46 = vsel %vm4628_vm5, %v1956_v37, %v1960_v54  ;;  %v1773_v15 = vor.u32 %v1772_v11, %v1768_v22  ;;  %v4041_v59 = vrot.slane %v4027_v35, 9  ;;  %v4055_v61 = vcombine.low %v4438_v43, %v4439_v60  ;;  %v4440_v42 = vld [vmem:[%s4539_s22 + $0x24] sm:$0xf]  ;;  %v379_v34 = vld [vmem:[%s4539_s22 + $0x48] sm:$0xf] }
  0xf3   : > { %4331 = vmatpush3.bf16.msra.mxu1 %v4401_v17  ;;  %v1966_v27 = vrot.slane %v1965_v28, 4  ;;  %v1778_v19 = vrot.slane %v1776_v48, 5  ;;  %v2142_v38 = vrot.slane %v5534_v52, 5  ;;  %4289 = vmatprep.subr.bf16.mxu0 %v4404_v47  ;;  %v1769_v41 = vsel %vm4628_vm5, %v1764_v1, %v1768_v22  ;;  %v4441_v1 = vld [vmem:[%s4539_s22 + $0x28] sm:$0xf] }
  0xf4   : > { %v5699_v7 = vpop.permute.xlu0 %2455  ;;  %4327 = vmatprep.subr.bf16.mxu1 %v4404_v47  ;;  %v1774_v4 = vrot.slane %v1773_v15, 4  ;;  %v2145_v17 = vrot.slane %v5606_v51, 5  ;;  %v4033_v16 = vrot.slane %v4019_v63, 9  ;;  %v4406_v9 = vld [vmem:[#allocation2 + $0x48] sm:$0xff]   ;;  %v2086_v18 = vrot.slane %v5563_v26, 5 }
  0xf5   : > { %v1971_v53 = vsel %vm4628_vm5, %v1966_v27, %v1970_v44  ;;  %v2143_v52 = vsel %vm4570_vm2, %v4041_v59, %v2142_v38  ;;  %v2144_v39 = vrot.slane %v2142_v38, 4  ;;  %v2089_v51 = vrot.slane %v5626_v25, 5  ;;  %v4405_v32 = vld [vmem:[#allocation2 + $0x8] sm:$0xff]   ;;  %v5740_v25 = vld [vmem:[%s4539_s22 + $0xb0] sm:$0x1] }
  0xf6   : > { %v5715_v24 = vpop.permute.xlu1 %2549  ;;  %4290 = vmatpush3.bf16.msra.mxu0 %v4404_v47  ;;  %v4168_v2 = vcombine.low %v1961_v46, %v1971_v53  ;;  %v1779_v37 = vsel %vm4628_vm5, %v1774_v4, %v1778_v19  ;;  %v2087_v20 = vsel %vm4570_vm2, %v4033_v16, %v2086_v18  ;;  %v2088_v54 = vrot.slane %v2086_v18, 4  ;;  %v5768_v27 = vld [vmem:[%s4539_s22 + $0x50] sm:$0x1]  ;;  %v4028_v53 = vld [vmem:[%s4539_s22 + $0xb4] sm:$0xe] }
  0xf7   : > { %4332 = vmatpush3.bf16.msra.mxu1 %v4404_v47  ;;  %v4160_v3 = vcombine.low %v1769_v41, %v1779_v37  ;;  %v2146_v26 = vsel %vm4570_vm2, %v2144_v39, %v2145_v17  ;;  %v2896_v47 = vsel %vm2887_vm6, %v4046_v57, %v5500_v50  ;;  %v4047_v22 = vcombine.low %v4440_v42, %v4441_v1  ;;  %v5757_v57 = vld [vmem:[%s4539_s22 + $0x4c] sm:$0xf] }
  0xf8   : > { %v5725_v62 = vpop.permute.xlu0 %2533  ;;  %2804 = vrot.lane.b32.xlu1 %v4168_v2, %s4486_s29  ;;  %v4182_v11 = vcombine.low %v2143_v52, %v2146_v26  ;;  %v755_v36 = vshrl.u32 %v395_v31, 16  ;;  %v2090_v28 = vsel %vm4570_vm2, %v2088_v54, %v2089_v51  ;;  %v758_v44 = vshll.u32 %v395_v31, 16 }
  0xf9   : > { %4292 = vmatmul.mubr.msk.bf16.vlgmr.msra.gmra.mxu0 %vm3467_vm0, %v4405_v32  ;;  %2788 = vrot.lane.b32.xlu0 %v4160_v3, %s4486_s29  ;;  %v764_v48 = vshll.u32 %v5731_v8, 16  ;;  %v768_v50 = vshrl.u32 %v5731_v8, 16  ;;  %v5764_v46 = vsel %vm2887_vm6, %v4055_v61, %v5574_v0  ;;  %v4174_v15 = vcombine.low %v2087_v20, %v2090_v28  ;;  %v4020_v20 = vld [vmem:[%s4539_s22 + $0x54] sm:$0xe] }
  0xfa   : > { %v5742_v35 = vpop.permute.xlu1 %2551  ;;  %4308 = vmatmul.mubr.msk.bf16.vlgmr.msra.gmra.mxu1 %vm3467_vm0, %v4406_v9  ;;  %v757_v59 = vrot.slane %v755_v36, 4  ;;  %v774_v10 = vshll.u32 %v5740_v25, 16  ;;  %v760_v19 = vrot.slane %v758_v44, 5  ;;  %v563_v38 = vshrl.u32 %v379_v34, 16 }
  0xfb   : > { %v766_v43 = vrot.slane %v764_v48, 5  ;;  %v770_v60 = vrot.slane %v768_v50, 4  ;;  %v566_v41 = vshll.u32 %v379_v34, 16  ;;  %v572_v0 = vshll.u32 %v5757_v57, 16  ;;  %v397_v48 = vld [vmem:[%s4539_s22 + $0xb4] sm:$0xf] }
  0xfc   : > { %v5760_v63 = vpop.permute.xlu0 %2535  ;;  %2879 = vrot.lane.b32.xlu1 %v4182_v11, %s4487_s30  ;;  %v776_v31 = vrot.slane %v774_v10, 5  ;;  %v576_v61 = vshrl.u32 %v5757_v57, 16  ;;  %v761_v4 = vor.u32 %v760_v19, %v757_v59  ;;  %v565_v16 = vrot.slane %v563_v38, 4 }
  0xfd   : > { %2863 = vrot.lane.b32.xlu0 %v4174_v15, %s4487_s30  ;;  %v771_v17 = vor.u32 %v770_v60, %v766_v43  ;;  %v582_v9 = vshll.u32 %v5768_v27, 16  ;;  %v5782_v39 = vsel %vm2887_vm6, %v4047_v22, %v5591_v58  ;;  %v568_v18 = vrot.slane %v566_v41, 5 }
  0xfe   : > { %v5770_v23 = vpop.permute.xlu1 %2629  ;;  %v574_v2 = vrot.slane %v572_v0, 5  ;;  %v578_v37 = vrot.slane %v576_v61, 4  ;;  %v5787_v51 = vsel %vm2936_vm7, %v5706_v49, %v5597_v45  ;;  %v5791_v32 = vsel %vm2936_vm7, %v2896_v47, %v5619_v6 }
  0xff   : > { %v762_v3 = vrot.slane %v761_v4, 4  ;;  %v772_v26 = vrot.slane %v771_v17, 4  ;;  %v569_v58 = vor.u32 %v568_v18, %v565_v16  ;;  %v584_v1 = vrot.slane %v582_v9, 5  ;;  %v5835_v18 = vld [vmem:[%s4539_s22 + $0x58] sm:$0xf] }
 0x100   : > { %v5778_v52 = vpop.permute.xlu0 %2613  ;;  %v579_v42 = vor.u32 %v578_v37, %v574_v2  ;;  %v4042_v22 = vrot.slane %v4028_v53, 9  ;;  %v2149_v6 = vrot.slane %v5586_v14, 5  ;;  %v2152_v49 = vrot.slane %v5651_v56, 5  ;;  %v5810_v14 = vld [vmem:[%s4539_s22 + $0xb8] sm:$0xf] }
 0x101   : > { %v767_v11 = vsel %vm4628_vm5, %v762_v3, %v766_v43  ;;  %v777_v45 = vsel %vm4628_vm5, %v772_v26, %v776_v31  ;;  %v570_v34 = vrot.slane %v569_v58, 4  ;;  %v4034_v44 = vrot.slane %v4020_v20, 9  ;;  %v5843_v26 = vld [vmem:[%s4539_s22 + $0x5c] sm:$0x1] }
 0x102   : > { %v5794_v54 = vpop.permute.xlu1 %2631  ;;  %v4074_v36 = vcombine.low %v767_v11, %v777_v45  ;;  %v580_v28 = vrot.slane %v579_v42, 4  ;;  %v2150_v50 = vsel %vm4570_vm2, %v4042_v22, %v2149_v6  ;;  %v2151_v15 = vrot.slane %v2149_v6, 4 }
 0x103   : > { %v2093_v59 = vrot.slane %v5589_v12, 5  ;;  %v2096_v10 = vrot.slane %v5679_v29, 5  ;;  %v972_v19 = vrot.slane %v5740_v25, 5  ;;  %v575_v43 = vsel %vm4628_vm5, %v570_v34, %v574_v2  ;;  %v5822_v12 = vld [vmem:[%s4539_s22 + $0xbc] sm:$0x1] }
 0x104   : > { %v5802_v47 = vpop.permute.xlu0 %2615  ;;  %2301 = vrot.lane.b32.xlu1 %v4074_v36, %s4482_s25  ;;  %v585_v60 = vsel %vm4628_vm5, %v580_v28, %v584_v1  ;;  %v916_v38 = vrot.slane %v5768_v27, 5  ;;  %v5825_v29 = vld [vmem:[%s4539_s22 + $0x54] sm:$0xf]  ;;  %v2153_v41 = vsel %vm4570_vm2, %v2151_v15, %v2152_v49  ;;  %v779_v16 = vshrl.u32 %v397_v48, 16 }
 0x105   : > { %v4066_v31 = vcombine.low %v575_v43, %v585_v60  ;;  %v2094_v0 = vsel %vm4570_vm2, %v4034_v44, %v2093_v59  ;;  %v2095_v61 = vrot.slane %v2093_v59, 4  ;;  %v4183_v17 = vcombine.low %v2150_v50, %v2153_v41  ;;  %v816_v50 = vld [vmem:[%s4539_s22 + $0xa8] sm:$0xe] }
 0x106   : > { %v5812_v56 = vpop.permute.xlu1 %2721  ;;  %v782_v9 = vshll.u32 %v397_v48, 16  ;;  %v788_v53 = vshll.u32 %v5810_v14, 16  ;;  %v792_v37 = vshrl.u32 %v5810_v14, 16  ;;  %v798_v3 = vshll.u32 %v5822_v12, 16  ;;  %v808_v43 = vld [vmem:[%s4539_s22 + $0x48] sm:$0xe] }
 0x107   : > { %2285 = vrot.lane.b32.xlu0 %v4066_v31, %s4482_s25  ;;  %v2097_v2 = vsel %vm4570_vm2, %v2095_v61, %v2096_v10  ;;  %v587_v20 = vshrl.u32 %v5825_v29, 16  ;;  %v781_v1 = vrot.slane %v779_v16, 4  ;;  %v2960_v45 = vsel %vm2936_vm7, %v5764_v46, %v5628_v5 }
 0x108   : > { %v5831_v4 = vpop.permute.xlu0 %2705  ;;  %2881 = vrot.lane.b32.xlu1 %v4183_v17, %s4487_s30  ;;  %v4175_v42 = vcombine.low %v2094_v0, %v2097_v2  ;;  %v784_v22 = vrot.slane %v782_v9, 5  ;;  %v790_v11 = vrot.slane %v788_v53, 5  ;;  %v794_v6 = vrot.slane %v792_v37, 4 }
 0x109   : > { %v589_v49 = vrot.slane %v587_v20, 4  ;;  %v590_v36 = vshll.u32 %v5825_v29, 16  ;;  %v596_v28 = vshll.u32 %v5835_v18, 16  ;;  %v600_v44 = vshrl.u32 %v5835_v18, 16 }
 0x10a   : > { %v5846_v58 = vpop.permute.xlu1 %2723  ;;  %v785_v34 = vor.u32 %v784_v22, %v781_v1  ;;  %v606_v48 = vshll.u32 %v5843_v26, 16  ;;  %v2944_v59 = vsel %vm2936_vm7, %v5782_v39, %v5653_v13  ;;  %v795_v5 = vor.u32 %v794_v6, %v790_v11 }
 0x10b   : > { %2865 = vrot.lane.b32.xlu0 %v4175_v42, %s4487_s30  ;;  %v800_v46 = vrot.slane %v798_v3, 5  ;;  %v592_v10 = vrot.slane %v590_v36, 5  ;;  %v598_v31 = vrot.slane %v596_v28, 5  ;;  %v602_v41 = vrot.slane %v600_v44, 4 }
 0x10c   : > { %v5857_v15 = vpop.permute.xlu0 %2707  ;;  %v786_v60 = vrot.slane %v785_v34, 4  ;;  %v608_v0 = vrot.slane %v606_v48, 5  ;;  %v796_v61 = vrot.slane %v795_v5, 4  ;;  %v3895_v16 = vrot.slane %v816_v50, 9 }
 0x10d   : > { %v593_v17 = vor.u32 %v592_v10, %v589_v49  ;;  %v969_v9 = vrot.slane %v5731_v8, 5  ;;  %v603_v39 = vor.u32 %v602_v41, %v598_v31  ;;  %v3887_v2 = vrot.slane %v808_v43, 9  ;;  %v817_v8 = vld [vmem:[%s4539_s22 + $0xb4] sm:$0xe]  ;;  %v5932_v41 = vld [vmem:[%s4539_s22 + $0xb8] sm:$0xf] }
 0x10e   : > { %v791_v13 = vsel %vm4628_vm5, %v786_v60, %v790_v11  ;;  %v913_v37 = vrot.slane %v5757_v57, 5  ;;  %v801_v3 = vsel %vm4628_vm5, %v796_v61, %v800_v46  ;;  %v2991_v22 = vsel %vm2969_vm8, %v5787_v51, %v5660_v33  ;;  %v809_v51 = vld [vmem:[%s4539_s22 + $0x54] sm:$0xe] }
 0x10f   : > { %v5865_v53 = vpop.permute.xlu1 %2798  ;;  %v594_v20 = vrot.slane %v593_v17, 4  ;;  %v970_v42 = vsel %vm4570_vm2, %v3895_v16, %v969_v9  ;;  %v971_v1 = vrot.slane %v969_v9, 4  ;;  %v4075_v11 = vcombine.low %v791_v13, %v801_v3  ;;  %v5944_v9 = vld [vmem:[%s4539_s22 + $0x58] sm:$0xf] }
 0x110   : > { %v604_v6 = vrot.slane %v603_v39, 4  ;;  %v915_v49 = vrot.slane %v913_v37, 4  ;;  %v5878_v36 = vpop.permute.xlu0 %2782  ;;  %v2975_v57 = vsel %vm2969_vm8, %v5791_v32, %v5672_v40  ;;  %v914_v33 = vsel %vm4570_vm2, %v3887_v2, %v913_v37  ;;  %v1012_v39 = vld [vmem:[%s5920_s5] sm:$0xf] }
 0x111   : > { %v599_v34 = vsel %vm4628_vm5, %v594_v20, %v598_v31  ;;  %v973_v28 = vsel %vm4570_vm2, %v971_v1, %v972_v19  ;;  %2303 = vrot.lane.b32.xlu1 %v4075_v11, %s4482_s25  ;;  %v3896_v44 = vrot.slane %v817_v8, 9  ;;  %v5902_v19 = vld [vmem:[%s4539_s22 + $0xb4] sm:$0xf]  ;;  %v2993_v50 = vsel %vm2969_vm8, %v2960_v45, %v5684_v55  ;;  %v5956_v20 = vld [vmem:[%s4539_s22 + $0x60] sm:$0xf] }
 0x112   : > { %v609_v40 = vsel %vm4628_vm5, %v604_v6, %v608_v0  ;;  %v4090_v32 = vcombine.low %v970_v42, %v973_v28  ;;  %v917_v25 = vsel %vm4570_vm2, %v915_v49, %v916_v38  ;;  %v976_v5 = vrot.slane %v5810_v14, 5  ;;  %v5915_v31 = vld [vmem:[%s4539_s22 + $0x54] sm:$0xf] }
 0x113   : > { %v4067_v48 = vcombine.low %v599_v34, %v609_v40  ;;  %v979_v46 = vrot.slane %v5822_v12, 5  ;;  %v5908_v10 = vpop.permute.xlu1 %2800  ;;  %v2977_v27 = vsel %vm2969_vm8, %v2944_v59, %v5699_v7  ;;  %v3888_v43 = vrot.slane %v809_v51, 9  ;;  %v5970_v34 = vld [vmem:[%s4539_s22 + $0x64] sm:$0xf] }
 0x114   : > { %v920_v38 = vrot.slane %v5835_v18, 5  ;;  %v923_v60 = vrot.slane %v5843_v26, 5  ;;  %v4082_v55 = vcombine.low %v914_v33, %v917_v25  ;;  %v977_v7 = vsel %vm4570_vm2, %v3896_v44, %v976_v5 }
 0x115   : > { %2287 = vrot.lane.b32.xlu0 %v4067_v48, %s4482_s25  ;;  %v978_v14 = vrot.slane %v976_v5, 4  ;;  %v1367_v12 = vshrl.u32 %v5902_v19, 16  ;;  %2381 = vrot.lane.b32.xlu1 %v4090_v32, %s4481_s24  ;;  %v3024_v26 = vsel %vm3002_vm9, %v2991_v22, %v5715_v24  ;;  %v1370_v0 = vshll.u32 %v5902_v19, 16  ;;  %v5935_v61 = vpop.permute.xlu0 %2784  ;;  %v5963_v22 = vld [vmem:[%s5920_s5 + $0x4] sm:$0xf] }
 0x116   : > { %v921_v45 = vsel %vm4570_vm2, %v3888_v43, %v920_v38  ;;  %v922_v59 = vrot.slane %v920_v38, 4  ;;  %v3008_v17 = vsel %vm3002_vm9, %v2975_v57, %v5725_v62  ;;  %v3026_v24 = vsel %vm3002_vm9, %v2993_v50, %v5742_v35  ;;  %v5986_v48 = vld [vmem:[%s4539_s22 + $0xbc] sm:$0x1] }
 0x117   : > { %v980_v16 = vsel %vm4570_vm2, %v978_v14, %v979_v46  ;;  %v1175_v13 = vshrl.u32 %v5915_v31, 16  ;;  %v5952_v62 = vsel %vm3002_vm9, %v2977_v27, %v5760_v63  ;;  %v1178_v3 = vshll.u32 %v5915_v31, 16  ;;  %v5965_v11 = vpop.permute.xlu1 %2875  ;;  %v5996_v43 = vld [vmem:[%s4539_s22 + $0x5c] sm:$0x1] }
 0x118   : > { %v4091_v2 = vcombine.low %v977_v7, %v980_v16  ;;  %v924_v37 = vsel %vm4570_vm2, %v922_v59, %v923_v60  ;;  %v1369_v42 = vrot.slane %v1367_v12, 4  ;;  %v1380_v1 = vshrl.u32 %v5932_v41, 16 }
 0x119   : > { %2365 = vrot.lane.b32.xlu0 %v4082_v55, %s4481_s24  ;;  %v4083_v35 = vcombine.low %v921_v45, %v924_v37  ;;  %v4106_v8 = vcombine.low %v5902_v19, %v5932_v41  ;;  %v1372_v63 = vrot.slane %v1370_v0, 5  ;;  %v1177_v6 = vrot.slane %v1175_v13, 4  ;;  %v5988_v50 = vpop.permute.xlu0 %2859  ;;  %v6013_v37 = vld [vmem:[%s5920_s5 + $0x8] sm:$0x1] }
 0x11a   : > { %2383 = vrot.lane.b32.xlu1 %v4091_v2, %s4481_s24  ;;  %v1188_v49 = vshrl.u32 %v5944_v9, 16  ;;  %v1391_v57 = vshrl.u32 %v1012_v39, 16  ;;  %v1180_v28 = vrot.slane %v1178_v3, 5  ;;  %v4098_v33 = vcombine.low %v5915_v31, %v5944_v9 }
 0x11b   : > { %v1394_v51 = vshll.u32 %v1012_v39, 16  ;;  %v1199_v40 = vshrl.u32 %v5956_v20, 16  ;;  %v5977_v32 = vsel %vm3035_vm10, %v3024_v26, %v5770_v23  ;;  %v5981_v25 = vsel %vm3035_vm10, %v3008_v17, %v5778_v52 }
 0x11c   : > { %v1404_v44 = vshrl.u32 %v5963_v22, 16  ;;  %v1202_v19 = vshll.u32 %v5956_v20, 16  ;;  %v1393_v5 = vrot.slane %v1391_v57, 4  ;;  %v5992_v27 = vcombine.low %v1012_v39, %v5963_v22 }
 0x11d   : > { %2367 = vrot.lane.b32.xlu0 %v4083_v35, %s4481_s24  ;;  %v1396_v46 = vrot.slane %v1394_v51, 5  ;;  %v1212_v23 = vshrl.u32 %v5970_v34, 16  ;;  %v1201_v52 = vrot.slane %v1199_v40, 4  ;;  %v1373_v38 = vor.u32 %v1372_v63, %v1369_v42 }
 0x11e   : > { %2477 = vrot.lane.b32.xlu1 %v4106_v8, %s4480_s23  ;;  %v1376_v60 = vshll.u32 %v5932_v41, 16  ;;  %v1382_v31 = vrot.slane %v1380_v1, 4  ;;  %v1386_v55 = vshll.u32 %v5986_v48, 16  ;;  %v1181_v7 = vor.u32 %v1180_v28, %v1177_v6  ;;  %v6023_v6 = vld [vmem:[%s4539_s22 + $0x68] sm:$0x1] }
 0x11f   : > { %v1184_v14 = vshll.u32 %v5944_v9, 16  ;;  %v1190_v12 = vrot.slane %v1188_v49, 4  ;;  %v6002_v26 = vpop.permute.xlu1 %2297  ;;  %v1204_v45 = vrot.slane %v1202_v19, 5  ;;  %v1374_v59 = vrot.slane %v1373_v38, 4 }
 0x120   : > { %v1378_v0 = vrot.slane %v1376_v60, 5  ;;  %v1194_v17 = vshll.u32 %v5996_v43, 16  ;;  %v4099_v16 = vcombine.low %v5956_v20, %v5970_v34  ;;  %v6010_v13 = vsel %vm3035_vm10, %v3026_v24, %v5794_v54 }
 0x121   : > { %2461 = vrot.lane.b32.xlu0 %v4098_v33, %s4480_s23  ;;  %v1182_v39 = vrot.slane %v1181_v7, 4  ;;  %v1186_v2 = vrot.slane %v1184_v14, 5  ;;  %v1388_v42 = vrot.slane %v1386_v55, 5  ;;  %v1397_v1 = vor.u32 %v1396_v46, %v1393_v5 }
 0x122   : > { %2479 = vrot.lane.b32.xlu1 %v5992_v27, %s4480_s23  ;;  %v1379_v3 = vsel %vm4628_vm5, %v1374_v59, %v1378_v0  ;;  %v1383_v35 = vor.u32 %v1382_v31, %v1378_v0  ;;  %v6019_v8 = vpop.permute.xlu0 %2281  ;;  %v1196_v63 = vrot.slane %v1194_v17, 5  ;;  %v1400_v54 = vshll.u32 %v5963_v22, 16  ;;  %v3956_v31 = vld [vmem:[%s4539_s22 + $0xb4] sm:$0xe] }
 0x123   : > { %v1191_v20 = vor.u32 %v1190_v12, %v1186_v2  ;;  %v1406_v24 = vrot.slane %v1404_v44, 4  ;;  %v1187_v57 = vsel %vm4628_vm5, %v1182_v39, %v1186_v2  ;;  %v1410_v28 = vshll.u32 %v6013_v37, 16  ;;  %v6030_v46 = vpop.permute.xlu1 %2877 }
 0x124   : > { %v1384_v49 = vrot.slane %v1383_v35, 4  ;;  %v1205_v33 = vor.u32 %v1204_v45, %v1201_v52  ;;  %v1398_v40 = vrot.slane %v1397_v1, 4  ;;  %v1402_v19 = vrot.slane %v1400_v54, 5  ;;  %v3948_v45 = vld [vmem:[%s4539_s22 + $0x54] sm:$0xe] }
 0x125   : > { %2463 = vrot.lane.b32.xlu0 %v4099_v16, %s4480_s23  ;;  %v1192_v51 = vrot.slane %v1191_v20, 4  ;;  %v1208_v5 = vshll.u32 %v5970_v34, 16  ;;  %v3043_v44 = vsel %vm3035_vm10, %v5952_v62, %v5802_v47  ;;  %v1214_v60 = vrot.slane %v1212_v23, 4  ;;  %v1429_v54 = vld [vmem:[%s5920_s5] sm:$0xe]  ;;  %s4259_s23 = sshll.u32 %s6521_s15, 8 }
 0x126   : > { %v1389_v38 = vsel %vm4628_vm5, %v1384_v49, %v1388_v42  ;;  %v1218_v52 = vshll.u32 %v6023_v6, 16  ;;  %v1407_v14 = vor.u32 %v1406_v24, %v1402_v19  ;;  %v1412_v12 = vrot.slane %v1410_v28, 5  ;;  %v6045_v17 = vpop.permute.xlu0 %2861  ;;  %v3949_v28 = vld [vmem:[%s4539_s22 + $0x60] sm:$0xe] }
 0x127   : > { %v4122_v55 = vcombine.low %v1379_v3, %v1389_v38  ;;  %v1197_v7 = vsel %vm4628_vm5, %v1192_v51, %v1196_v63  ;;  %v3090_v0 = vsel %vm3068_vm11, %v5977_v32, %v5812_v56  ;;  %v1206_v47 = vrot.slane %v1205_v33, 4 }
 0x128   : > { %v4114_v59 = vcombine.low %v1187_v57, %v1197_v7  ;;  %v1210_v62 = vrot.slane %v1208_v5, 5  ;;  %v1403_v23 = vsel %vm4628_vm5, %v1398_v40, %v1402_v19  ;;  %v1408_v16 = vrot.slane %v1407_v14, 4 }
 0x129   : > { %2557 = vrot.lane.b32.xlu1 %v4122_v55, %s4483_s26  ;;  %v3971_v39 = vrot.slane %v3956_v31, 9  ;;  %v1578_v2 = vrot.slane %v5932_v41, 5  ;;  %v1220_v35 = vrot.slane %v1218_v52, 5  ;;  %v1581_v56 = vrot.slane %v5986_v48, 5 }
 0x12a   : > { %2541 = vrot.lane.b32.xlu0 %v4114_v59, %s4483_s26  ;;  %v1215_v3 = vor.u32 %v1214_v60, %v1210_v62  ;;  %v3963_v32 = vrot.slane %v3948_v45, 9  ;;  %v1413_v42 = vsel %vm4628_vm5, %v1408_v16, %v1412_v12  ;;  %v1522_v63 = vrot.slane %v5944_v9, 5  ;;  %v6080_v60 = vld [vmem:[%s4539_s22 + $0x60] sm:$0xf] }
 0x12b   : > { %v1579_v1 = vsel %vm4570_vm2, %v3971_v39, %v1578_v2  ;;  %v1580_v20 = vrot.slane %v1578_v2, 4  ;;  %v6061_v24 = vcombine.low %v1403_v23, %v1413_v42  ;;  %v1211_v49 = vsel %vm4628_vm5, %v1206_v47, %v1210_v62  ;;  %v6115_v39 = vld [vmem:[%s4539_s22 + $0x64] sm:$0xf] }
 0x12c   : > { %v1216_v48 = vrot.slane %v1215_v3, 4  ;;  %v1525_v57 = vrot.slane %v5996_v43, 5  ;;  %v3074_v33 = vsel %vm3068_vm11, %v5981_v25, %v5831_v4  ;;  %v1523_v51 = vsel %vm4570_vm2, %v3963_v32, %v1522_v63  ;;  %v1619_v3 = vld [vmem:[%s5920_s5 + $0xc] sm:$0xf] }
 0x12d   : > { %v6059_v41 = vpop.permute.xlu1 %2299  ;;  %v1582_v9 = vsel %vm4570_vm2, %v1580_v20, %v1581_v56  ;;  %v1524_v40 = vrot.slane %v1522_v63, 4  ;;  %2559 = vrot.lane.b32.xlu1 %v6061_v24, %s4483_s26  ;;  %v3972_v43 = vrot.slane %v1429_v54, 9  ;;  %v1585_v38 = vrot.slane %v5963_v22, 5  ;;  %v6129_v63 = vld [vmem:[%s5920_s5 + $0x10] sm:$0xf] }
 0x12e   : > { %v1221_v19 = vsel %vm4628_vm5, %v1216_v48, %v1220_v35  ;;  %v4138_v5 = vcombine.low %v1579_v1, %v1582_v9  ;;  %v1588_v31 = vrot.slane %v6013_v37, 5  ;;  %v3964_v55 = vrot.slane %v3949_v28, 9  ;;  %v6132_v54 = vld [vmem:[%s4539_s22 + $0x70] sm:$0xf] }
 0x12f   : > { %v4115_v25 = vcombine.low %v1211_v49, %v1221_v19  ;;  %v1526_v52 = vsel %vm4570_vm2, %v1524_v40, %v1525_v57  ;;  %v3092_v14 = vsel %vm3068_vm11, %v6010_v13, %v5846_v58  ;;  %v1586_v22 = vsel %vm4570_vm2, %v3972_v43, %v1585_v38  ;;  %v6151_v19 = vld [vmem:[%s4539_s22 + $0x68] sm:$0x1] }
 0x130   : > { %v6082_v4 = vpop.permute.xlu0 %2283  ;;  %v1587_v12 = vrot.slane %v1585_v38, 4  ;;  %v1529_v45 = vrot.slane %v5970_v34, 5  ;;  %v3076_v37 = vsel %vm3068_vm11, %v3043_v44, %v5857_v15  ;;  %v4130_v59 = vcombine.low %v1523_v51, %v1526_v52 }
 0x131   : > { %v6087_v7 = vpop.permute.xlu1 %2377  ;;  %2543 = vrot.lane.b32.xlu0 %v4115_v25, %s4483_s26  ;;  %v1532_v47 = vrot.slane %v6023_v6, 5  ;;  %v1781_v62 = vshrl.u32 %v6080_v60, 16  ;;  %2637 = vrot.lane.b32.xlu1 %v4138_v5, %s4484_s27  ;;  %v1784_v23 = vshll.u32 %v6080_v60, 16  ;;  %v3123_v15 = vsel %vm3101_vm12, %v3090_v0, %v5865_v53  ;;  %v6125_v0 = vld [vmem:[%s4539_s22 + $0x6c] sm:$0xf] }
 0x132   : > { %v1589_v58 = vsel %vm4570_vm2, %v1587_v12, %v1588_v31  ;;  %v1530_v34 = vsel %vm4570_vm2, %v3964_v55, %v1529_v45  ;;  %v1531_v13 = vrot.slane %v1529_v45, 4  ;;  %v3107_v6 = vsel %vm3101_vm12, %v3074_v33, %v5878_v36 }
 0x133   : > { %v6112_v44 = vcombine.low %v1586_v22, %v1589_v58  ;;  %v1783_v2 = vrot.slane %v1781_v62, 4  ;;  %v1786_v56 = vrot.slane %v1784_v23, 5  ;;  %v3156_v32 = vsel %vm3134_vm13, %v3123_v15, %v5965_v11  ;;  %v6175_v58 = vld [vmem:[%s5920_s5 + $0x14] sm:$0x1] }
 0x134   : > { %v6106_v16 = vpop.permute.xlu0 %2361  ;;  %v1533_v35 = vsel %vm4570_vm2, %v1531_v13, %v1532_v47  ;;  %v3140_v53 = vsel %vm3134_vm13, %v3107_v6, %v5988_v50  ;;  %v4205_v42 = vcombine.low %v3156_v32, %v3156_v32  ;;  %v4206_v1 = vcombine.high %v3156_v32, %v3156_v32 }
 0x135   : > { %2621 = vrot.lane.b32.xlu0 %v4130_v59, %s4484_s27  ;;  %v4131_v36 = vcombine.low %v1530_v34, %v1533_v35  ;;  %v4189_v20 = vcombine.low %v3140_v53, %v3140_v53  ;;  %2639 = vrot.lane.b32.xlu1 %v6112_v44, %s4484_s27  ;;  %v1794_v11 = vshrl.u32 %v6115_v39, 16  ;;  %v4190_v50 = vcombine.high %v3140_v53, %v3140_v53  ;;  %v6180_v35 = vld [vmem:[%s4539_s22 + $0x74] sm:$0x1] }
 0x136   : > { %v6134_v49 = vpop.permute.xlu1 %2379  ;;  %v1973_v48 = vshrl.u32 %v1619_v3, 16  ;;  %v1976_v57 = vshll.u32 %v1619_v3, 16  ;;  %v3125_v33 = vsel %vm3101_vm12, %v3092_v14, %v5908_v10  ;;  %v3109_v9 = vsel %vm3101_vm12, %v3076_v37, %v5935_v61  ;;  %3300 = vst.msk [vmem:[#allocation2 + $0x50] sm:$0xf] %vm3279_vm14, %v4205_v42  ;;  %3301 = vst.msk [vmem:[#allocation2 + $0x54] sm:$0xf] %vm3279_vm14, %v4206_v1 }
 0x137   : > { %3284 = vst.msk [vmem:[#allocation2 + $0x10] sm:$0xf] %vm3279_vm14, %v4189_v20  ;;  %v1805_v51 = vshrl.u32 %v6125_v0, 16  ;;  %v1808_v40 = vshll.u32 %v6125_v0, 16  ;;  %v4146_v5 = vcombine.low %v6080_v60, %v6115_v39  ;;  %3285 = vst.msk [vmem:[#allocation2 + $0x14] sm:$0xf] %vm3279_vm14, %v4190_v50  ;;  %v4154_v61 = vcombine.low %v1619_v3, %v6129_v63 }
 0x138   : > { %v6139_v28 = vpop.permute.xlu0 %2363  ;;  %v1986_v10 = vshrl.u32 %v6129_v63, 16  ;;  %v1818_v43 = vshrl.u32 %v6132_v54, 16  ;;  %v1975_v38 = vrot.slane %v1973_v48, 4  ;;  %v1978_v25 = vrot.slane %v1976_v57, 5 }
 0x139   : > { %2623 = vrot.lane.b32.xlu0 %v4131_v36, %s4484_s27  ;;  %v4147_v52 = vcombine.low %v6125_v0, %v6132_v54  ;;  %v1787_v31 = vor.u32 %v1786_v56, %v1783_v2  ;;  %2729 = vrot.lane.b32.xlu1 %v5992_v27, %s4485_s28  ;;  %v1807_v60 = vrot.slane %v1805_v51, 4  ;;  %v1790_v14 = vshll.u32 %v6115_v39, 16 }
 0x13a   : > { %v6162_v55 = vpop.permute.xlu1 %2473  ;;  %v1796_v22 = vrot.slane %v1794_v11, 4  ;;  %v1800_v12 = vshll.u32 %v6151_v19, 16  ;;  %v1810_v37 = vrot.slane %v1808_v40, 5  ;;  %v3158_v47 = vsel %vm3134_vm13, %v3125_v33, %v6030_v46 }
 0x13b   : > { %v1788_v59 = vrot.slane %v1787_v31, 4  ;;  %v3142_v62 = vsel %vm3134_vm13, %v3109_v9, %v6045_v17  ;;  %v1792_v27 = vrot.slane %v1790_v14, 5  ;;  %v4207_v13 = vcombine.low %v3158_v47, %v3158_v47 }
 0x13c   : > { %v6168_v45 = vpop.permute.xlu0 %2457  ;;  %v1802_v34 = vrot.slane %v1800_v12, 5  ;;  %v4208_v23 = vcombine.high %v3158_v47, %v3158_v47  ;;  %v4191_v15 = vcombine.low %v3142_v62, %v3142_v62  ;;  %v4192_v6 = vcombine.high %v3142_v62, %v3142_v62  ;;  %v4022_v12 = vld [vmem:[%s4539_s22 + $0x6c] sm:$0xe] }
 0x13d   : > { %2713 = vrot.lane.b32.xlu0 %v4146_v5, %s4485_s28  ;;  %v1979_v2 = vor.u32 %v1978_v25, %v1975_v38  ;;  %v1982_v3 = vshll.u32 %v6129_v63, 16  ;;  %2731 = vrot.lane.b32.xlu1 %v4154_v61, %s4485_s28  ;;  %v1797_v46 = vor.u32 %v1796_v22, %v1792_v27  ;;  %3302 = vst.msk [vmem:[#allocation2 + $0x58] sm:$0xf] %vm3279_vm14, %v4207_v13  ;;  %v1988_v17 = vrot.slane %v1986_v10, 4  ;;  %v4414_v1 = vld [vmem:[#allocation2 + $0x50] sm:$0xff]  }
 0x13e   : > { %3303 = vst.msk [vmem:[#allocation2 + $0x5c] sm:$0xf] %vm3279_vm14, %v4208_v23  ;;  %v1992_v56 = vshll.u32 %v6175_v58, 16  ;;  %v6186_v32 = vpop.permute.xlu1 %2475  ;;  %3286 = vst.msk [vmem:[#allocation2 + $0x18] sm:$0xf] %vm3279_vm14, %v4191_v15  ;;  %v1811_v36 = vor.u32 %v1810_v37, %v1807_v60  ;;  %v1814_v42 = vshll.u32 %v6132_v54, 16  ;;  %v1793_v11 = vsel %vm4628_vm5, %v1788_v59, %v1792_v27  ;;  %4311 = vmatprep.mubr.msk.bf16.mxu1 %vm3467_vm0, %v4414_v1 }
 0x13f   : > { %3287 = vst.msk [vmem:[#allocation2 + $0x1c] sm:$0xf] %vm3279_vm14, %v4192_v6  ;;  %v1980_v53 = vrot.slane %v1979_v2, 4  ;;  %v1984_v0 = vrot.slane %v1982_v3, 5  ;;  %v1798_v50 = vrot.slane %v1797_v46, 4  ;;  %v1820_v48 = vrot.slane %v1818_v43, 4 }
 0x140   : > { %v6191_v20 = vpop.permute.xlu0 %2459  ;;  %v1824_v57 = vshll.u32 %v6180_v35, 16  ;;  %v1994_v9 = vrot.slane %v1992_v56, 5  ;;  %v1812_v51 = vrot.slane %v1811_v36, 4  ;;  %v1816_v40 = vrot.slane %v1814_v42, 5  ;;  %v4021_v5 = vld [vmem:[%s4539_s22 + $0x60] sm:$0xe] }
 0x141   : > { %2715 = vrot.lane.b32.xlu0 %v4147_v52, %s4485_s28  ;;  %v1989_v33 = vor.u32 %v1988_v17, %v1984_v0  ;;  %v4415_v10 = vld [vmem:[#allocation2 + $0x10] sm:$0xff]   ;;  %2806 = vrot.lane.b32.xlu1 %v6061_v24, %s4486_s29  ;;  %v1803_v61 = vsel %vm4628_vm5, %v1798_v50, %v1802_v34  ;;  %v1985_v43 = vsel %vm4628_vm5, %v1980_v53, %v1984_v0  ;;  %v4035_v60 = vrot.slane %v4021_v5, 9  ;;  %v2010_v22 = vld [vmem:[%s5920_s5 + $0xc] sm:$0xe]  ;;  %s6352_s28 = scalar_lea.vmem %s6511_s4, %s4259_s23 }
 0x142   : > { %v4161_v38 = vcombine.low %v1793_v11, %v1803_v61  ;;  %v1821_v52 = vor.u32 %v1820_v48, %v1816_v40  ;;  %v1826_v31 = vrot.slane %v1824_v57, 5  ;;  %4295 = vmatprep.mubr.msk.bf16.mxu0 %vm3467_vm0, %v4415_v10  ;;  %v2100_v14 = vrot.slane %v6115_v39, 5  ;;  %v4443_v61 = vld [vmem:[%s4539_s22 + $0x94] sm:$0xf] }
 0x143   : > { %v1990_v25 = vrot.slane %v1989_v33, 4  ;;  %v1817_v59 = vsel %vm4628_vm5, %v1812_v51, %v1816_v40  ;;  %v2103_v62 = vrot.slane %v6151_v19, 5  ;;  %v4043_v6 = vrot.slane %v2010_v22, 9 }
 0x144   : > { %v1822_v47 = vrot.slane %v1821_v52, 4  ;;  %v2101_v39 = vsel %vm4570_vm2, %v4035_v60, %v2100_v14  ;;  %v2102_v13 = vrot.slane %v2100_v14, 4  ;;  %v2156_v2 = vrot.slane %v6129_v63, 5  ;;  %v4445_v52 = vld [vmem:[%s4539_s22 + $0x34] sm:$0xf] }
 0x145   : > { %v6209_v37 = vpop.permute.xlu1 %2553  ;;  %2790 = vrot.lane.b32.xlu0 %v4161_v38, %s4486_s29  ;;  %v1995_v24 = vsel %vm4628_vm5, %v1990_v25, %v1994_v9  ;;  %v2159_v3 = vrot.slane %v6175_v58, 5  ;;  %v4417_v46 = vld [vmem:[#allocation2 + $0x58] sm:$0xff]   ;;  %v4036_v56 = vrot.slane %v4022_v12, 9  ;;  %v2107_v53 = vrot.slane %v6132_v54, 5  ;;  %v4444_v25 = vld [vmem:[%s4539_s22 + $0x30] sm:$0xf] }
 0x146   : > { %v2538_v27 = vpop.permute.xlu0 %2537  ;;  %v4169_v34 = vcombine.low %v1985_v43, %v1995_v24  ;;  %v4416_v23 = vld [vmem:[#allocation2 + $0x18] sm:$0xff]   ;;  %v1827_v15 = vsel %vm4628_vm5, %v1822_v47, %v1826_v31  ;;  %v2104_v19 = vsel %vm4570_vm2, %v2102_v13, %v2103_v62  ;;  %v2157_v30 = vsel %vm4570_vm2, %v4043_v6, %v2156_v2  ;;  %4312 = vmatmul.mubr.msk.bf16.gmra.mxu1 %vm3467_vm0, %v4417_v46 }
 0x147   : > { %v4162_v17 = vcombine.low %v1817_v59, %v1827_v15  ;;  %4296 = vmatmul.mubr.msk.bf16.gmra.mxu0 %vm3467_vm0, %v4416_v23  ;;  %v2158_v0 = vrot.slane %v2156_v2, 4  ;;  %v2110_v63 = vrot.slane %v6180_v35, 5  ;;  %v4176_v58 = vcombine.low %v2101_v39, %v2104_v19  ;;  %v4446_v6 = vld [vmem:[%s4539_s22 + $0x9c] sm:$0xf] }
 0x148   : > { %2808 = vrot.lane.b32.xlu1 %v4169_v34, %s4486_s29  ;;  %v2109_v36 = vrot.slane %v2107_v53, 4  ;;  %v2108_v54 = vsel %vm4570_vm2, %v4036_v56, %v2107_v53  ;;  %v4056_v43 = vcombine.low %v4442_v21, %v4443_v61  ;;  %v4048_v31 = vcombine.low %v4444_v25, %v4445_v52  ;;  %v4448_v53 = vld [vmem:[%s4539_s22 + $0x3c] sm:$0xf] }
 0x149   : > { %2792 = vrot.lane.b32.xlu0 %v4162_v17, %s4486_s29  ;;  %v2160_v1 = vsel %vm4570_vm2, %v2158_v0, %v2159_v3 }
 0x14a   : > { %v4184_v35 = vcombine.low %v2157_v30, %v2160_v1  ;;  %v2111_v50 = vsel %vm4570_vm2, %v2109_v36, %v2110_v63  ;;  %v2926_v14 = vsel %vm2887_vm6, %v4056_v43, %v6002_v26  ;;  %v2902_v22 = vsel %vm2887_vm6, %v4048_v31, %v6019_v8  ;;  %v4449_v30 = vld [vmem:[%s4539_s22 + $0x40] sm:$0xf] }
 0x14b   : > { %v6233_v42 = vpop.permute.xlu1 %2555  ;;  %v4177_v48 = vcombine.low %v2108_v54, %v2111_v50  ;;  %v2962_v12 = vsel %vm2936_vm7, %v2926_v14, %v6087_v7  ;;  %v2946_v24 = vsel %vm2936_vm7, %v2902_v22, %v6106_v16  ;;  %v4049_v0 = vcombine.low %v4448_v53, %v4449_v30 }
 0x14c   : > { %v6239_v11 = vpop.permute.xlu0 %2539  ;;  %2883 = vrot.lane.b32.xlu1 %v6112_v44, %s4487_s30  ;;  %v2995_v59 = vsel %vm2969_vm8, %v2962_v12, %v6162_v55  ;;  %v2979_v62 = vsel %vm2969_vm8, %v2946_v24, %v6168_v45  ;;  %v4051_v30 = vcombine.low %v5825_v29, %v5835_v18 }
 0x14d   : > { %2867 = vrot.lane.b32.xlu0 %v4176_v58, %s4487_s30  ;;  %v3028_v26 = vsel %vm3002_vm9, %v2995_v59, %v6209_v37  ;;  %v3012_v8 = vsel %vm3002_vm9, %v2979_v62, %v2538_v27  ;;  %v4447_v27 = vld [vmem:[%s4539_s22 + $0xa0] sm:$0xf]  ;;  %v2905_v54 = vsel %vm2887_vm6, %v4049_v0, %v6082_v4 }
 0x14e   : > { %v4057_v2 = vcombine.low %v4446_v6, %v4447_v27  ;;  %v2948_v50 = vsel %vm2936_vm7, %v2905_v54, %v6139_v28  ;;  %v4451_v6 = vld [vmem:[%s4539_s22 + $0xac] sm:$0xf]  ;;  %v6345_v0 = vld [vmem:[%s6510_s3] ss:$0 sm:$0xff] }
 0x14f   : > { %v2634_v57 = vpop.permute.xlu1 %2633 }
 0x150   : > { %v2618_v33 = vpop.permute.xlu0 %2617  ;;  %2885 = vrot.lane.b32.xlu1 %v4184_v35, %s4487_s30  ;;  %v3061_v7 = vsel %vm3035_vm10, %v3028_v26, %v2634_v57  ;;  %v2929_v63 = vsel %vm2887_vm6, %v4057_v2, %v6059_v41  ;;  %v2981_v41 = vsel %vm2969_vm8, %v2948_v50, %v6191_v20 }
 0x151   : > { %2869 = vrot.lane.b32.xlu0 %v4177_v48, %s4487_s30  ;;  %v3045_v39 = vsel %vm3035_vm10, %v3012_v8, %v2618_v33  ;;  %v2964_v58 = vsel %vm2936_vm7, %v2929_v63, %v6134_v49  ;;  %v3014_v33 = vsel %vm3002_vm9, %v2981_v41, %v6239_v11 }
 0x152   : > { %v2997_v36 = vsel %vm2969_vm8, %v2964_v58, %v6186_v32 }
 0x153   : > { %v2636_v9 = vpop.permute.xlu1 %2635  ;;  %v3030_v35 = vsel %vm3002_vm9, %v2997_v36, %v6233_v42 }
 0x154   : > { %v6248_v51 = vpop.permute.xlu0 %2619  ;;  %v3063_v48 = vsel %vm3035_vm10, %v3030_v35, %v2636_v9 }
 0x155   : > { %v3047_v28 = vsel %vm3035_vm10, %v3014_v33, %v6248_v51 }
 0x157   : > { %v2726_v44 = vpop.permute.xlu1 %2725 }
 0x158   : > { %v2710_v40 = vpop.permute.xlu0 %2709  ;;  %v3094_v16 = vsel %vm3068_vm11, %v3061_v7, %v2726_v44 }
 0x159   : > { %v3078_v13 = vsel %vm3068_vm11, %v3045_v39, %v2710_v40 }
 0x15b   : > { %v2728_v5 = vpop.permute.xlu1 %2727 }
 0x15c   : > { %v6250_v10 = vpop.permute.xlu0 %2711  ;;  %v3096_v49 = vsel %vm3068_vm11, %v3063_v48, %v2728_v5 }
 0x15d   : > { %v3080_v20 = vsel %vm3068_vm11, %v3047_v28, %v6250_v10 }
 0x163   : > { %v2803_v38 = vpop.permute.xlu1 %2802 }
 0x164   : > { %v2787_v60 = vpop.permute.xlu0 %2786  ;;  %v3127_v55 = vsel %vm3101_vm12, %v3094_v16, %v2803_v38 }
 0x165   : > { %v3111_v45 = vsel %vm3101_vm12, %v3078_v13, %v2787_v60 }
 0x16a   : > { %v2805_v47 = vpop.permute.xlu1 %2804 }
 0x16b   : > { %v2789_v34 = vpop.permute.xlu0 %2788  ;;  %v3129_v4 = vsel %vm3101_vm12, %v3096_v49, %v2805_v47 }
 0x16c   : > { %v3113_v11 = vsel %vm3101_vm12, %v3080_v20, %v2789_v34 }
 0x16e   : > { %v2880_v23 = vpop.permute.xlu1 %2879 }
 0x16f   : > { %v3160_v37 = vsel %vm3134_vm13, %v3127_v55, %v2880_v23  ;;  %v2864_v15 = vpop.permute.xlu0 %2863 }
 0x170   : > { %v4209_v3 = vcombine.low %v3160_v37, %v3160_v37  ;;  %v4210_v46 = vcombine.high %v3160_v37, %v3160_v37  ;;  %v3144_v17 = vsel %vm3134_vm13, %v3111_v45, %v2864_v15  ;;  %v4450_v15 = vld [vmem:[%s4539_s22 + $0xa8] sm:$0xf] }
 0x171   : > { %v4193_v19 = vcombine.low %v3144_v17, %v3144_v17  ;;  %v4194_v56 = vcombine.high %v3144_v17, %v3144_v17  ;;  %v4058_v27 = vcombine.low %v4450_v15, %v4451_v6 }
 0x172   : > { %3304 = vst.msk [vmem:[#allocation2 + $0x60] sm:$0xf] %vm3279_vm14, %v4209_v3  ;;  %3305 = vst.msk [vmem:[#allocation2 + $0x64] sm:$0xf] %vm3279_vm14, %v4210_v46  ;;  %v4452_v3 = vld [vmem:[%s4539_s22 + $0x48] sm:$0xf] }
 0x173   : > { %3288 = vst.msk [vmem:[#allocation2 + $0x20] sm:$0xf] %vm3279_vm14, %v4193_v19  ;;  %3289 = vst.msk [vmem:[#allocation2 + $0x24] sm:$0xf] %vm3279_vm14, %v4194_v56  ;;  %v4453_v46 = vld [vmem:[%s4539_s22 + $0x4c] sm:$0xf] }
 0x174   : > { %v4050_v17 = vcombine.low %v4452_v3, %v4453_v46  ;;  %v4454_v19 = vld [vmem:[%s4539_s22 + $0xb4] sm:$0xf]  ;;  %v4455_v56 = vld [vmem:[%s4539_s22 + $0xb8] sm:$0xf] }
 0x175   : > { %v4059_v53 = vcombine.low %v4454_v19, %v4455_v56 }
 0x176   : > { %v6293_v1 = vpop.permute.xlu1 %2301 }
 0x177   : > { %v2932_v58 = vsel %vm2887_vm6, %v4058_v27, %v6293_v1 }
 0x179   : > { %v6305_v57 = vpop.permute.xlu0 %2285  ;;  %v4419_v32 = vld [vmem:[#allocation2 + $0x60] sm:$0xff]  }
 0x17a   : > { %v2882_v44 = vpop.permute.xlu1 %2881  ;;  %v4418_v42 = vld [vmem:[#allocation2 + $0x20] sm:$0xff]   ;;  %4315 = vmatprep.mubr.msk.bf16.mxu1 %vm3467_vm0, %v4419_v32  ;;  %v2908_v54 = vsel %vm2887_vm6, %v4050_v17, %v6305_v57 }
 0x17b   : > { %v3162_v9 = vsel %vm3134_vm13, %v3129_v4, %v2882_v44  ;;  %4299 = vmatprep.mubr.msk.bf16.mxu0 %vm3467_vm0, %v4418_v42 }
 0x17c   : > { %v4211_v40 = vcombine.low %v3162_v9, %v3162_v9  ;;  %v4212_v5 = vcombine.high %v3162_v9, %v3162_v9 }
 0x17d   : > { %v2866_v21 = vpop.permute.xlu0 %2865 }
 0x17e   : > { %3306 = vst.msk [vmem:[#allocation2 + $0x68] sm:$0xf] %vm3279_vm14, %v4211_v40  ;;  %3307 = vst.msk [vmem:[#allocation2 + $0x6c] sm:$0xf] %vm3279_vm14, %v4212_v5  ;;  %v3146_v51 = vsel %vm3134_vm13, %v3113_v11, %v2866_v21 }
 0x17f   : > { %v4195_v61 = vcombine.low %v3146_v51, %v3146_v51  ;;  %v4196_v43 = vcombine.high %v3146_v51, %v3146_v51 }
 0x181   : > { %3290 = vst.msk [vmem:[#allocation2 + $0x28] sm:$0xf] %vm3279_vm14, %v4195_v61  ;;  %3291 = vst.msk [vmem:[#allocation2 + $0x2c] sm:$0xf] %vm3279_vm14, %v4196_v43 }
 0x183   : > { %v2304_v10 = vpop.permute.xlu1 %2303 }
 0x184   : > { %v2935_v29 = vsel %vm2887_vm6, %v4059_v53, %v2304_v10 }
 0x185   : > { %v4421_v38 = vld [vmem:[#allocation2 + $0x68] sm:$0xff]  }
 0x186   : > { %4316 = vmatmul.mubr.msk.bf16.gmra.mxu1 %vm3467_vm0, %v4421_v38 }
 0x187   : > { %v2288_v25 = vpop.permute.xlu0 %2287  ;;  %v2382_v52 = vpop.permute.xlu1 %2381 }
 0x188   : > { %v4420_v31 = vld [vmem:[#allocation2 + $0x28] sm:$0xff]   ;;  %v2966_v18 = vsel %vm2936_vm7, %v2932_v58, %v2382_v52  ;;  %v2911_v48 = vsel %vm2887_vm6, %v4051_v30, %v2288_v25 }
 0x189   : > { %4300 = vmatmul.mubr.msk.bf16.gmra.mxu0 %vm3467_vm0, %v4420_v31 }
 0x18b   : > { %v2366_v60 = vpop.permute.xlu0 %2365 }
 0x18c   : > { %v2384_v14 = vpop.permute.xlu1 %2383  ;;  %v2950_v1 = vsel %vm2936_vm7, %v2908_v54, %v2366_v60 }
 0x18d   : > { %v2968_v57 = vsel %vm2936_vm7, %v2935_v29, %v2384_v14 }
 0x18f   : > { %v2368_v22 = vpop.permute.xlu0 %2367 }
 0x190   : > { %v2478_v12 = vpop.permute.xlu1 %2477  ;;  %v2952_v4 = vsel %vm2936_vm7, %v2911_v48, %v2368_v22 }
 0x191   : > { %v2999_v41 = vsel %vm2969_vm8, %v2966_v18, %v2478_v12 }
 0x193   : > { %v2462_v24 = vpop.permute.xlu0 %2461 }
 0x194   : > { %v2480_v59 = vpop.permute.xlu1 %2479  ;;  %v2983_v9 = vsel %vm2969_vm8, %v2950_v1, %v2462_v24 }
 0x195   : > { %v3001_v20 = vsel %vm2969_vm8, %v2968_v57, %v2480_v59 }
 0x197   : > { %v2464_v47 = vpop.permute.xlu0 %2463 }
 0x198   : > { %v2985_v51 = vsel %vm2969_vm8, %v2952_v4, %v2464_v47 }
 0x19b   : > { %v2558_v62 = vpop.permute.xlu1 %2557 }
 0x19c   : > { %v2542_v26 = vpop.permute.xlu0 %2541  ;;  %v3032_v44 = vsel %vm3002_vm9, %v2999_v41, %v2558_v62 }
 0x19d   : > { %v3016_v61 = vsel %vm3002_vm9, %v2983_v9, %v2542_v26 }
 0x19f   : > { %v2560_v34 = vpop.permute.xlu1 %2559 }
 0x1a0   : > { %v3034_v25 = vsel %vm3002_vm9, %v3001_v20, %v2560_v34 }
 0x1a3   : > { %v6325_v8 = vpop.permute.xlu0 %2543  ;;  %v2638_v7 = vpop.permute.xlu1 %2637 }
 0x1a4   : > { %v3065_v40 = vsel %vm3035_vm10, %v3032_v44, %v2638_v7 }
 0x1a7   : > { %v2622_v39 = vpop.permute.xlu0 %2621  ;;  %v2640_v16 = vpop.permute.xlu1 %2639 }
 0x1a8   : > { %v3049_v52 = vsel %vm3035_vm10, %v3016_v61, %v2622_v39  ;;  %v3067_v12 = vsel %vm3035_vm10, %v3034_v25, %v2640_v16  ;;  %v3018_v16 = vsel %vm3002_vm9, %v2985_v51, %v6325_v8 }
 0x1ab   : > { %v6327_v13 = vpop.permute.xlu0 %2623  ;;  %v2730_v55 = vpop.permute.xlu1 %2729 }
 0x1ac   : > { %v3098_v43 = vsel %vm3068_vm11, %v3065_v40, %v2730_v55  ;;  %v3051_v6 = vsel %vm3035_vm10, %v3018_v16, %v6327_v13 }
 0x1af   : > { %v2714_v23 = vpop.permute.xlu0 %2713  ;;  %v6329_v45 = vpop.permute.xlu1 %2731 }
 0x1b0   : > { %v3082_v24 = vsel %vm3068_vm11, %v3049_v52, %v2714_v23  ;;  %v3100_v23 = vsel %vm3068_vm11, %v3067_v12, %v6329_v45 }
 0x1b3   : > { %v6331_v37 = vpop.permute.xlu0 %2715  ;;  %v2807_v2 = vpop.permute.xlu1 %2806 }
 0x1b4   : > { %v3131_v31 = vsel %vm3101_vm12, %v3098_v43, %v2807_v2  ;;  %v3084_v8 = vsel %vm3068_vm11, %v3051_v6, %v6331_v37 }
 0x1b7   : > { %v2791_v63 = vpop.permute.xlu0 %2790 }
 0x1b8   : > { %v3115_v26 = vsel %vm3101_vm12, %v3082_v24, %v2791_v63 }
 0x1b9   : > { %v4293_v36 = vpop.f32.mrf.mxu0 }
 0x1ba   : > { %v3563_v35 = vadd.f32 %v4293_v36, %v6345_v0  ;;  %v4309_v50 = vpop.f32.mrf.mxu1  ;;  %v2809_v49 = vpop.permute.xlu1 %2808 }
 0x1bb   : > { %v3627_v32 = vadd.f32 %v4309_v50, %v6345_v0  ;;  %v3554_v33 = vpop.f32.mrf.mxu0  ;;  %v2793_v5 = vpop.permute.xlu0 %2792  ;;  %v3133_v27 = vsel %vm3101_vm12, %v3100_v23, %v2809_v49 }
 0x1bc   : > { %3683 = vst.msk [vmem:[%s6352_s28 + $0x10] sm:$0xff] %vm2887_vm6, %v3563_v35  ;;  %v3555_v42 = vadd.f32 %v6345_v0, %v3554_v33  ;;  %v3618_v28 = vpop.f32.mrf.mxu1  ;;  %v3117_v17 = vsel %vm3101_vm12, %v3084_v8, %v2793_v5 }
 0x1bd   : > { %3699 = vst.msk [vmem:[%s6352_s28 + $0x90] sm:$0xff] %vm2887_vm6, %v3627_v32  ;;  %v3619_v11 = vadd.f32 %v6345_v0, %v3618_v28  ;;  %v4294_v21 = vpop.f32.mrf.mxu0 }
 0x1be   : > { %3681 = vst.msk [vmem:[%s6352_s28] sm:$0xff] %vm2887_vm6, %v3555_v42  ;;  %v3566_v10 = vadd.f32 %v4294_v21, %v6345_v0  ;;  %v4310_v38 = vpop.f32.mrf.mxu1  ;;  %v2884_v60 = vpop.permute.xlu1 %2883 }
 0x1bf   : > { %3697 = vst.msk [vmem:[%s6352_s28 + $0x80] sm:$0xff] %vm2887_vm6, %v3619_v11  ;;  %v3630_v14 = vadd.f32 %v4310_v38, %v6345_v0  ;;  %v3557_v22 = vpop.f32.mrf.mxu0  ;;  %v3164_v59 = vsel %vm3134_vm13, %v3131_v31, %v2884_v60  ;;  %v2868_v39 = vpop.permute.xlu0 %2867 }
 0x1c0   : > { %3684 = vst.msk [vmem:[%s6352_s28 + $0x18] sm:$0xff] %vm2887_vm6, %v3566_v10  ;;  %v3558_v47 = vadd.f32 %v6345_v0, %v3557_v22  ;;  %v3621_v62 = vpop.f32.mrf.mxu1  ;;  %v4213_v34 = vcombine.low %v3164_v59, %v3164_v59  ;;  %v4214_v7 = vcombine.high %v3164_v59, %v3164_v59  ;;  %v3148_v15 = vsel %vm3134_vm13, %v3115_v26, %v2868_v39 }
 0x1c1   : > { %3700 = vst.msk [vmem:[%s6352_s28 + $0x98] sm:$0xff] %vm2887_vm6, %v3630_v14  ;;  %v3622_v55 = vadd.f32 %v6345_v0, %v3621_v62  ;;  %v4197_v2 = vcombine.low %v3148_v15, %v3148_v15  ;;  %v4198_v3 = vcombine.high %v3148_v15, %v3148_v15 }
 0x1c2   : > { %3682 = vst.msk [vmem:[%s6352_s28 + $0x8] sm:$0xff] %vm2887_vm6, %v3558_v47  ;;  %v2886_v46 = vpop.permute.xlu1 %2885 }
 0x1c3   : > { %3308 = vst.msk [vmem:[#allocation2 + $0x70] sm:$0xf] %vm3279_vm14, %v4213_v34  ;;  %3309 = vst.msk [vmem:[#allocation2 + $0x74] sm:$0xf] %vm3279_vm14, %v4214_v7  ;;  %v3166_v45 = vsel %vm3134_vm13, %v3133_v27, %v2886_v46  ;;  %v2870_v56 = vpop.permute.xlu0 %2869 }
 0x1c4   : > { %3698 = vst.msk [vmem:[%s6352_s28 + $0x88] sm:$0xff] %vm2887_vm6, %v3622_v55  ;;  %v4215_v13 = vcombine.low %v3166_v45, %v3166_v45  ;;  %v4216_v19 = vcombine.high %v3166_v45, %v3166_v45  ;;  %v3150_v53 = vsel %vm3134_vm13, %v3117_v17, %v2870_v56 }
 0x1c5   : > { %3292 = vst.msk [vmem:[#allocation2 + $0x30] sm:$0xf] %vm3279_vm14, %v4197_v2  ;;  %3293 = vst.msk [vmem:[#allocation2 + $0x34] sm:$0xf] %vm3279_vm14, %v4198_v3  ;;  %v4199_v30 = vcombine.low %v3150_v53, %v3150_v53  ;;  %v4200_v63 = vcombine.high %v3150_v53, %v3150_v53 }
 0x1c6   : > { %3310 = vst.msk [vmem:[#allocation2 + $0x78] sm:$0xf] %vm3279_vm14, %v4215_v13  ;;  %3311 = vst.msk [vmem:[#allocation2 + $0x7c] sm:$0xf] %vm3279_vm14, %v4216_v19 }
 0x1c7   : > { %3294 = vst.msk [vmem:[#allocation2 + $0x38] sm:$0xf] %vm3279_vm14, %v4199_v30  ;;  %3295 = vst.msk [vmem:[#allocation2 + $0x3c] sm:$0xf] %vm3279_vm14, %v4200_v63 }
 0x1ca   : > { %v4423_v37 = vld [vmem:[#allocation2 + $0x70] sm:$0xff]  }
 0x1cb   : > { %4319 = vmatprep.mubr.msk.bf16.mxu1 %vm3467_vm0, %v4423_v37 }
 0x1cc   : > { %v4422_v58 = vld [vmem:[#allocation2 + $0x30] sm:$0xff]  }
 0x1cd   : > { %4303 = vmatprep.mubr.msk.bf16.mxu0 %vm3467_vm0, %v4422_v58  ;;  %v4425_v36 = vld [vmem:[#allocation2 + $0x78] sm:$0xff]  }
 0x1ce   : > { %v4424_v54 = vld [vmem:[#allocation2 + $0x38] sm:$0xff]   ;;  %4320 = vmatmul.mubr.msk.bf16.gmra.mxu1 %vm3467_vm0, %v4425_v36 }
 0x1cf   : > { %4304 = vmatmul.mubr.msk.bf16.gmra.mxu0 %vm3467_vm0, %v4424_v54 }
 0x206   : > { %v4313_v35 = vpop.f32.mrf.mxu1 }
 0x207   : > { %v4297_v29 = vpop.f32.mrf.mxu0  ;;  %v3643_v50 = vadd.f32 %v4313_v35, %v6345_v0 }
 0x208   : > { %v3579_v18 = vadd.f32 %v4297_v29, %v6345_v0  ;;  %v3634_v41 = vpop.f32.mrf.mxu1 }
 0x209   : > { %v3570_v48 = vpop.f32.mrf.mxu0  ;;  %3703 = vst.msk [vmem:[%s6352_s28 + $0xb0] sm:$0xff] %vm2887_vm6, %v3643_v50  ;;  %v3635_v49 = vadd.f32 %v6345_v0, %v3634_v41 }
 0x20a   : > { %3687 = vst.msk [vmem:[%s6352_s28 + $0x30] sm:$0xff] %vm2887_vm6, %v3579_v18  ;;  %v3571_v1 = vadd.f32 %v6345_v0, %v3570_v48  ;;  %v4314_v57 = vpop.f32.mrf.mxu1 }
 0x20b   : > { %v4298_v32 = vpop.f32.mrf.mxu0  ;;  %3701 = vst.msk [vmem:[%s6352_s28 + $0xa0] sm:$0xff] %vm2887_vm6, %v3635_v49  ;;  %v3646_v4 = vadd.f32 %v4314_v57, %v6345_v0 }
 0x20c   : > { %3685 = vst.msk [vmem:[%s6352_s28 + $0x20] sm:$0xff] %vm2887_vm6, %v3571_v1  ;;  %v3582_v33 = vadd.f32 %v4298_v32, %v6345_v0  ;;  %v3637_v28 = vpop.f32.mrf.mxu1 }
 0x20d   : > { %v3573_v44 = vpop.f32.mrf.mxu0  ;;  %3704 = vst.msk [vmem:[%s6352_s28 + $0xb8] sm:$0xff] %vm2887_vm6, %v3646_v4  ;;  %v3638_v9 = vadd.f32 %v6345_v0, %v3637_v28 }
 0x20e   : > { %3688 = vst.msk [vmem:[%s6352_s28 + $0x38] sm:$0xff] %vm2887_vm6, %v3582_v33  ;;  %v3574_v42 = vadd.f32 %v6345_v0, %v3573_v44 }
 0x20f   : > { %3702 = vst.msk [vmem:[%s6352_s28 + $0xa8] sm:$0xff] %vm2887_vm6, %v3638_v9 }
 0x210   : > { %3686 = vst.msk [vmem:[%s6352_s28 + $0x28] sm:$0xff] %vm2887_vm6, %v3574_v42 }
 0x246   : > { %v4317_v20 = vpop.f32.mrf.mxu1 }
 0x247   : > { %v3659_v40 = vadd.f32 %v4317_v20, %v6345_v0 }
 0x248   : > { %v3650_v5 = vpop.f32.mrf.mxu1 }
 0x249   : > { %v4301_v11 = vpop.f32.mrf.mxu0  ;;  %3707 = vst.msk [vmem:[%s6352_s28 + $0xd0] sm:$0xff] %vm2887_vm6, %v3659_v40  ;;  %v3651_v21 = vadd.f32 %v6345_v0, %v3650_v5 }
 0x24a   : > { %v3595_v51 = vadd.f32 %v4301_v11, %v6345_v0  ;;  %v4318_v61 = vpop.f32.mrf.mxu1 }
 0x24b   : > { %v3586_v43 = vpop.f32.mrf.mxu0  ;;  %3705 = vst.msk [vmem:[%s6352_s28 + $0xc0] sm:$0xff] %vm2887_vm6, %v3651_v21  ;;  %v3662_v10 = vadd.f32 %v4318_v61, %v6345_v0 }
 0x24c   : > { %3691 = vst.msk [vmem:[%s6352_s28 + $0x50] sm:$0xff] %vm2887_vm6, %v3595_v51  ;;  %v3587_v38 = vadd.f32 %v6345_v0, %v3586_v43  ;;  %v3653_v25 = vpop.f32.mrf.mxu1 }
 0x24d   : > { %v4302_v52 = vpop.f32.mrf.mxu0  ;;  %3708 = vst.msk [vmem:[%s6352_s28 + $0xd8] sm:$0xff] %vm2887_vm6, %v3662_v10  ;;  %v3654_v31 = vadd.f32 %v6345_v0, %v3653_v25 }
 0x24e   : > { %3689 = vst.msk [vmem:[%s6352_s28 + $0x40] sm:$0xff] %vm2887_vm6, %v3587_v38  ;;  %v3598_v60 = vadd.f32 %v4302_v52, %v6345_v0 }
 0x24f   : > { %v3589_v14 = vpop.f32.mrf.mxu0  ;;  %3706 = vst.msk [vmem:[%s6352_s28 + $0xc8] sm:$0xff] %vm2887_vm6, %v3654_v31 }
 0x250   : > { %3692 = vst.msk [vmem:[%s6352_s28 + $0x58] sm:$0xff] %vm2887_vm6, %v3598_v60  ;;  %v3590_v22 = vadd.f32 %v6345_v0, %v3589_v14 }
 0x252   : > { %3690 = vst.msk [vmem:[%s6352_s28 + $0x48] sm:$0xff] %vm2887_vm6, %v3590_v22 }
 0x28e   : > { %v4321_v12 = vpop.f32.mrf.mxu1 }
 0x28f   : > { %v3675_v24 = vadd.f32 %v4321_v12, %v6345_v0  ;;  %v4305_v59 = vpop.f32.mrf.mxu0 }
 0x290   : > { %v3666_v47 = vpop.f32.mrf.mxu1  ;;  %v3611_v62 = vadd.f32 %v4305_v59, %v6345_v0 }
 0x291   : > { %3711 = vst.msk [vmem:[%s6352_s28 + $0xf0] sm:$0xff] %vm2887_vm6, %v3675_v24  ;;  %v3667_v26 = vadd.f32 %v6345_v0, %v3666_v47  ;;  %v3602_v34 = vpop.f32.mrf.mxu0 }
 0x292   : > { %v4322_v7 = vpop.f32.mrf.mxu1  ;;  %3695 = vst.msk [vmem:[%s6352_s28 + $0x70] sm:$0xff] %vm2887_vm6, %v3611_v62  ;;  %v3603_v39 = vadd.f32 %v6345_v0, %v3602_v34 }
 0x293   : > { %3709 = vst.msk [vmem:[%s6352_s28 + $0xe0] sm:$0xff] %vm2887_vm6, %v3667_v26  ;;  %v3678_v55 = vadd.f32 %v4322_v7, %v6345_v0  ;;  %v4306_v16 = vpop.f32.mrf.mxu0 }
 0x294   : > { %v3669_v23 = vpop.f32.mrf.mxu1  ;;  %3693 = vst.msk [vmem:[%s6352_s28 + $0x60] sm:$0xff] %vm2887_vm6, %v3603_v39  ;;  %v3614_v15 = vadd.f32 %v4306_v16, %v6345_v0 }
 0x295   : > { %3712 = vst.msk [vmem:[%s6352_s28 + $0xf8] sm:$0xff] %vm2887_vm6, %v3678_v55  ;;  %v3670_v6 = vadd.f32 %v6345_v0, %v3669_v23  ;;  %v3605_v27 = vpop.f32.mrf.mxu0 }
 0x296   : > { %3696 = vst.msk [vmem:[%s6352_s28 + $0x78] sm:$0xff] %vm2887_vm6, %v3614_v15  ;;  %v3606_v2 = vadd.f32 %v6345_v0, %v3605_v27 }
 0x297   : > { %3710 = vst.msk [vmem:[%s6352_s28 + $0xe8] sm:$0xff] %vm2887_vm6, %v3670_v6 }
 0x298   : > { %3694 = vst.msk [vmem:[%s6352_s28 + $0x68] sm:$0xff] %vm2887_vm6, %v3606_v2 }
 0x299 PF: > { %s14_s17 = sadd.s32 1, %s4478_s17   ;;  %s6516_s15 = smov %s4474_s16 }
 0x29a   : > { %p11_p5 = scmp.ge.s32.totalorder %s14_s17, 4   ;;  %s6517_s16 = smov %s6519_s18 }
 0x29c   :  { %13 = sbr.rel (!%p11_p5) target bundleno = 2 (0x2), region = 77 }

</bundles_post_ra>
